<compile_context>
chip_gen: v7x
topology: tpu7x:2x2x1
jax: 0.10.0
libtpu: 0.0.40
codegen_flags: <defaults>
</compile_context>

<pallas_src>
import functools
import math

import jax
import jax.numpy as jnp
from jax.experimental import pallas as pl
from jax.experimental.pallas import tpu as pltpu

VMEM_SPEC = pl.BlockSpec(memory_space=pltpu.MemorySpace.VMEM)
SMEM_SPEC = pl.BlockSpec(memory_space=pltpu.MemorySpace.SMEM)
PARALLEL_BRANCH = pltpu.CompilerParams(dimension_semantics=("parallel",))


# ---------------------------------------------------------------------------
# In-kernel LSTM helpers (PyTorch gate order i, f, g, o).
# ---------------------------------------------------------------------------
def _in_proj(x_val, w_ref, b_ref):
    """(N, Din) @ (Din, Dout) + bias — one big MXU matmul."""
    return (jnp.dot(x_val, w_ref[...], preferred_element_type=jnp.float32)
            + b_ref[...])


def _lstm_recurrence(x_proj, whh_ref, out_ref, *, B, S):
    """Run the recurrent part of an LSTM layer.

    x_proj  : (S*B, 4H) value, the hoisted x @ W_ih + b for all time steps
    out_ref : (S*B, H) ref, one row-block written per time step
    """
    H = whh_ref.shape[0]
    whh = whh_ref[...]
    h = jnp.zeros((B, H), jnp.float32)
    c = jnp.zeros((B, H), jnp.float32)
    for t in range(S):                                          # fully unrolled
        r = t * B
        gates = (x_proj[r:r + B, :]
                 + jnp.dot(h, whh, preferred_element_type=jnp.float32))
        i_g = jax.nn.sigmoid(gates[:, 0:H])
        f_g = jax.nn.sigmoid(gates[:, H:2 * H])
        g_g = jnp.tanh(gates[:, 2 * H:3 * H])
        o_g = jax.nn.sigmoid(gates[:, 3 * H:4 * H])
        c = f_g * c + i_g * g_g
        h = o_g * jnp.tanh(c)
        out_ref[r:r + B, :] = h


# ---------------------------------------------------------------------------
# Kernel A: fused encoder + prior (grid=(2,) over {mean, logvar})
#   encoder: LSTM0 (Din=H0) -> Linear (H0 -> hidden) -> stacked LSTM (-> noise)
#   prior  : Linear -> L x (Linear + LeakyReLU) -> Linear
# ---------------------------------------------------------------------------
def _encoder_prior_kernel(*args, L, B, S):
    x_ref, fd_ref = args[0], args[1]
    idx = 2
    wih0_ref, whh0_ref, b0_ref = args[idx:idx + 3]; idx += 3
    wlin_ref, blin_ref = args[idx:idx + 2]; idx += 2
    lstm2 = [args[idx + 3 * i: idx + 3 * i + 3] for i in range(L)]; idx += 3 * L
    pw0_ref, pb0_ref = args[idx:idx + 2]; idx += 2
    pmid = [args[idx + 2 * i: idx + 2 * i + 2] for i in range(L)]; idx += 2 * L
    pwl_ref, pbl_ref = args[idx:idx + 2]; idx += 2
    enc_ref, prior_ref = args[idx], args[idx + 1]; idx += 2
    seq0_ref, seqh_ref = args[idx], args[idx + 1]

    # ---- encoder branch ----
    _lstm_recurrence(_in_proj(x_ref[...], wih0_ref, b0_ref), whh0_ref,
                     seq0_ref, B=B, S=S)
    seqh_ref[...] = _in_proj(seq0_ref[...], wlin_ref, blin_ref)
    src = seqh_ref[...]
    for li in range(L):
        wih_ref, whh_ref, b_ref = lstm2[li]
        _lstm_recurrence(_in_proj(src, wih_ref, b_ref), whh_ref,
                         enc_ref, B=B, S=S)
        if li + 1 < L:
            src = enc_ref[...]

    # ---- prior branch (MLP) ----
    h = _in_proj(fd_ref[...], pw0_ref, pb0_ref)
    for (w_ref, b_ref) in pmid:
        h = _in_proj(h, w_ref, b_ref)
        h = jnp.where(h >= 0.0, h, 0.01 * h)            # torch LeakyReLU default
    prior_ref[...] = _in_proj(h, pwl_ref, pbl_ref)


def encoder_prior_fused(x2d, fd2d, enc_p, prior_p, L, B, S):
    N, D0 = x2d.shape
    din_fd = fd2d.shape[1]
    hidden = enc_p["wlin"].shape[-1]
    noise = enc_p["lstm2"][0][1].shape[1]

    operands = [x2d, fd2d,
                enc_p["wih0"], enc_p["whh0"], enc_p["b0"],
                enc_p["wlin"], enc_p["blin"]]
    for (wih, whh, b) in enc_p["lstm2"]:
        operands += [wih, whh, b]
    operands += [prior_p["w0"], prior_p["b0"]]
    for (w, b) in prior_p["mid"]:
        operands += [w, b]
    operands += [prior_p["wl"], prior_p["bl"]]

    in_specs = [pl.BlockSpec((N, D0), lambda br: (0, 0)),
                pl.BlockSpec((N, din_fd), lambda br: (0, 0))]
    for op in operands[2:]:
        in_specs.append(pl.BlockSpec((None,) + op.shape[1:], lambda br: (br, 0, 0)))

    grid_spec = pltpu.PrefetchScalarGridSpec(
        num_scalar_prefetch=0,
        grid=(2,),
        in_specs=in_specs,
        out_specs=(pl.BlockSpec((None, N, noise), lambda br: (br, 0, 0)),
                   pl.BlockSpec((None, N, noise), lambda br: (br, 0, 0))),
        scratch_shapes=[pltpu.VMEM((N, D0), jnp.float32),
                        pltpu.VMEM((N, hidden), jnp.float32)])

    return pl.pallas_call(
        functools.partial(_encoder_prior_kernel, L=L, B=B, S=S),
        out_shape=(jax.ShapeDtypeStruct((2, N, noise), jnp.float32),
                   jax.ShapeDtypeStruct((2, N, noise), jnp.float32)),
        grid_spec=grid_spec,
        compiler_params=PARALLEL_BRANCH,
    )(*operands)


# ---------------------------------------------------------------------------
# Kernel B: latent reparametrization + stacked decoder LSTM
#           (grid=(2,) over {mean, logvar} decoder branches)
#   z = enc_mu + eps * exp(0.5 * enc_logvar)  (recomputed per branch, cheap)
#   decoder input concat(z, first_day) is realized via split-weight matmuls.
# ---------------------------------------------------------------------------
def _latent_decoder_kernel(*args, L, B, S, noise):
    enc_ref, eps_ref, fd_ref = args[0], args[1], args[2]
    idx = 3
    layers = [args[idx + 3 * i: idx + 3 * i + 3] for i in range(L)]; idx += 3 * L
    out_ref = args[idx]

    mu = enc_ref[0]
    lv = enc_ref[1]
    z = mu + eps_ref[...] * jnp.exp(0.5 * lv)
    fd = fd_ref[...]

    # layer 0: split W_ih into the z-rows and the first_day-rows — avoids an
    # in-kernel lane concatenation of (z, first_day).
    wih0_ref, whh0_ref, b0_ref = layers[0]
    dfd = wih0_ref.shape[0] - noise
    x_proj = (jnp.dot(z, wih0_ref[0:noise, :], preferred_element_type=jnp.float32)
              + jnp.dot(fd, wih0_ref[noise:noise + dfd, :],
                        preferred_element_type=jnp.float32)
              + b0_ref[...])
    _lstm_recurrence(x_proj, whh0_ref, out_ref, B=B, S=S)

    for li in range(1, L):
        wih_ref, whh_ref, b_ref = layers[li]
        _lstm_recurrence(_in_proj(out_ref[...], wih_ref, b_ref), whh_ref,
                         out_ref, B=B, S=S)


def latent_decoder_fused(enc_out, eps, fd2d, lstm_params, L, B, S, noise):
    N = eps.shape[0]
    hidden = lstm_params[0][1].shape[1]
    din_fd = fd2d.shape[1]

    operands = [enc_out, eps, fd2d]
    for (wih, whh, b) in lstm_params:
        operands += [wih, whh, b]

    in_specs = [pl.BlockSpec((2, N, noise), lambda br: (0, 0, 0)),
                pl.BlockSpec((N, noise), lambda br: (0, 0)),
                pl.BlockSpec((N, din_fd), lambda br: (0, 0))]
    for op in operands[3:]:
        in_specs.append(pl.BlockSpec((None,) + op.shape[1:], lambda br: (br, 0, 0)))

    grid_spec = pltpu.PrefetchScalarGridSpec(
        num_scalar_prefetch=0,
        grid=(2,),
        in_specs=in_specs,
        out_specs=pl.BlockSpec((None, N, hidden), lambda br: (br, 0, 0)))

    return pl.pallas_call(
        functools.partial(_latent_decoder_kernel, L=L, B=B, S=S, noise=noise),
        out_shape=jax.ShapeDtypeStruct((2, N, hidden), jnp.float32),
        grid_spec=grid_spec,
        compiler_params=PARALLEL_BRANCH,
    )(*operands)


# ---------------------------------------------------------------------------
# Kernel C: decoder head + both scalar losses
#   mu/logvar linears + reparametrize + reconstruction loss + KL divergence.
#   recon = mean_B( 0.5*sum(((mu-real)/std)^2) + 0.5*sum(lv) ), std=exp(0.5*lv)
#   KL    = mean_B( sum( -0.5*lv_e + (exp(lv_e) + (mu_e - prior_mu)^2)/2 - 0.5 ) )
#   (prior log-variance is unused by the reference formula.)
# ---------------------------------------------------------------------------
def _decoder_head_kernel(h_ref, w_ref, b_ref, real_ref, eps_ref,
                         enc_ref, prior_ref, xo_ref, kl_ref, loss_ref, *, B):
    mu = jnp.dot(h_ref[0], w_ref[0], preferred_element_type=jnp.float32) + b_ref[0]
    lv = jnp.dot(h_ref[1], w_ref[1], preferred_element_type=jnp.float32) + b_ref[1]
    std = jnp.exp(0.5 * lv)
    xo_ref[...] = mu + eps_ref[...] * std
    d = (mu - real_ref[...]) / std
    loss_ref[0, 0] = (0.5 * jnp.sum(d * d) + 0.5 * jnp.sum(lv)) / B

    emu = enc_ref[0]
    elv = enc_ref[1]
    diff = emu - prior_ref[0]
    term = -0.5 * elv + (jnp.exp(elv) + diff * diff) * 0.5 - 0.5
    kl_ref[0, 0] = jnp.sum(term) / B


def decoder_head(dec_h, wlin, blin, real2d, eps2d, enc_out, prior_out, B):
    N, out_dim = real2d.shape
    xo, kl, loss = pl.pallas_call(
        functools.partial(_decoder_head_kernel, B=B),
        out_shape=(jax.ShapeDtypeStruct((N, out_dim), jnp.float32),
                   jax.ShapeDtypeStruct((1, 1), jnp.float32),
                   jax.ShapeDtypeStruct((1, 1), jnp.float32)),
        in_specs=[VMEM_SPEC] * 7,
        out_specs=(VMEM_SPEC, SMEM_SPEC, SMEM_SPEC),
    )(dec_h, wlin, blin, real2d, eps2d, enc_out, prior_out)
    return xo, kl[0, 0], loss[0, 0]


# ---------------------------------------------------------------------------
# Deterministic parameter initialization (shapes follow the PyTorch module;
# branch 0 = mean path, branch 1 = logvar path, stacked on a leading axis).
# ---------------------------------------------------------------------------
def _uniform(key, shape, scale):
    return jax.random.uniform(key, shape, jnp.float32, -scale, scale)


def _init_lstm_branch(key, din, h):
    k1, k2, k3 = jax.random.split(key, 3)
    s = 1.0 / math.sqrt(h)
    # weight_ih^T, weight_hh^T, (b_ih + b_hh) combined
    return (_uniform(k1, (din, 4 * h), s),
            _uniform(k2, (h, 4 * h), s),
            _uniform(k3, (1, 4 * h), s))


def _init_linear_branch(key, din, dout):
    k1, k2 = jax.random.split(key)
    s = 1.0 / math.sqrt(din)
    return (_uniform(k1, (din, dout), s), _uniform(k2, (1, dout), s))


def _stack2(p_mean, p_logvar):
    return tuple(jnp.stack([a, b], axis=0) for a, b in zip(p_mean, p_logvar))


def init_params(key, input_dim, hidden_dim, noise_dim, output_dim,
                encoder_layer, decoder_layer):
    keys = iter(jax.random.split(key, 128))
    D0 = 2 * input_dim

    # ---- encoder ----
    lstm0 = _stack2(_init_lstm_branch(next(keys), D0, D0),
                    _init_lstm_branch(next(keys), D0, D0))
    lin = _stack2(_init_linear_branch(next(keys), D0, hidden_dim),
                  _init_linear_branch(next(keys), D0, hidden_dim))
    lstm2 = []
    for li in range(encoder_layer):
        din = hidden_dim if li == 0 else noise_dim
        lstm2.append(_stack2(_init_lstm_branch(next(keys), din, noise_dim),
                             _init_lstm_branch(next(keys), din, noise_dim)))
    encoder = {"wih0": lstm0[0], "whh0": lstm0[1], "b0": lstm0[2],
               "wlin": lin[0], "blin": lin[1], "lstm2": lstm2}

    # ---- prior ----
    l0 = _stack2(_init_linear_branch(next(keys), input_dim, hidden_dim),
                 _init_linear_branch(next(keys), input_dim, hidden_dim))
    mid = [_stack2(_init_linear_branch(next(keys), hidden_dim, hidden_dim),
                   _init_linear_branch(next(keys), hidden_dim, hidden_dim))
           for _ in range(encoder_layer)]
    ll = _stack2(_init_linear_branch(next(keys), hidden_dim, noise_dim),
                 _init_linear_branch(next(keys), hidden_dim, noise_dim))
    prior = {"w0": l0[0], "b0": l0[1], "mid": mid, "wl": ll[0], "bl": ll[1]}

    # ---- decoder ----
    dlstm = []
    for li in range(decoder_layer):
        din = noise_dim + input_dim if li == 0 else hidden_dim
        dlstm.append(_stack2(_init_lstm_branch(next(keys), din, hidden_dim),
                             _init_lstm_branch(next(keys), din, hidden_dim)))
    dlin = _stack2(_init_linear_branch(next(keys), hidden_dim, output_dim),
                   _init_linear_branch(next(keys), hidden_dim, output_dim))
    decoder = {"lstm": dlstm, "wlin": dlin[0], "blin": dlin[1]}

    return {"encoder": encoder, "prior": prior, "decoder": decoder}


# ---------------------------------------------------------------------------
# CDTVAE forward (mirrors the PyTorch CDTVAE.forward)
# ---------------------------------------------------------------------------
def cdtvae_forward(params, x, real, first_day, key):
    B, S, _ = x.shape
    N = B * S
    L_enc = len(params["encoder"]["lstm2"])
    L_dec = len(params["decoder"]["lstm"])
    noise_dim = params["prior"]["wl"].shape[-1]
    output_dim = params["decoder"]["wlin"].shape[-1]

    def tm2d(a):  # (B, S, D) -> time-major flattened (S*B, D)
        return jnp.transpose(a, (1, 0, 2)).reshape(N, a.shape[-1])

    x2d, fd2d, real2d = tm2d(x), tm2d(first_day), tm2d(real)

    # ---- Kernel A: encoder + prior (mean/logvar fused across the grid) ----
    enc_out, prior_out = encoder_prior_fused(
        x2d, fd2d, params["encoder"], params["prior"], L_enc, B, S)
    # prior_z (= prior_mu + eps) is computed in the reference but never used
    # by CDTVAE.forward outputs, so it is skipped here.

    k1, k2 = jax.random.split(key)
    eps1 = jax.random.normal(k1, (N, noise_dim), jnp.float32)
    eps2 = jax.random.normal(k2, (N, output_dim), jnp.float32)

    # ---- Kernel B: reparametrize z + stacked decoder LSTM ----
    dec_h = latent_decoder_fused(enc_out, eps1, fd2d, params["decoder"]["lstm"],
                                 L_dec, B, S, noise_dim)

    # ---- Kernel C: decoder head (+ KL and reconstruction losses) ----
    repar2d, kl_div, recon = decoder_head(
        dec_h, params["decoder"]["wlin"], params["decoder"]["blin"],
        real2d, eps2, enc_out, prior_out, B)

    repar_x = jnp.transpose(repar2d.reshape(S, B, output_dim), (1, 0, 2))
    return kl_div, repar_x, recon


# ---------------------------------------------------------------------------
if __name__ == "__main__":
    B, S = 2, 8
    input_dim, hidden_dim, noise_dim, output_dim = 4, 32, 8, 4
    encoder_layer, decoder_layer = 1, 1

    key = jax.random.PRNGKey(0)
    kx, kr, kf, kp, keps = jax.random.split(key, 5)

    # x is the concatenated encoder input (last dim = input_dim + input_dim)
    x = jax.random.normal(kx, (B, S, 2 * input_dim), jnp.float32)
    real = jax.random.normal(kr, (B, S, output_dim), jnp.float32)
    first_day = jax.random.normal(kf, (B, S, input_dim), jnp.float32)

    params = init_params(kp, input_dim, hidden_dim, noise_dim, output_dim,
                         encoder_layer, decoder_layer)

    fwd = jax.jit(cdtvae_forward)
    kl_div, repar_x, recon = fwd(params, x, real, first_day, keps)
    jax.block_until_ready((kl_div, repar_x, recon))

    assert repar_x.shape == (B, S, output_dim)
    assert kl_div.shape == () and recon.shape == ()
    print("KERNEL_OK")
</pallas_src>

<mosaic_0001>
module attributes {stable_mosaic.version = 11 : i64} {
  func.func @_decoder_head_kernel(%arg0: memref<2x16x32xf32, #tpu.memory_space<vmem>>, %arg1: memref<2x32x4xf32, #tpu.memory_space<vmem>>, %arg2: memref<2x1x4xf32, #tpu.memory_space<vmem>>, %arg3: memref<16x4xf32, #tpu.memory_space<vmem>>, %arg4: memref<16x4xf32, #tpu.memory_space<vmem>>, %arg5: memref<2x16x8xf32, #tpu.memory_space<vmem>>, %arg6: memref<2x16x8xf32, #tpu.memory_space<vmem>>, %arg7: memref<16x4xf32, #tpu.memory_space<vmem>>, %arg8: memref<1x1xf32, #tpu.memory_space<smem>>, %arg9: memref<1x1xf32, #tpu.memory_space<smem>>) attributes {dimension_semantics = [], scalar_prefetch = 0 : i64, scratch_operands = 0 : i64, tpu.core_type = #tpu.core_type<tc>} {
    %c0 = arith.constant 0 : index
    %c0_0 = arith.constant 0 : index
    %c0_1 = arith.constant 0 : index
    %0 = vector.load %arg0[%c0, %c0_0, %c0_1] : memref<2x16x32xf32, #tpu.memory_space<vmem>>, vector<1x16x32xf32>
    %1 = vector.shape_cast %0 : vector<1x16x32xf32> to vector<16x32xf32>
    %c0_2 = arith.constant 0 : index
    %c0_3 = arith.constant 0 : index
    %c0_4 = arith.constant 0 : index
    %2 = vector.load %arg1[%c0_2, %c0_3, %c0_4] : memref<2x32x4xf32, #tpu.memory_space<vmem>>, vector<1x32x4xf32>
    %3 = vector.shape_cast %2 : vector<1x32x4xf32> to vector<32x4xf32>
    %cst = arith.constant dense<0.000000e+00> : vector<16x4xf32>
    %4 = tpu.matmul %1, %3, %cst {dimension_numbers = #tpu.dot_dimension_numbers<[1], [0], [0], [1], [0, 0, 1, 1], [], []>} : vector<16x32xf32>, vector<32x4xf32>, vector<16x4xf32> -> vector<16x4xf32>
    %c0_5 = arith.constant 0 : index
    %c0_6 = arith.constant 0 : index
    %c0_7 = arith.constant 0 : index
    %5 = vector.load %arg2[%c0_5, %c0_6, %c0_7] : memref<2x1x4xf32, #tpu.memory_space<vmem>>, vector<1x1x4xf32>
    %6 = vector.shape_cast %5 : vector<1x1x4xf32> to vector<1x4xf32>
    %7 = vector.broadcast %6 : vector<1x4xf32> to vector<16x4xf32>
    %8 = arith.addf %4, %7 : vector<16x4xf32>
    %c1 = arith.constant 1 : index
    %c0_8 = arith.constant 0 : index
    %c0_9 = arith.constant 0 : index
    %9 = vector.load %arg0[%c1, %c0_8, %c0_9] : memref<2x16x32xf32, #tpu.memory_space<vmem>>, vector<1x16x32xf32>
    %10 = vector.shape_cast %9 : vector<1x16x32xf32> to vector<16x32xf32>
    %c1_10 = arith.constant 1 : index
    %c0_11 = arith.constant 0 : index
    %c0_12 = arith.constant 0 : index
    %11 = vector.load %arg1[%c1_10, %c0_11, %c0_12] : memref<2x32x4xf32, #tpu.memory_space<vmem>>, vector<1x32x4xf32>
    %12 = vector.shape_cast %11 : vector<1x32x4xf32> to vector<32x4xf32>
    %cst_13 = arith.constant dense<0.000000e+00> : vector<16x4xf32>
    %13 = tpu.matmul %10, %12, %cst_13 {dimension_numbers = #tpu.dot_dimension_numbers<[1], [0], [0], [1], [0, 0, 1, 1], [], []>} : vector<16x32xf32>, vector<32x4xf32>, vector<16x4xf32> -> vector<16x4xf32>
    %c1_14 = arith.constant 1 : index
    %c0_15 = arith.constant 0 : index
    %c0_16 = arith.constant 0 : index
    %14 = vector.load %arg2[%c1_14, %c0_15, %c0_16] : memref<2x1x4xf32, #tpu.memory_space<vmem>>, vector<1x1x4xf32>
    %15 = vector.shape_cast %14 : vector<1x1x4xf32> to vector<1x4xf32>
    %16 = vector.broadcast %15 : vector<1x4xf32> to vector<16x4xf32>
    %17 = arith.addf %13, %16 : vector<16x4xf32>
    %cst_17 = arith.constant 5.000000e-01 : f32
    %18 = vector.broadcast %cst_17 : f32 to vector<16x4xf32>
    %19 = arith.mulf %18, %17 : vector<16x4xf32>
    %20 = math.exp %19 : vector<16x4xf32>
    %c0_18 = arith.constant 0 : index
    %c0_19 = arith.constant 0 : index
    %21 = vector.load %arg4[%c0_18, %c0_19] : memref<16x4xf32, #tpu.memory_space<vmem>>, vector<16x4xf32>
    %22 = arith.mulf %21, %20 : vector<16x4xf32>
    %23 = arith.addf %8, %22 : vector<16x4xf32>
    %c0_20 = arith.constant 0 : index
    %c0_21 = arith.constant 0 : index
    %24 = vector.load %arg7[%c0_20, %c0_21] : memref<16x4xf32, #tpu.memory_space<vmem>>, vector<16x4xf32>
    tpu.vector_store %arg7[%c0_20, %c0_21], %23 {strides = array<i32>} : memref<16x4xf32, #tpu.memory_space<vmem>>, vector<16x4xf32>,
    %c0_22 = arith.constant 0 : index
    %c0_23 = arith.constant 0 : index
    %25 = vector.load %arg3[%c0_22, %c0_23] : memref<16x4xf32, #tpu.memory_space<vmem>>, vector<16x4xf32>
    %26 = arith.subf %8, %25 : vector<16x4xf32>
    %27 = arith.divf %26, %20 : vector<16x4xf32>
    %28 = arith.mulf %27, %27 : vector<16x4xf32>
    %29 = vector.shape_cast %28 : vector<16x4xf32> to vector<1x16x4xf32>
    %cst_24 = arith.constant dense<0.000000e+00> : vector<1xf32>
    %30 = vector.multi_reduction <add>, %29, %cst_24 [1, 2] : vector<1x16x4xf32> to vector<1xf32>
    %31 = vector.shape_cast %30 : vector<1xf32> to vector<1x1x1xf32>
    %32 = vector.extract %31[0, 0, 0] : f32 from vector<1x1x1xf32>
    %cst_25 = arith.constant 5.000000e-01 : f32
    %33 = arith.mulf %cst_25, %32 : f32
    %34 = vector.shape_cast %17 : vector<16x4xf32> to vector<1x16x4xf32>
    %cst_26 = arith.constant dense<0.000000e+00> : vector<1xf32>
    %35 = vector.multi_reduction <add>, %34, %cst_26 [1, 2] : vector<1x16x4xf32> to vector<1xf32>
    %36 = vector.shape_cast %35 : vector<1xf32> to vector<1x1x1xf32>
    %37 = vector.extract %36[0, 0, 0] : f32 from vector<1x1x1xf32>
    %cst_27 = arith.constant 5.000000e-01 : f32
    %38 = arith.mulf %cst_27, %37 : f32
    %39 = arith.addf %33, %38 : f32
    %cst_28 = arith.constant 2.000000e+00 : f32
    %40 = arith.divf %39, %cst_28 : f32
    %c0_29 = arith.constant 0 : index
    %c0_30 = arith.constant 0 : index
    %41 = memref.load %arg9[%c0_29, %c0_30] : memref<1x1xf32, #tpu.memory_space<smem>>
    memref.store %40, %arg9[%c0_29, %c0_30] : memref<1x1xf32, #tpu.memory_space<smem>>
    %c0_31 = arith.constant 0 : index
    %c0_32 = arith.constant 0 : index
    %c0_33 = arith.constant 0 : index
    %42 = vector.load %arg5[%c0_31, %c0_32, %c0_33] : memref<2x16x8xf32, #tpu.memory_space<vmem>>, vector<1x16x8xf32>
    %43 = vector.shape_cast %42 : vector<1x16x8xf32> to vector<16x8xf32>
    %c1_34 = arith.constant 1 : index
    %c0_35 = arith.constant 0 : index
    %c0_36 = arith.constant 0 : index
    %44 = vector.load %arg5[%c1_34, %c0_35, %c0_36] : memref<2x16x8xf32, #tpu.memory_space<vmem>>, vector<1x16x8xf32>
    %45 = vector.shape_cast %44 : vector<1x16x8xf32> to vector<16x8xf32>
    %c0_37 = arith.constant 0 : index
    %c0_38 = arith.constant 0 : index
    %c0_39 = arith.constant 0 : index
    %46 = vector.load %arg6[%c0_37, %c0_38, %c0_39] : memref<2x16x8xf32, #tpu.memory_space<vmem>>, vector<1x16x8xf32>
    %47 = vector.shape_cast %46 : vector<1x16x8xf32> to vector<16x8xf32>
    %48 = arith.subf %43, %47 : vector<16x8xf32>
    %cst_40 = arith.constant -5.000000e-01 : f32
    %49 = vector.broadcast %cst_40 : f32 to vector<16x8xf32>
    %50 = arith.mulf %49, %45 : vector<16x8xf32>
    %51 = math.exp %45 : vector<16x8xf32>
    %52 = arith.mulf %48, %48 : vector<16x8xf32>
    %53 = arith.addf %51, %52 : vector<16x8xf32>
    %cst_41 = arith.constant 5.000000e-01 : f32
    %54 = vector.broadcast %cst_41 : f32 to vector<16x8xf32>
    %55 = arith.mulf %53, %54 : vector<16x8xf32>
    %56 = arith.addf %50, %55 : vector<16x8xf32>
    %cst_42 = arith.constant 5.000000e-01 : f32
    %57 = vector.broadcast %cst_42 : f32 to vector<16x8xf32>
    %58 = arith.subf %56, %57 : vector<16x8xf32>
    %59 = vector.shape_cast %58 : vector<16x8xf32> to vector<1x16x8xf32>
    %cst_43 = arith.constant dense<0.000000e+00> : vector<1xf32>
    %60 = vector.multi_reduction <add>, %59, %cst_43 [1, 2] : vector<1x16x8xf32> to vector<1xf32>
    %61 = vector.shape_cast %60 : vector<1xf32> to vector<1x1x1xf32>
    %62 = vector.extract %61[0, 0, 0] : f32 from vector<1x1x1xf32>
    %cst_44 = arith.constant 2.000000e+00 : f32
    %63 = arith.divf %62, %cst_44 : f32
    %c0_45 = arith.constant 0 : index
    %c0_46 = arith.constant 0 : index
    %64 = memref.load %arg8[%c0_45, %c0_46] : memref<1x1xf32, #tpu.memory_space<smem>>
    memref.store %63, %arg8[%c0_45, %c0_46] : memref<1x1xf32, #tpu.memory_space<smem>>
    return
  }
}

module attributes {stable_mosaic.version = 11 : i64} {
  func.func @_latent_decoder_kernel(%arg0: i32, %arg1: memref<2x16x8xf32, #tpu.memory_space<vmem>>, %arg2: memref<16x8xf32, #tpu.memory_space<vmem>>, %arg3: memref<16x4xf32, #tpu.memory_space<vmem>>, %arg4: memref<1x12x128xf32, #tpu.memory_space<vmem>>, %arg5: memref<1x32x128xf32, #tpu.memory_space<vmem>>, %arg6: memref<1x1x128xf32, #tpu.memory_space<vmem>>, %arg7: memref<1x16x32xf32, #tpu.memory_space<vmem>>) attributes {dimension_semantics = [#tpu.dimension_semantics<parallel>], iteration_bounds = array<i64: 2>, scalar_prefetch = 0 : i64, scratch_operands = 0 : i64, tpu.core_type = #tpu.core_type<tc>, window_params = [{pipeline_mode = #tpu.pipeline_mode<synchronous>, transform_indices = @transform_0, window_bounds = array<i64: 2, 16, 8>}, {pipeline_mode = #tpu.pipeline_mode<synchronous>, transform_indices = @transform_1, window_bounds = array<i64: 16, 8>}, {pipeline_mode = #tpu.pipeline_mode<synchronous>, transform_indices = @transform_2, window_bounds = array<i64: 16, 4>}, {transform_indices = @transform_3, window_bounds = array<i64: 1, 12, 128>}, {transform_indices = @transform_4, window_bounds = array<i64: 1, 32, 128>}, {transform_indices = @transform_5, window_bounds = array<i64: 1, 1, 128>}, {transform_indices = @transform_6, window_bounds = array<i64: 1, 16, 32>}]} {
    %c0 = arith.constant 0 : index
    %c0_0 = arith.constant 0 : index
    %c0_1 = arith.constant 0 : index
    %0 = vector.load %arg1[%c0, %c0_0, %c0_1] : memref<2x16x8xf32, #tpu.memory_space<vmem>>, vector<1x16x8xf32>
    %1 = vector.shape_cast %0 : vector<1x16x8xf32> to vector<16x8xf32>
    %c1 = arith.constant 1 : index
    %c0_2 = arith.constant 0 : index
    %c0_3 = arith.constant 0 : index
    %2 = vector.load %arg1[%c1, %c0_2, %c0_3] : memref<2x16x8xf32, #tpu.memory_space<vmem>>, vector<1x16x8xf32>
    %3 = vector.shape_cast %2 : vector<1x16x8xf32> to vector<16x8xf32>
    %c0_4 = arith.constant 0 : index
    %c0_5 = arith.constant 0 : index
    %4 = vector.load %arg2[%c0_4, %c0_5] : memref<16x8xf32, #tpu.memory_space<vmem>>, vector<16x8xf32>
    %cst = arith.constant 5.000000e-01 : f32
    %5 = vector.broadcast %cst : f32 to vector<16x8xf32>
    %6 = arith.mulf %5, %3 : vector<16x8xf32>
    %7 = math.exp %6 : vector<16x8xf32>
    %8 = arith.mulf %4, %7 : vector<16x8xf32>
    %9 = arith.addf %1, %8 : vector<16x8xf32>
    %c0_6 = arith.constant 0 : index
    %c0_7 = arith.constant 0 : index
    %10 = vector.load %arg3[%c0_6, %c0_7] : memref<16x4xf32, #tpu.memory_space<vmem>>, vector<16x4xf32>
    %c0_8 = arith.constant 0 : index
    %c0_9 = arith.constant 0 : index
    %c0_10 = arith.constant 0 : index
    %11 = vector.load %arg4[%c0_8, %c0_9, %c0_10] : memref<1x12x128xf32, #tpu.memory_space<vmem>>, vector<1x8x128xf32>
    %12 = vector.shape_cast %11 : vector<1x8x128xf32> to vector<8x128xf32>
    %cst_11 = arith.constant dense<0.000000e+00> : vector<16x128xf32>
    %13 = tpu.matmul %9, %12, %cst_11 {dimension_numbers = #tpu.dot_dimension_numbers<[1], [0], [0], [1], [0, 0, 1, 1], [], []>} : vector<16x8xf32>, vector<8x128xf32>, vector<16x128xf32> -> vector<16x128xf32>
    %c0_12 = arith.constant 0 : index
    %c8 = arith.constant 8 : index
    %c0_13 = arith.constant 0 : index
    %14 = vector.load %arg4[%c0_12, %c8, %c0_13] : memref<1x12x128xf32, #tpu.memory_space<vmem>>, vector<1x4x128xf32>
    %15 = vector.shape_cast %14 : vector<1x4x128xf32> to vector<4x128xf32>
    %cst_14 = arith.constant dense<0.000000e+00> : vector<16x128xf32>
    %16 = tpu.matmul %10, %15, %cst_14 {dimension_numbers = #tpu.dot_dimension_numbers<[1], [0], [0], [1], [0, 0, 1, 1], [], []>} : vector<16x4xf32>, vector<4x128xf32>, vector<16x128xf32> -> vector<16x128xf32>
    %17 = arith.addf %13, %16 : vector<16x128xf32>
    %c0_15 = arith.constant 0 : index
    %c0_16 = arith.constant 0 : index
    %c0_17 = arith.constant 0 : index
    %18 = vector.load %arg6[%c0_15, %c0_16, %c0_17] : memref<1x1x128xf32, #tpu.memory_space<vmem>>, vector<1x1x128xf32>
    %19 = vector.shape_cast %18 : vector<1x1x128xf32> to vector<1x128xf32>
    %20 = vector.broadcast %19 : vector<1x128xf32> to vector<16x128xf32>
    %21 = arith.addf %17, %20 : vector<16x128xf32>
    %c0_18 = arith.constant 0 : index
    %c0_19 = arith.constant 0 : index
    %c0_20 = arith.constant 0 : index
    %22 = vector.load %arg5[%c0_18, %c0_19, %c0_20] : memref<1x32x128xf32, #tpu.memory_space<vmem>>, vector<1x32x128xf32>
    %23 = vector.shape_cast %22 : vector<1x32x128xf32> to vector<32x128xf32>
    %cst_21 = arith.constant 0.000000e+00 : f32
    %24 = vector.broadcast %cst_21 : f32 to vector<2x32xf32>
    %cst_22 = arith.constant 0.000000e+00 : f32
    %25 = vector.broadcast %cst_22 : f32 to vector<2x32xf32>
    %26 = vector.extract_strided_slice %21 {offsets = [0, 0], sizes = [2, 128], strides = [1, 1]} : vector<16x128xf32> to vector<2x128xf32>
    %cst_23 = arith.constant dense<0.000000e+00> : vector<2x128xf32>
    %27 = tpu.matmul %24, %23, %cst_23 {dimension_numbers = #tpu.dot_dimension_numbers<[1], [0], [0], [1], [0, 0, 1, 1], [], []>} : vector<2x32xf32>, vector<32x128xf32>, vector<2x128xf32> -> vector<2x128xf32>
    %28 = arith.addf %26, %27 : vector<2x128xf32>
    %29 = vector.extract_strided_slice %28 {offsets = [0, 0], sizes = [2, 32], strides = [1, 1]} : vector<2x128xf32> to vector<2x32xf32>
    %30 = arith.negf %29 : vector<2x32xf32>
    %31 = math.exp %30 : vector<2x32xf32>
    %cst_24 = arith.constant 1.000000e+00 : f32
    %32 = vector.broadcast %cst_24 : f32 to vector<2x32xf32>
    %33 = arith.addf %32, %31 : vector<2x32xf32>
    %34 = arith.divf %32, %33 : vector<2x32xf32>
    %35 = vector.extract_strided_slice %28 {offsets = [0, 32], sizes = [2, 32], strides = [1, 1]} : vector<2x128xf32> to vector<2x32xf32>
    %36 = arith.negf %35 : vector<2x32xf32>
    %37 = math.exp %36 : vector<2x32xf32>
    %cst_25 = arith.constant 1.000000e+00 : f32
    %38 = vector.broadcast %cst_25 : f32 to vector<2x32xf32>
    %39 = arith.addf %38, %37 : vector<2x32xf32>
    %40 = arith.divf %38, %39 : vector<2x32xf32>
    %41 = vector.extract_strided_slice %28 {offsets = [0, 64], sizes = [2, 32], strides = [1, 1]} : vector<2x128xf32> to vector<2x32xf32>
    %42 = math.tanh %41 : vector<2x32xf32>
    %43 = vector.extract_strided_slice %28 {offsets = [0, 96], sizes = [2, 32], strides = [1, 1]} : vector<2x128xf32> to vector<2x32xf32>
    %44 = arith.negf %43 : vector<2x32xf32>
    %45 = math.exp %44 : vector<2x32xf32>
    %cst_26 = arith.constant 1.000000e+00 : f32
    %46 = vector.broadcast %cst_26 : f32 to vector<2x32xf32>
    %47 = arith.addf %46, %45 : vector<2x32xf32>
    %48 = arith.divf %46, %47 : vector<2x32xf32>
    %49 = arith.mulf %40, %25 : vector<2x32xf32>
    %50 = arith.mulf %34, %42 : vector<2x32xf32>
    %51 = arith.addf %49, %50 : vector<2x32xf32>
    %52 = math.tanh %51 : vector<2x32xf32>
    %53 = arith.mulf %48, %52 : vector<2x32xf32>
    %c0_27 = arith.constant 0 : index
    %c0_28 = arith.constant 0 : index
    %c0_29 = arith.constant 0 : index
    %54 = vector.load %arg7[%c0_27, %c0_28, %c0_29] : memref<1x16x32xf32, #tpu.memory_space<vmem>>, vector<1x2x32xf32>
    %55 = vector.shape_cast %54 : vector<1x2x32xf32> to vector<2x32xf32>
    %56 = vector.shape_cast %53 : vector<2x32xf32> to vector<1x2x32xf32>
    tpu.vector_store %arg7[%c0_27, %c0_28, %c0_29], %56 {strides = array<i32>} : memref<1x16x32xf32, #tpu.memory_space<vmem>>, vector<1x2x32xf32>,
    %57 = vector.extract_strided_slice %21 {offsets = [2, 0], sizes = [2, 128], strides = [1, 1]} : vector<16x128xf32> to vector<2x128xf32>
    %cst_30 = arith.constant dense<0.000000e+00> : vector<2x128xf32>
    %58 = tpu.matmul %53, %23, %cst_30 {dimension_numbers = #tpu.dot_dimension_numbers<[1], [0], [0], [1], [0, 0, 1, 1], [], []>} : vector<2x32xf32>, vector<32x128xf32>, vector<2x128xf32> -> vector<2x128xf32>
    %59 = arith.addf %57, %58 : vector<2x128xf32>
    %60 = vector.extract_strided_slice %59 {offsets = [0, 0], sizes = [2, 32], strides = [1, 1]} : vector<2x128xf32> to vector<2x32xf32>
    %61 = arith.negf %60 : vector<2x32xf32>
    %62 = math.exp %61 : vector<2x32xf32>
    %cst_31 = arith.constant 1.000000e+00 : f32
    %63 = vector.broadcast %cst_31 : f32 to vector<2x32xf32>
    %64 = arith.addf %63, %62 : vector<2x32xf32>
    %65 = arith.divf %63, %64 : vector<2x32xf32>
    %66 = vector.extract_strided_slice %59 {offsets = [0, 32], sizes = [2, 32], strides = [1, 1]} : vector<2x128xf32> to vector<2x32xf32>
    %67 = arith.negf %66 : vector<2x32xf32>
    %68 = math.exp %67 : vector<2x32xf32>
    %cst_32 = arith.constant 1.000000e+00 : f32
    %69 = vector.broadcast %cst_32 : f32 to vector<2x32xf32>
    %70 = arith.addf %69, %68 : vector<2x32xf32>
    %71 = arith.divf %69, %70 : vector<2x32xf32>
    %72 = vector.extract_strided_slice %59 {offsets = [0, 64], sizes = [2, 32], strides = [1, 1]} : vector<2x128xf32> to vector<2x32xf32>
    %73 = math.tanh %72 : vector<2x32xf32>
    %74 = vector.extract_strided_slice %59 {offsets = [0, 96], sizes = [2, 32], strides = [1, 1]} : vector<2x128xf32> to vector<2x32xf32>
    %75 = arith.negf %74 : vector<2x32xf32>
    %76 = math.exp %75 : vector<2x32xf32>
    %cst_33 = arith.constant 1.000000e+00 : f32
    %77 = vector.broadcast %cst_33 : f32 to vector<2x32xf32>
    %78 = arith.addf %77, %76 : vector<2x32xf32>
    %79 = arith.divf %77, %78 : vector<2x32xf32>
    %80 = arith.mulf %71, %51 : vector<2x32xf32>
    %81 = arith.mulf %65, %73 : vector<2x32xf32>
    %82 = arith.addf %80, %81 : vector<2x32xf32>
    %83 = math.tanh %82 : vector<2x32xf32>
    %84 = arith.mulf %79, %83 : vector<2x32xf32>
    %c0_34 = arith.constant 0 : index
    %c2 = arith.constant 2 : index
    %c0_35 = arith.constant 0 : index
    %85 = vector.load %arg7[%c0_34, %c2, %c0_35] : memref<1x16x32xf32, #tpu.memory_space<vmem>>, vector<1x2x32xf32>
    %86 = vector.shape_cast %85 : vector<1x2x32xf32> to vector<2x32xf32>
    %87 = vector.shape_cast %84 : vector<2x32xf32> to vector<1x2x32xf32>
    tpu.vector_store %arg7[%c0_34, %c2, %c0_35], %87 {strides = array<i32>} : memref<1x16x32xf32, #tpu.memory_space<vmem>>, vector<1x2x32xf32>,
    %88 = vector.extract_strided_slice %21 {offsets = [4, 0], sizes = [2, 128], strides = [1, 1]} : vector<16x128xf32> to vector<2x128xf32>
    %cst_36 = arith.constant dense<0.000000e+00> : vector<2x128xf32>
    %89 = tpu.matmul %84, %23, %cst_36 {dimension_numbers = #tpu.dot_dimension_numbers<[1], [0], [0], [1], [0, 0, 1, 1], [], []>} : vector<2x32xf32>, vector<32x128xf32>, vector<2x128xf32> -> vector<2x128xf32>
    %90 = arith.addf %88, %89 : vector<2x128xf32>
    %91 = vector.extract_strided_slice %90 {offsets = [0, 0], sizes = [2, 32], strides = [1, 1]} : vector<2x128xf32> to vector<2x32xf32>
    %92 = arith.negf %91 : vector<2x32xf32>
    %93 = math.exp %92 : vector<2x32xf32>
    %cst_37 = arith.constant 1.000000e+00 : f32
    %94 = vector.broadcast %cst_37 : f32 to vector<2x32xf32>
    %95 = arith.addf %94, %93 : vector<2x32xf32>
    %96 = arith.divf %94, %95 : vector<2x32xf32>
    %97 = vector.extract_strided_slice %90 {offsets = [0, 32], sizes = [2, 32], strides = [1, 1]} : vector<2x128xf32> to vector<2x32xf32>
    %98 = arith.negf %97 : vector<2x32xf32>
    %99 = math.exp %98 : vector<2x32xf32>
    %cst_38 = arith.constant 1.000000e+00 : f32
    %100 = vector.broadcast %cst_38 : f32 to vector<2x32xf32>
    %101 = arith.addf %100, %99 : vector<2x32xf32>
    %102 = arith.divf %100, %101 : vector<2x32xf32>
    %103 = vector.extract_strided_slice %90 {offsets = [0, 64], sizes = [2, 32], strides = [1, 1]} : vector<2x128xf32> to vector<2x32xf32>
    %104 = math.tanh %103 : vector<2x32xf32>
    %105 = vector.extract_strided_slice %90 {offsets = [0, 96], sizes = [2, 32], strides = [1, 1]} : vector<2x128xf32> to vector<2x32xf32>
    %106 = arith.negf %105 : vector<2x32xf32>
    %107 = math.exp %106 : vector<2x32xf32>
    %cst_39 = arith.constant 1.000000e+00 : f32
    %108 = vector.broadcast %cst_39 : f32 to vector<2x32xf32>
    %109 = arith.addf %108, %107 : vector<2x32xf32>
    %110 = arith.divf %108, %109 : vector<2x32xf32>
    %111 = arith.mulf %102, %82 : vector<2x32xf32>
    %112 = arith.mulf %96, %104 : vector<2x32xf32>
    %113 = arith.addf %111, %112 : vector<2x32xf32>
    %114 = math.tanh %113 : vector<2x32xf32>
    %115 = arith.mulf %110, %114 : vector<2x32xf32>
    %c0_40 = arith.constant 0 : index
    %c4 = arith.constant 4 : index
    %c0_41 = arith.constant 0 : index
    %116 = vector.load %arg7[%c0_40, %c4, %c0_41] : memref<1x16x32xf32, #tpu.memory_space<vmem>>, vector<1x2x32xf32>
    %117 = vector.shape_cast %116 : vector<1x2x32xf32> to vector<2x32xf32>
    %118 = vector.shape_cast %115 : vector<2x32xf32> to vector<1x2x32xf32>
    tpu.vector_store %arg7[%c0_40, %c4, %c0_41], %118 {strides = array<i32>} : memref<1x16x32xf32, #tpu.memory_space<vmem>>, vector<1x2x32xf32>,
    %119 = vector.extract_strided_slice %21 {offsets = [6, 0], sizes = [2, 128], strides = [1, 1]} : vector<16x128xf32> to vector<2x128xf32>
    %cst_42 = arith.constant dense<0.000000e+00> : vector<2x128xf32>
    %120 = tpu.matmul %115, %23, %cst_42 {dimension_numbers = #tpu.dot_dimension_numbers<[1], [0], [0], [1], [0, 0, 1, 1], [], []>} : vector<2x32xf32>, vector<32x128xf32>, vector<2x128xf32> -> vector<2x128xf32>
    %121 = arith.addf %119, %120 : vector<2x128xf32>
    %122 = vector.extract_strided_slice %121 {offsets = [0, 0], sizes = [2, 32], strides = [1, 1]} : vector<2x128xf32> to vector<2x32xf32>
    %123 = arith.negf %122 : vector<2x32xf32>
    %124 = math.exp %123 : vector<2x32xf32>
    %cst_43 = arith.constant 1.000000e+00 : f32
    %125 = vector.broadcast %cst_43 : f32 to vector<2x32xf32>
    %126 = arith.addf %125, %124 : vector<2x32xf32>
    %127 = arith.divf %125, %126 : vector<2x32xf32>
    %128 = vector.extract_strided_slice %121 {offsets = [0, 32], sizes = [2, 32], strides = [1, 1]} : vector<2x128xf32> to vector<2x32xf32>
    %129 = arith.negf %128 : vector<2x32xf32>
    %130 = math.exp %129 : vector<2x32xf32>
    %cst_44 = arith.constant 1.000000e+00 : f32
    %131 = vector.broadcast %cst_44 : f32 to vector<2x32xf32>
    %132 = arith.addf %131, %130 : vector<2x32xf32>
    %133 = arith.divf %131, %132 : vector<2x32xf32>
    %134 = vector.extract_strided_slice %121 {offsets = [0, 64], sizes = [2, 32], strides = [1, 1]} : vector<2x128xf32> to vector<2x32xf32>
    %135 = math.tanh %134 : vector<2x32xf32>
    %136 = vector.extract_strided_slice %121 {offsets = [0, 96], sizes = [2, 32], strides = [1, 1]} : vector<2x128xf32> to vector<2x32xf32>
    %137 = arith.negf %136 : vector<2x32xf32>
    %138 = math.exp %137 : vector<2x32xf32>
    %cst_45 = arith.constant 1.000000e+00 : f32
    %139 = vector.broadcast %cst_45 : f32 to vector<2x32xf32>
    %140 = arith.addf %139, %138 : vector<2x32xf32>
    %141 = arith.divf %139, %140 : vector<2x32xf32>
    %142 = arith.mulf %133, %113 : vector<2x32xf32>
    %143 = arith.mulf %127, %135 : vector<2x32xf32>
    %144 = arith.addf %142, %143 : vector<2x32xf32>
    %145 = math.tanh %144 : vector<2x32xf32>
    %146 = arith.mulf %141, %145 : vector<2x32xf32>
    %c0_46 = arith.constant 0 : index
    %c6 = arith.constant 6 : index
    %c0_47 = arith.constant 0 : index
    %147 = vector.load %arg7[%c0_46, %c6, %c0_47] : memref<1x16x32xf32, #tpu.memory_space<vmem>>, vector<1x2x32xf32>
    %148 = vector.shape_cast %147 : vector<1x2x32xf32> to vector<2x32xf32>
    %149 = vector.shape_cast %146 : vector<2x32xf32> to vector<1x2x32xf32>
    tpu.vector_store %arg7[%c0_46, %c6, %c0_47], %149 {strides = array<i32>} : memref<1x16x32xf32, #tpu.memory_space<vmem>>, vector<1x2x32xf32>,
    %150 = vector.extract_strided_slice %21 {offsets = [8, 0], sizes = [2, 128], strides = [1, 1]} : vector<16x128xf32> to vector<2x128xf32>
    %cst_48 = arith.constant dense<0.000000e+00> : vector<2x128xf32>
    %151 = tpu.matmul %146, %23, %cst_48 {dimension_numbers = #tpu.dot_dimension_numbers<[1], [0], [0], [1], [0, 0, 1, 1], [], []>} : vector<2x32xf32>, vector<32x128xf32>, vector<2x128xf32> -> vector<2x128xf32>
    %152 = arith.addf %150, %151 : vector<2x128xf32>
    %153 = vector.extract_strided_slice %152 {offsets = [0, 0], sizes = [2, 32], strides = [1, 1]} : vector<2x128xf32> to vector<2x32xf32>
    %154 = arith.negf %153 : vector<2x32xf32>
    %155 = math.exp %154 : vector<2x32xf32>
    %cst_49 = arith.constant 1.000000e+00 : f32
    %156 = vector.broadcast %cst_49 : f32 to vector<2x32xf32>
    %157 = arith.addf %156, %155 : vector<2x32xf32>
    %158 = arith.divf %156, %157 : vector<2x32xf32>
    %159 = vector.extract_strided_slice %152 {offsets = [0, 32], sizes = [2, 32], strides = [1, 1]} : vector<2x128xf32> to vector<2x32xf32>
    %160 = arith.negf %159 : vector<2x32xf32>
    %161 = math.exp %160 : vector<2x32xf32>
    %cst_50 = arith.constant 1.000000e+00 : f32
    %162 = vector.broadcast %cst_50 : f32 to vector<2x32xf32>
    %163 = arith.addf %162, %161 : vector<2x32xf32>
    %164 = arith.divf %162, %163 : vector<2x32xf32>
    %165 = vector.extract_strided_slice %152 {offsets = [0, 64], sizes = [2, 32], strides = [1, 1]} : vector<2x128xf32> to vector<2x32xf32>
    %166 = math.tanh %165 : vector<2x32xf32>
    %167 = vector.extract_strided_slice %152 {offsets = [0, 96], sizes = [2, 32], strides = [1, 1]} : vector<2x128xf32> to vector<2x32xf32>
    %168 = arith.negf %167 : vector<2x32xf32>
    %169 = math.exp %168 : vector<2x32xf32>
    %cst_51 = arith.constant 1.000000e+00 : f32
    %170 = vector.broadcast %cst_51 : f32 to vector<2x32xf32>
    %171 = arith.addf %170, %169 : vector<2x32xf32>
    %172 = arith.divf %170, %171 : vector<2x32xf32>
    %173 = arith.mulf %164, %144 : vector<2x32xf32>
    %174 = arith.mulf %158, %166 : vector<2x32xf32>
    %175 = arith.addf %173, %174 : vector<2x32xf32>
    %176 = math.tanh %175 : vector<2x32xf32>
    %177 = arith.mulf %172, %176 : vector<2x32xf32>
    %c0_52 = arith.constant 0 : index
    %c8_53 = arith.constant 8 : index
    %c0_54 = arith.constant 0 : index
    %178 = vector.load %arg7[%c0_52, %c8_53, %c0_54] : memref<1x16x32xf32, #tpu.memory_space<vmem>>, vector<1x2x32xf32>
    %179 = vector.shape_cast %178 : vector<1x2x32xf32> to vector<2x32xf32>
    %180 = vector.shape_cast %177 : vector<2x32xf32> to vector<1x2x32xf32>
    tpu.vector_store %arg7[%c0_52, %c8_53, %c0_54], %180 {strides = array<i32>} : memref<1x16x32xf32, #tpu.memory_space<vmem>>, vector<1x2x32xf32>,
    %181 = vector.extract_strided_slice %21 {offsets = [10, 0], sizes = [2, 128], strides = [1, 1]} : vector<16x128xf32> to vector<2x128xf32>
    %cst_55 = arith.constant dense<0.000000e+00> : vector<2x128xf32>
    %182 = tpu.matmul %177, %23, %cst_55 {dimension_numbers = #tpu.dot_dimension_numbers<[1], [0], [0], [1], [0, 0, 1, 1], [], []>} : vector<2x32xf32>, vector<32x128xf32>, vector<2x128xf32> -> vector<2x128xf32>
    %183 = arith.addf %181, %182 : vector<2x128xf32>
    %184 = vector.extract_strided_slice %183 {offsets = [0, 0], sizes = [2, 32], strides = [1, 1]} : vector<2x128xf32> to vector<2x32xf32>
    %185 = arith.negf %184 : vector<2x32xf32>
    %186 = math.exp %185 : vector<2x32xf32>
    %cst_56 = arith.constant 1.000000e+00 : f32
    %187 = vector.broadcast %cst_56 : f32 to vector<2x32xf32>
    %188 = arith.addf %187, %186 : vector<2x32xf32>
    %189 = arith.divf %187, %188 : vector<2x32xf32>
    %190 = vector.extract_strided_slice %183 {offsets = [0, 32], sizes = [2, 32], strides = [1, 1]} : vector<2x128xf32> to vector<2x32xf32>
    %191 = arith.negf %190 : vector<2x32xf32>
    %192 = math.exp %191 : vector<2x32xf32>
    %cst_57 = arith.constant 1.000000e+00 : f32
    %193 = vector.broadcast %cst_57 : f32 to vector<2x32xf32>
    %194 = arith.addf %193, %192 : vector<2x32xf32>
    %195 = arith.divf %193, %194 : vector<2x32xf32>
    %196 = vector.extract_strided_slice %183 {offsets = [0, 64], sizes = [2, 32], strides = [1, 1]} : vector<2x128xf32> to vector<2x32xf32>
    %197 = math.tanh %196 : vector<2x32xf32>
    %198 = vector.extract_strided_slice %183 {offsets = [0, 96], sizes = [2, 32], strides = [1, 1]} : vector<2x128xf32> to vector<2x32xf32>
    %199 = arith.negf %198 : vector<2x32xf32>
    %200 = math.exp %199 : vector<2x32xf32>
    %cst_58 = arith.constant 1.000000e+00 : f32
    %201 = vector.broadcast %cst_58 : f32 to vector<2x32xf32>
    %202 = arith.addf %201, %200 : vector<2x32xf32>
    %203 = arith.divf %201, %202 : vector<2x32xf32>
    %204 = arith.mulf %195, %175 : vector<2x32xf32>
    %205 = arith.mulf %189, %197 : vector<2x32xf32>
    %206 = arith.addf %204, %205 : vector<2x32xf32>
    %207 = math.tanh %206 : vector<2x32xf32>
    %208 = arith.mulf %203, %207 : vector<2x32xf32>
    %c0_59 = arith.constant 0 : index
    %c10 = arith.constant 10 : index
    %c0_60 = arith.constant 0 : index
    %209 = vector.load %arg7[%c0_59, %c10, %c0_60] : memref<1x16x32xf32, #tpu.memory_space<vmem>>, vector<1x2x32xf32>
    %210 = vector.shape_cast %209 : vector<1x2x32xf32> to vector<2x32xf32>
    %211 = vector.shape_cast %208 : vector<2x32xf32> to vector<1x2x32xf32>
    tpu.vector_store %arg7[%c0_59, %c10, %c0_60], %211 {strides = array<i32>} : memref<1x16x32xf32, #tpu.memory_space<vmem>>, vector<1x2x32xf32>,
    %212 = vector.extract_strided_slice %21 {offsets = [12, 0], sizes = [2, 128], strides = [1, 1]} : vector<16x128xf32> to vector<2x128xf32>
    %cst_61 = arith.constant dense<0.000000e+00> : vector<2x128xf32>
    %213 = tpu.matmul %208, %23, %cst_61 {dimension_numbers = #tpu.dot_dimension_numbers<[1], [0], [0], [1], [0, 0, 1, 1], [], []>} : vector<2x32xf32>, vector<32x128xf32>, vector<2x128xf32> -> vector<2x128xf32>
    %214 = arith.addf %212, %213 : vector<2x128xf32>
    %215 = vector.extract_strided_slice %214 {offsets = [0, 0], sizes = [2, 32], strides = [1, 1]} : vector<2x128xf32> to vector<2x32xf32>
    %216 = arith.negf %215 : vector<2x32xf32>
    %217 = math.exp %216 : vector<2x32xf32>
    %cst_62 = arith.constant 1.000000e+00 : f32
    %218 = vector.broadcast %cst_62 : f32 to vector<2x32xf32>
    %219 = arith.addf %218, %217 : vector<2x32xf32>
    %220 = arith.divf %218, %219 : vector<2x32xf32>
    %221 = vector.extract_strided_slice %214 {offsets = [0, 32], sizes = [2, 32], strides = [1, 1]} : vector<2x128xf32> to vector<2x32xf32>
    %222 = arith.negf %221 : vector<2x32xf32>
    %223 = math.exp %222 : vector<2x32xf32>
    %cst_63 = arith.constant 1.000000e+00 : f32
    %224 = vector.broadcast %cst_63 : f32 to vector<2x32xf32>
    %225 = arith.addf %224, %223 : vector<2x32xf32>
    %226 = arith.divf %224, %225 : vector<2x32xf32>
    %227 = vector.extract_strided_slice %214 {offsets = [0, 64], sizes = [2, 32], strides = [1, 1]} : vector<2x128xf32> to vector<2x32xf32>
    %228 = math.tanh %227 : vector<2x32xf32>
    %229 = vector.extract_strided_slice %214 {offsets = [0, 96], sizes = [2, 32], strides = [1, 1]} : vector<2x128xf32> to vector<2x32xf32>
    %230 = arith.negf %229 : vector<2x32xf32>
    %231 = math.exp %230 : vector<2x32xf32>
    %cst_64 = arith.constant 1.000000e+00 : f32
    %232 = vector.broadcast %cst_64 : f32 to vector<2x32xf32>
    %233 = arith.addf %232, %231 : vector<2x32xf32>
    %234 = arith.divf %232, %233 : vector<2x32xf32>
    %235 = arith.mulf %226, %206 : vector<2x32xf32>
    %236 = arith.mulf %220, %228 : vector<2x32xf32>
    %237 = arith.addf %235, %236 : vector<2x32xf32>
    %238 = math.tanh %237 : vector<2x32xf32>
    %239 = arith.mulf %234, %238 : vector<2x32xf32>
    %c0_65 = arith.constant 0 : index
    %c12 = arith.constant 12 : index
    %c0_66 = arith.constant 0 : index
    %240 = vector.load %arg7[%c0_65, %c12, %c0_66] : memref<1x16x32xf32, #tpu.memory_space<vmem>>, vector<1x2x32xf32>
    %241 = vector.shape_cast %240 : vector<1x2x32xf32> to vector<2x32xf32>
    %242 = vector.shape_cast %239 : vector<2x32xf32> to vector<1x2x32xf32>
    tpu.vector_store %arg7[%c0_65, %c12, %c0_66], %242 {strides = array<i32>} : memref<1x16x32xf32, #tpu.memory_space<vmem>>, vector<1x2x32xf32>,
    %243 = vector.extract_strided_slice %21 {offsets = [14, 0], sizes = [2, 128], strides = [1, 1]} : vector<16x128xf32> to vector<2x128xf32>
    %cst_67 = arith.constant dense<0.000000e+00> : vector<2x128xf32>
    %244 = tpu.matmul %239, %23, %cst_67 {dimension_numbers = #tpu.dot_dimension_numbers<[1], [0], [0], [1], [0, 0, 1, 1], [], []>} : vector<2x32xf32>, vector<32x128xf32>, vector<2x128xf32> -> vector<2x128xf32>
    %245 = arith.addf %243, %244 : vector<2x128xf32>
    %246 = vector.extract_strided_slice %245 {offsets = [0, 0], sizes = [2, 32], strides = [1, 1]} : vector<2x128xf32> to vector<2x32xf32>
    %247 = arith.negf %246 : vector<2x32xf32>
    %248 = math.exp %247 : vector<2x32xf32>
    %cst_68 = arith.constant 1.000000e+00 : f32
    %249 = vector.broadcast %cst_68 : f32 to vector<2x32xf32>
    %250 = arith.addf %249, %248 : vector<2x32xf32>
    %251 = arith.divf %249, %250 : vector<2x32xf32>
    %252 = vector.extract_strided_slice %245 {offsets = [0, 32], sizes = [2, 32], strides = [1, 1]} : vector<2x128xf32> to vector<2x32xf32>
    %253 = arith.negf %252 : vector<2x32xf32>
    %254 = math.exp %253 : vector<2x32xf32>
    %cst_69 = arith.constant 1.000000e+00 : f32
    %255 = vector.broadcast %cst_69 : f32 to vector<2x32xf32>
    %256 = arith.addf %255, %254 : vector<2x32xf32>
    %257 = arith.divf %255, %256 : vector<2x32xf32>
    %258 = vector.extract_strided_slice %245 {offsets = [0, 64], sizes = [2, 32], strides = [1, 1]} : vector<2x128xf32> to vector<2x32xf32>
    %259 = math.tanh %258 : vector<2x32xf32>
    %260 = vector.extract_strided_slice %245 {offsets = [0, 96], sizes = [2, 32], strides = [1, 1]} : vector<2x128xf32> to vector<2x32xf32>
    %261 = arith.negf %260 : vector<2x32xf32>
    %262 = math.exp %261 : vector<2x32xf32>
    %cst_70 = arith.constant 1.000000e+00 : f32
    %263 = vector.broadcast %cst_70 : f32 to vector<2x32xf32>
    %264 = arith.addf %263, %262 : vector<2x32xf32>
    %265 = arith.divf %263, %264 : vector<2x32xf32>
    %266 = arith.mulf %257, %237 : vector<2x32xf32>
    %267 = arith.mulf %251, %259 : vector<2x32xf32>
    %268 = arith.addf %266, %267 : vector<2x32xf32>
    %269 = math.tanh %268 : vector<2x32xf32>
    %270 = arith.mulf %265, %269 : vector<2x32xf32>
    %c0_71 = arith.constant 0 : index
    %c14 = arith.constant 14 : index
    %c0_72 = arith.constant 0 : index
    %271 = vector.load %arg7[%c0_71, %c14, %c0_72] : memref<1x16x32xf32, #tpu.memory_space<vmem>>, vector<1x2x32xf32>
    %272 = vector.shape_cast %271 : vector<1x2x32xf32> to vector<2x32xf32>
    %273 = vector.shape_cast %270 : vector<2x32xf32> to vector<1x2x32xf32>
    tpu.vector_store %arg7[%c0_71, %c14, %c0_72], %273 {strides = array<i32>} : memref<1x16x32xf32, #tpu.memory_space<vmem>>, vector<1x2x32xf32>,
    return
  }
  func.func @transform_0(%arg0: i32) -> (i32, i32, i32) {
    %c0_i32 = arith.constant 0 : i32
    %c0_i32_0 = arith.constant 0 : i32
    %c0_i32_1 = arith.constant 0 : i32
    %c0_i32_2 = arith.constant 0 : i32
    return %c0_i32, %c0_i32_0, %c0_i32_1 : i32, i32, i32
  }
  func.func @transform_1(%arg0: i32) -> (i32, i32) {
    %c0_i32 = arith.constant 0 : i32
    %c0_i32_0 = arith.constant 0 : i32
    %c0_i32_1 = arith.constant 0 : i32
    return %c0_i32, %c0_i32_0 : i32, i32
  }
  func.func @transform_2(%arg0: i32) -> (i32, i32) {
    %c0_i32 = arith.constant 0 : i32
    %c0_i32_0 = arith.constant 0 : i32
    %c0_i32_1 = arith.constant 0 : i32
    return %c0_i32, %c0_i32_0 : i32, i32
  }
  func.func @transform_3(%arg0: i32) -> (i32, i32, i32) {
    %c0_i32 = arith.constant 0 : i32
    %c0_i32_0 = arith.constant 0 : i32
    %c0_i32_1 = arith.constant 0 : i32
    return %arg0, %c0_i32, %c0_i32_0 : i32, i32, i32
  }
  func.func @transform_4(%arg0: i32) -> (i32, i32, i32) {
    %c0_i32 = arith.constant 0 : i32
    %c0_i32_0 = arith.constant 0 : i32
    %c0_i32_1 = arith.constant 0 : i32
    return %arg0, %c0_i32, %c0_i32_0 : i32, i32, i32
  }
  func.func @transform_5(%arg0: i32) -> (i32, i32, i32) {
    %c0_i32 = arith.constant 0 : i32
    %c0_i32_0 = arith.constant 0 : i32
    %c0_i32_1 = arith.constant 0 : i32
    return %arg0, %c0_i32, %c0_i32_0 : i32, i32, i32
  }
  func.func @transform_6(%arg0: i32) -> (i32, i32, i32) {
    %c0_i32 = arith.constant 0 : i32
    %c0_i32_0 = arith.constant 0 : i32
    %c0_i32_1 = arith.constant 0 : i32
    return %arg0, %c0_i32, %c0_i32_0 : i32, i32, i32
  }
}

module attributes {stable_mosaic.version = 11 : i64} {
  func.func @_encoder_prior_kernel(%arg0: i32, %arg1: memref<16x8xf32, #tpu.memory_space<vmem>>, %arg2: memref<16x4xf32, #tpu.memory_space<vmem>>, %arg3: memref<1x8x32xf32, #tpu.memory_space<vmem>>, %arg4: memref<1x8x32xf32, #tpu.memory_space<vmem>>, %arg5: memref<1x1x32xf32, #tpu.memory_space<vmem>>, %arg6: memref<1x8x32xf32, #tpu.memory_space<vmem>>, %arg7: memref<1x1x32xf32, #tpu.memory_space<vmem>>, %arg8: memref<1x32x32xf32, #tpu.memory_space<vmem>>, %arg9: memref<1x8x32xf32, #tpu.memory_space<vmem>>, %arg10: memref<1x1x32xf32, #tpu.memory_space<vmem>>, %arg11: memref<1x4x32xf32, #tpu.memory_space<vmem>>, %arg12: memref<1x1x32xf32, #tpu.memory_space<vmem>>, %arg13: memref<1x32x32xf32, #tpu.memory_space<vmem>>, %arg14: memref<1x1x32xf32, #tpu.memory_space<vmem>>, %arg15: memref<1x32x8xf32, #tpu.memory_space<vmem>>, %arg16: memref<1x1x8xf32, #tpu.memory_space<vmem>>, %arg17: memref<1x16x8xf32, #tpu.memory_space<vmem>>, %arg18: memref<1x16x8xf32, #tpu.memory_space<vmem>>, %arg19: memref<16x8xf32, #tpu.memory_space<vmem>>, %arg20: memref<16x32xf32, #tpu.memory_space<vmem>>) attributes {dimension_semantics = [#tpu.dimension_semantics<parallel>], iteration_bounds = array<i64: 2>, scalar_prefetch = 0 : i64, scratch_operands = 2 : i64, tpu.core_type = #tpu.core_type<tc>, window_params = [{pipeline_mode = #tpu.pipeline_mode<synchronous>, transform_indices = @transform_0, window_bounds = array<i64: 16, 8>}, {pipeline_mode = #tpu.pipeline_mode<synchronous>, transform_indices = @transform_1, window_bounds = array<i64: 16, 4>}, {transform_indices = @transform_2, window_bounds = array<i64: 1, 8, 32>}, {transform_indices = @transform_3, window_bounds = array<i64: 1, 8, 32>}, {transform_indices = @transform_4, window_bounds = array<i64: 1, 1, 32>}, {transform_indices = @transform_5, window_bounds = array<i64: 1, 8, 32>}, {transform_indices = @transform_6, window_bounds = array<i64: 1, 1, 32>}, {transform_indices = @transform_7, window_bounds = array<i64: 1, 32, 32>}, {transform_indices = @transform_8, window_bounds = array<i64: 1, 8, 32>}, {transform_indices = @transform_9, window_bounds = array<i64: 1, 1, 32>}, {transform_indices = @transform_10, window_bounds = array<i64: 1, 4, 32>}, {transform_indices = @transform_11, window_bounds = array<i64: 1, 1, 32>}, {transform_indices = @transform_12, window_bounds = array<i64: 1, 32, 32>}, {transform_indices = @transform_13, window_bounds = array<i64: 1, 1, 32>}, {transform_indices = @transform_14, window_bounds = array<i64: 1, 32, 8>}, {transform_indices = @transform_15, window_bounds = array<i64: 1, 1, 8>}, {transform_indices = @transform_16, window_bounds = array<i64: 1, 16, 8>}, {transform_indices = @transform_17, window_bounds = array<i64: 1, 16, 8>}]} {
    %c0 = arith.constant 0 : index
    %c0_0 = arith.constant 0 : index
    %0 = vector.load %arg1[%c0, %c0_0] : memref<16x8xf32, #tpu.memory_space<vmem>>, vector<16x8xf32>
    %c0_1 = arith.constant 0 : index
    %c0_2 = arith.constant 0 : index
    %c0_3 = arith.constant 0 : index
    %1 = vector.load %arg3[%c0_1, %c0_2, %c0_3] : memref<1x8x32xf32, #tpu.memory_space<vmem>>, vector<1x8x32xf32>
    %2 = vector.shape_cast %1 : vector<1x8x32xf32> to vector<8x32xf32>
    %cst = arith.constant dense<0.000000e+00> : vector<16x32xf32>
    %3 = tpu.matmul %0, %2, %cst {dimension_numbers = #tpu.dot_dimension_numbers<[1], [0], [0], [1], [0, 0, 1, 1], [], []>} : vector<16x8xf32>, vector<8x32xf32>, vector<16x32xf32> -> vector<16x32xf32>
    %c0_4 = arith.constant 0 : index
    %c0_5 = arith.constant 0 : index
    %c0_6 = arith.constant 0 : index
    %4 = vector.load %arg5[%c0_4, %c0_5, %c0_6] : memref<1x1x32xf32, #tpu.memory_space<vmem>>, vector<1x1x32xf32>
    %5 = vector.shape_cast %4 : vector<1x1x32xf32> to vector<1x32xf32>
    %6 = vector.broadcast %5 : vector<1x32xf32> to vector<16x32xf32>
    %7 = arith.addf %3, %6 : vector<16x32xf32>
    %c0_7 = arith.constant 0 : index
    %c0_8 = arith.constant 0 : index
    %c0_9 = arith.constant 0 : index
    %8 = vector.load %arg4[%c0_7, %c0_8, %c0_9] : memref<1x8x32xf32, #tpu.memory_space<vmem>>, vector<1x8x32xf32>
    %9 = vector.shape_cast %8 : vector<1x8x32xf32> to vector<8x32xf32>
    %cst_10 = arith.constant 0.000000e+00 : f32
    %10 = vector.broadcast %cst_10 : f32 to vector<2x8xf32>
    %cst_11 = arith.constant 0.000000e+00 : f32
    %11 = vector.broadcast %cst_11 : f32 to vector<2x8xf32>
    %12 = vector.extract_strided_slice %7 {offsets = [0, 0], sizes = [2, 32], strides = [1, 1]} : vector<16x32xf32> to vector<2x32xf32>
    %cst_12 = arith.constant dense<0.000000e+00> : vector<2x32xf32>
    %13 = tpu.matmul %10, %9, %cst_12 {dimension_numbers = #tpu.dot_dimension_numbers<[1], [0], [0], [1], [0, 0, 1, 1], [], []>} : vector<2x8xf32>, vector<8x32xf32>, vector<2x32xf32> -> vector<2x32xf32>
    %14 = arith.addf %12, %13 : vector<2x32xf32>
    %15 = vector.extract_strided_slice %14 {offsets = [0, 0], sizes = [2, 8], strides = [1, 1]} : vector<2x32xf32> to vector<2x8xf32>
    %16 = arith.negf %15 : vector<2x8xf32>
    %17 = math.exp %16 : vector<2x8xf32>
    %cst_13 = arith.constant 1.000000e+00 : f32
    %18 = vector.broadcast %cst_13 : f32 to vector<2x8xf32>
    %19 = arith.addf %18, %17 : vector<2x8xf32>
    %20 = arith.divf %18, %19 : vector<2x8xf32>
    %21 = vector.extract_strided_slice %14 {offsets = [0, 8], sizes = [2, 8], strides = [1, 1]} : vector<2x32xf32> to vector<2x8xf32>
    %22 = arith.negf %21 : vector<2x8xf32>
    %23 = math.exp %22 : vector<2x8xf32>
    %cst_14 = arith.constant 1.000000e+00 : f32
    %24 = vector.broadcast %cst_14 : f32 to vector<2x8xf32>
    %25 = arith.addf %24, %23 : vector<2x8xf32>
    %26 = arith.divf %24, %25 : vector<2x8xf32>
    %27 = vector.extract_strided_slice %14 {offsets = [0, 16], sizes = [2, 8], strides = [1, 1]} : vector<2x32xf32> to vector<2x8xf32>
    %28 = math.tanh %27 : vector<2x8xf32>
    %29 = vector.extract_strided_slice %14 {offsets = [0, 24], sizes = [2, 8], strides = [1, 1]} : vector<2x32xf32> to vector<2x8xf32>
    %30 = arith.negf %29 : vector<2x8xf32>
    %31 = math.exp %30 : vector<2x8xf32>
    %cst_15 = arith.constant 1.000000e+00 : f32
    %32 = vector.broadcast %cst_15 : f32 to vector<2x8xf32>
    %33 = arith.addf %32, %31 : vector<2x8xf32>
    %34 = arith.divf %32, %33 : vector<2x8xf32>
    %35 = arith.mulf %26, %11 : vector<2x8xf32>
    %36 = arith.mulf %20, %28 : vector<2x8xf32>
    %37 = arith.addf %35, %36 : vector<2x8xf32>
    %38 = math.tanh %37 : vector<2x8xf32>
    %39 = arith.mulf %34, %38 : vector<2x8xf32>
    %c0_16 = arith.constant 0 : index
    %c0_17 = arith.constant 0 : index
    %40 = vector.load %arg19[%c0_16, %c0_17] : memref<16x8xf32, #tpu.memory_space<vmem>>, vector<2x8xf32>
    tpu.vector_store %arg19[%c0_16, %c0_17], %39 {strides = array<i32>} : memref<16x8xf32, #tpu.memory_space<vmem>>, vector<2x8xf32>,
    %41 = vector.extract_strided_slice %7 {offsets = [2, 0], sizes = [2, 32], strides = [1, 1]} : vector<16x32xf32> to vector<2x32xf32>
    %cst_18 = arith.constant dense<0.000000e+00> : vector<2x32xf32>
    %42 = tpu.matmul %39, %9, %cst_18 {dimension_numbers = #tpu.dot_dimension_numbers<[1], [0], [0], [1], [0, 0, 1, 1], [], []>} : vector<2x8xf32>, vector<8x32xf32>, vector<2x32xf32> -> vector<2x32xf32>
    %43 = arith.addf %41, %42 : vector<2x32xf32>
    %44 = vector.extract_strided_slice %43 {offsets = [0, 0], sizes = [2, 8], strides = [1, 1]} : vector<2x32xf32> to vector<2x8xf32>
    %45 = arith.negf %44 : vector<2x8xf32>
    %46 = math.exp %45 : vector<2x8xf32>
    %cst_19 = arith.constant 1.000000e+00 : f32
    %47 = vector.broadcast %cst_19 : f32 to vector<2x8xf32>
    %48 = arith.addf %47, %46 : vector<2x8xf32>
    %49 = arith.divf %47, %48 : vector<2x8xf32>
    %50 = vector.extract_strided_slice %43 {offsets = [0, 8], sizes = [2, 8], strides = [1, 1]} : vector<2x32xf32> to vector<2x8xf32>
    %51 = arith.negf %50 : vector<2x8xf32>
    %52 = math.exp %51 : vector<2x8xf32>
    %cst_20 = arith.constant 1.000000e+00 : f32
    %53 = vector.broadcast %cst_20 : f32 to vector<2x8xf32>
    %54 = arith.addf %53, %52 : vector<2x8xf32>
    %55 = arith.divf %53, %54 : vector<2x8xf32>
    %56 = vector.extract_strided_slice %43 {offsets = [0, 16], sizes = [2, 8], strides = [1, 1]} : vector<2x32xf32> to vector<2x8xf32>
    %57 = math.tanh %56 : vector<2x8xf32>
    %58 = vector.extract_strided_slice %43 {offsets = [0, 24], sizes = [2, 8], strides = [1, 1]} : vector<2x32xf32> to vector<2x8xf32>
    %59 = arith.negf %58 : vector<2x8xf32>
    %60 = math.exp %59 : vector<2x8xf32>
    %cst_21 = arith.constant 1.000000e+00 : f32
    %61 = vector.broadcast %cst_21 : f32 to vector<2x8xf32>
    %62 = arith.addf %61, %60 : vector<2x8xf32>
    %63 = arith.divf %61, %62 : vector<2x8xf32>
    %64 = arith.mulf %55, %37 : vector<2x8xf32>
    %65 = arith.mulf %49, %57 : vector<2x8xf32>
    %66 = arith.addf %64, %65 : vector<2x8xf32>
    %67 = math.tanh %66 : vector<2x8xf32>
    %68 = arith.mulf %63, %67 : vector<2x8xf32>
    %c2 = arith.constant 2 : index
    %c0_22 = arith.constant 0 : index
    %69 = vector.load %arg19[%c2, %c0_22] : memref<16x8xf32, #tpu.memory_space<vmem>>, vector<2x8xf32>
    tpu.vector_store %arg19[%c2, %c0_22], %68 {strides = array<i32>} : memref<16x8xf32, #tpu.memory_space<vmem>>, vector<2x8xf32>,
    %70 = vector.extract_strided_slice %7 {offsets = [4, 0], sizes = [2, 32], strides = [1, 1]} : vector<16x32xf32> to vector<2x32xf32>
    %cst_23 = arith.constant dense<0.000000e+00> : vector<2x32xf32>
    %71 = tpu.matmul %68, %9, %cst_23 {dimension_numbers = #tpu.dot_dimension_numbers<[1], [0], [0], [1], [0, 0, 1, 1], [], []>} : vector<2x8xf32>, vector<8x32xf32>, vector<2x32xf32> -> vector<2x32xf32>
    %72 = arith.addf %70, %71 : vector<2x32xf32>
    %73 = vector.extract_strided_slice %72 {offsets = [0, 0], sizes = [2, 8], strides = [1, 1]} : vector<2x32xf32> to vector<2x8xf32>
    %74 = arith.negf %73 : vector<2x8xf32>
    %75 = math.exp %74 : vector<2x8xf32>
    %cst_24 = arith.constant 1.000000e+00 : f32
    %76 = vector.broadcast %cst_24 : f32 to vector<2x8xf32>
    %77 = arith.addf %76, %75 : vector<2x8xf32>
    %78 = arith.divf %76, %77 : vector<2x8xf32>
    %79 = vector.extract_strided_slice %72 {offsets = [0, 8], sizes = [2, 8], strides = [1, 1]} : vector<2x32xf32> to vector<2x8xf32>
    %80 = arith.negf %79 : vector<2x8xf32>
    %81 = math.exp %80 : vector<2x8xf32>
    %cst_25 = arith.constant 1.000000e+00 : f32
    %82 = vector.broadcast %cst_25 : f32 to vector<2x8xf32>
    %83 = arith.addf %82, %81 : vector<2x8xf32>
    %84 = arith.divf %82, %83 : vector<2x8xf32>
    %85 = vector.extract_strided_slice %72 {offsets = [0, 16], sizes = [2, 8], strides = [1, 1]} : vector<2x32xf32> to vector<2x8xf32>
    %86 = math.tanh %85 : vector<2x8xf32>
    %87 = vector.extract_strided_slice %72 {offsets = [0, 24], sizes = [2, 8], strides = [1, 1]} : vector<2x32xf32> to vector<2x8xf32>
    %88 = arith.negf %87 : vector<2x8xf32>
    %89 = math.exp %88 : vector<2x8xf32>
    %cst_26 = arith.constant 1.000000e+00 : f32
    %90 = vector.broadcast %cst_26 : f32 to vector<2x8xf32>
    %91 = arith.addf %90, %89 : vector<2x8xf32>
    %92 = arith.divf %90, %91 : vector<2x8xf32>
    %93 = arith.mulf %84, %66 : vector<2x8xf32>
    %94 = arith.mulf %78, %86 : vector<2x8xf32>
    %95 = arith.addf %93, %94 : vector<2x8xf32>
    %96 = math.tanh %95 : vector<2x8xf32>
    %97 = arith.mulf %92, %96 : vector<2x8xf32>
    %c4 = arith.constant 4 : index
    %c0_27 = arith.constant 0 : index
    %98 = vector.load %arg19[%c4, %c0_27] : memref<16x8xf32, #tpu.memory_space<vmem>>, vector<2x8xf32>
    tpu.vector_store %arg19[%c4, %c0_27], %97 {strides = array<i32>} : memref<16x8xf32, #tpu.memory_space<vmem>>, vector<2x8xf32>,
    %99 = vector.extract_strided_slice %7 {offsets = [6, 0], sizes = [2, 32], strides = [1, 1]} : vector<16x32xf32> to vector<2x32xf32>
    %cst_28 = arith.constant dense<0.000000e+00> : vector<2x32xf32>
    %100 = tpu.matmul %97, %9, %cst_28 {dimension_numbers = #tpu.dot_dimension_numbers<[1], [0], [0], [1], [0, 0, 1, 1], [], []>} : vector<2x8xf32>, vector<8x32xf32>, vector<2x32xf32> -> vector<2x32xf32>
    %101 = arith.addf %99, %100 : vector<2x32xf32>
    %102 = vector.extract_strided_slice %101 {offsets = [0, 0], sizes = [2, 8], strides = [1, 1]} : vector<2x32xf32> to vector<2x8xf32>
    %103 = arith.negf %102 : vector<2x8xf32>
    %104 = math.exp %103 : vector<2x8xf32>
    %cst_29 = arith.constant 1.000000e+00 : f32
    %105 = vector.broadcast %cst_29 : f32 to vector<2x8xf32>
    %106 = arith.addf %105, %104 : vector<2x8xf32>
    %107 = arith.divf %105, %106 : vector<2x8xf32>
    %108 = vector.extract_strided_slice %101 {offsets = [0, 8], sizes = [2, 8], strides = [1, 1]} : vector<2x32xf32> to vector<2x8xf32>
    %109 = arith.negf %108 : vector<2x8xf32>
    %110 = math.exp %109 : vector<2x8xf32>
    %cst_30 = arith.constant 1.000000e+00 : f32
    %111 = vector.broadcast %cst_30 : f32 to vector<2x8xf32>
    %112 = arith.addf %111, %110 : vector<2x8xf32>
    %113 = arith.divf %111, %112 : vector<2x8xf32>
    %114 = vector.extract_strided_slice %101 {offsets = [0, 16], sizes = [2, 8], strides = [1, 1]} : vector<2x32xf32> to vector<2x8xf32>
    %115 = math.tanh %114 : vector<2x8xf32>
    %116 = vector.extract_strided_slice %101 {offsets = [0, 24], sizes = [2, 8], strides = [1, 1]} : vector<2x32xf32> to vector<2x8xf32>
    %117 = arith.negf %116 : vector<2x8xf32>
    %118 = math.exp %117 : vector<2x8xf32>
    %cst_31 = arith.constant 1.000000e+00 : f32
    %119 = vector.broadcast %cst_31 : f32 to vector<2x8xf32>
    %120 = arith.addf %119, %118 : vector<2x8xf32>
    %121 = arith.divf %119, %120 : vector<2x8xf32>
    %122 = arith.mulf %113, %95 : vector<2x8xf32>
    %123 = arith.mulf %107, %115 : vector<2x8xf32>
    %124 = arith.addf %122, %123 : vector<2x8xf32>
    %125 = math.tanh %124 : vector<2x8xf32>
    %126 = arith.mulf %121, %125 : vector<2x8xf32>
    %c6 = arith.constant 6 : index
    %c0_32 = arith.constant 0 : index
    %127 = vector.load %arg19[%c6, %c0_32] : memref<16x8xf32, #tpu.memory_space<vmem>>, vector<2x8xf32>
    tpu.vector_store %arg19[%c6, %c0_32], %126 {strides = array<i32>} : memref<16x8xf32, #tpu.memory_space<vmem>>, vector<2x8xf32>,
    %128 = vector.extract_strided_slice %7 {offsets = [8, 0], sizes = [2, 32], strides = [1, 1]} : vector<16x32xf32> to vector<2x32xf32>
    %cst_33 = arith.constant dense<0.000000e+00> : vector<2x32xf32>
    %129 = tpu.matmul %126, %9, %cst_33 {dimension_numbers = #tpu.dot_dimension_numbers<[1], [0], [0], [1], [0, 0, 1, 1], [], []>} : vector<2x8xf32>, vector<8x32xf32>, vector<2x32xf32> -> vector<2x32xf32>
    %130 = arith.addf %128, %129 : vector<2x32xf32>
    %131 = vector.extract_strided_slice %130 {offsets = [0, 0], sizes = [2, 8], strides = [1, 1]} : vector<2x32xf32> to vector<2x8xf32>
    %132 = arith.negf %131 : vector<2x8xf32>
    %133 = math.exp %132 : vector<2x8xf32>
    %cst_34 = arith.constant 1.000000e+00 : f32
    %134 = vector.broadcast %cst_34 : f32 to vector<2x8xf32>
    %135 = arith.addf %134, %133 : vector<2x8xf32>
    %136 = arith.divf %134, %135 : vector<2x8xf32>
    %137 = vector.extract_strided_slice %130 {offsets = [0, 8], sizes = [2, 8], strides = [1, 1]} : vector<2x32xf32> to vector<2x8xf32>
    %138 = arith.negf %137 : vector<2x8xf32>
    %139 = math.exp %138 : vector<2x8xf32>
    %cst_35 = arith.constant 1.000000e+00 : f32
    %140 = vector.broadcast %cst_35 : f32 to vector<2x8xf32>
    %141 = arith.addf %140, %139 : vector<2x8xf32>
    %142 = arith.divf %140, %141 : vector<2x8xf32>
    %143 = vector.extract_strided_slice %130 {offsets = [0, 16], sizes = [2, 8], strides = [1, 1]} : vector<2x32xf32> to vector<2x8xf32>
    %144 = math.tanh %143 : vector<2x8xf32>
    %145 = vector.extract_strided_slice %130 {offsets = [0, 24], sizes = [2, 8], strides = [1, 1]} : vector<2x32xf32> to vector<2x8xf32>
    %146 = arith.negf %145 : vector<2x8xf32>
    %147 = math.exp %146 : vector<2x8xf32>
    %cst_36 = arith.constant 1.000000e+00 : f32
    %148 = vector.broadcast %cst_36 : f32 to vector<2x8xf32>
    %149 = arith.addf %148, %147 : vector<2x8xf32>
    %150 = arith.divf %148, %149 : vector<2x8xf32>
    %151 = arith.mulf %142, %124 : vector<2x8xf32>
    %152 = arith.mulf %136, %144 : vector<2x8xf32>
    %153 = arith.addf %151, %152 : vector<2x8xf32>
    %154 = math.tanh %153 : vector<2x8xf32>
    %155 = arith.mulf %150, %154 : vector<2x8xf32>
    %c8 = arith.constant 8 : index
    %c0_37 = arith.constant 0 : index
    %156 = vector.load %arg19[%c8, %c0_37] : memref<16x8xf32, #tpu.memory_space<vmem>>, vector<2x8xf32>
    tpu.vector_store %arg19[%c8, %c0_37], %155 {strides = array<i32>} : memref<16x8xf32, #tpu.memory_space<vmem>>, vector<2x8xf32>,
    %157 = vector.extract_strided_slice %7 {offsets = [10, 0], sizes = [2, 32], strides = [1, 1]} : vector<16x32xf32> to vector<2x32xf32>
    %cst_38 = arith.constant dense<0.000000e+00> : vector<2x32xf32>
    %158 = tpu.matmul %155, %9, %cst_38 {dimension_numbers = #tpu.dot_dimension_numbers<[1], [0], [0], [1], [0, 0, 1, 1], [], []>} : vector<2x8xf32>, vector<8x32xf32>, vector<2x32xf32> -> vector<2x32xf32>
    %159 = arith.addf %157, %158 : vector<2x32xf32>
    %160 = vector.extract_strided_slice %159 {offsets = [0, 0], sizes = [2, 8], strides = [1, 1]} : vector<2x32xf32> to vector<2x8xf32>
    %161 = arith.negf %160 : vector<2x8xf32>
    %162 = math.exp %161 : vector<2x8xf32>
    %cst_39 = arith.constant 1.000000e+00 : f32
    %163 = vector.broadcast %cst_39 : f32 to vector<2x8xf32>
    %164 = arith.addf %163, %162 : vector<2x8xf32>
    %165 = arith.divf %163, %164 : vector<2x8xf32>
    %166 = vector.extract_strided_slice %159 {offsets = [0, 8], sizes = [2, 8], strides = [1, 1]} : vector<2x32xf32> to vector<2x8xf32>
    %167 = arith.negf %166 : vector<2x8xf32>
    %168 = math.exp %167 : vector<2x8xf32>
    %cst_40 = arith.constant 1.000000e+00 : f32
    %169 = vector.broadcast %cst_40 : f32 to vector<2x8xf32>
    %170 = arith.addf %169, %168 : vector<2x8xf32>
    %171 = arith.divf %169, %170 : vector<2x8xf32>
    %172 = vector.extract_strided_slice %159 {offsets = [0, 16], sizes = [2, 8], strides = [1, 1]} : vector<2x32xf32> to vector<2x8xf32>
    %173 = math.tanh %172 : vector<2x8xf32>
    %174 = vector.extract_strided_slice %159 {offsets = [0, 24], sizes = [2, 8], strides = [1, 1]} : vector<2x32xf32> to vector<2x8xf32>
    %175 = arith.negf %174 : vector<2x8xf32>
    %176 = math.exp %175 : vector<2x8xf32>
    %cst_41 = arith.constant 1.000000e+00 : f32
    %177 = vector.broadcast %cst_41 : f32 to vector<2x8xf32>
    %178 = arith.addf %177, %176 : vector<2x8xf32>
    %179 = arith.divf %177, %178 : vector<2x8xf32>
    %180 = arith.mulf %171, %153 : vector<2x8xf32>
    %181 = arith.mulf %165, %173 : vector<2x8xf32>
    %182 = arith.addf %180, %181 : vector<2x8xf32>
    %183 = math.tanh %182 : vector<2x8xf32>
    %184 = arith.mulf %179, %183 : vector<2x8xf32>
    %c10 = arith.constant 10 : index
    %c0_42 = arith.constant 0 : index
    %185 = vector.load %arg19[%c10, %c0_42] : memref<16x8xf32, #tpu.memory_space<vmem>>, vector<2x8xf32>
    tpu.vector_store %arg19[%c10, %c0_42], %184 {strides = array<i32>} : memref<16x8xf32, #tpu.memory_space<vmem>>, vector<2x8xf32>,
    %186 = vector.extract_strided_slice %7 {offsets = [12, 0], sizes = [2, 32], strides = [1, 1]} : vector<16x32xf32> to vector<2x32xf32>
    %cst_43 = arith.constant dense<0.000000e+00> : vector<2x32xf32>
    %187 = tpu.matmul %184, %9, %cst_43 {dimension_numbers = #tpu.dot_dimension_numbers<[1], [0], [0], [1], [0, 0, 1, 1], [], []>} : vector<2x8xf32>, vector<8x32xf32>, vector<2x32xf32> -> vector<2x32xf32>
    %188 = arith.addf %186, %187 : vector<2x32xf32>
    %189 = vector.extract_strided_slice %188 {offsets = [0, 0], sizes = [2, 8], strides = [1, 1]} : vector<2x32xf32> to vector<2x8xf32>
    %190 = arith.negf %189 : vector<2x8xf32>
    %191 = math.exp %190 : vector<2x8xf32>
    %cst_44 = arith.constant 1.000000e+00 : f32
    %192 = vector.broadcast %cst_44 : f32 to vector<2x8xf32>
    %193 = arith.addf %192, %191 : vector<2x8xf32>
    %194 = arith.divf %192, %193 : vector<2x8xf32>
    %195 = vector.extract_strided_slice %188 {offsets = [0, 8], sizes = [2, 8], strides = [1, 1]} : vector<2x32xf32> to vector<2x8xf32>
    %196 = arith.negf %195 : vector<2x8xf32>
    %197 = math.exp %196 : vector<2x8xf32>
    %cst_45 = arith.constant 1.000000e+00 : f32
    %198 = vector.broadcast %cst_45 : f32 to vector<2x8xf32>
    %199 = arith.addf %198, %197 : vector<2x8xf32>
    %200 = arith.divf %198, %199 : vector<2x8xf32>
    %201 = vector.extract_strided_slice %188 {offsets = [0, 16], sizes = [2, 8], strides = [1, 1]} : vector<2x32xf32> to vector<2x8xf32>
    %202 = math.tanh %201 : vector<2x8xf32>
    %203 = vector.extract_strided_slice %188 {offsets = [0, 24], sizes = [2, 8], strides = [1, 1]} : vector<2x32xf32> to vector<2x8xf32>
    %204 = arith.negf %203 : vector<2x8xf32>
    %205 = math.exp %204 : vector<2x8xf32>
    %cst_46 = arith.constant 1.000000e+00 : f32
    %206 = vector.broadcast %cst_46 : f32 to vector<2x8xf32>
    %207 = arith.addf %206, %205 : vector<2x8xf32>
    %208 = arith.divf %206, %207 : vector<2x8xf32>
    %209 = arith.mulf %200, %182 : vector<2x8xf32>
    %210 = arith.mulf %194, %202 : vector<2x8xf32>
    %211 = arith.addf %209, %210 : vector<2x8xf32>
    %212 = math.tanh %211 : vector<2x8xf32>
    %213 = arith.mulf %208, %212 : vector<2x8xf32>
    %c12 = arith.constant 12 : index
    %c0_47 = arith.constant 0 : index
    %214 = vector.load %arg19[%c12, %c0_47] : memref<16x8xf32, #tpu.memory_space<vmem>>, vector<2x8xf32>
    tpu.vector_store %arg19[%c12, %c0_47], %213 {strides = array<i32>} : memref<16x8xf32, #tpu.memory_space<vmem>>, vector<2x8xf32>,
    %215 = vector.extract_strided_slice %7 {offsets = [14, 0], sizes = [2, 32], strides = [1, 1]} : vector<16x32xf32> to vector<2x32xf32>
    %cst_48 = arith.constant dense<0.000000e+00> : vector<2x32xf32>
    %216 = tpu.matmul %213, %9, %cst_48 {dimension_numbers = #tpu.dot_dimension_numbers<[1], [0], [0], [1], [0, 0, 1, 1], [], []>} : vector<2x8xf32>, vector<8x32xf32>, vector<2x32xf32> -> vector<2x32xf32>
    %217 = arith.addf %215, %216 : vector<2x32xf32>
    %218 = vector.extract_strided_slice %217 {offsets = [0, 0], sizes = [2, 8], strides = [1, 1]} : vector<2x32xf32> to vector<2x8xf32>
    %219 = arith.negf %218 : vector<2x8xf32>
    %220 = math.exp %219 : vector<2x8xf32>
    %cst_49 = arith.constant 1.000000e+00 : f32
    %221 = vector.broadcast %cst_49 : f32 to vector<2x8xf32>
    %222 = arith.addf %221, %220 : vector<2x8xf32>
    %223 = arith.divf %221, %222 : vector<2x8xf32>
    %224 = vector.extract_strided_slice %217 {offsets = [0, 8], sizes = [2, 8], strides = [1, 1]} : vector<2x32xf32> to vector<2x8xf32>
    %225 = arith.negf %224 : vector<2x8xf32>
    %226 = math.exp %225 : vector<2x8xf32>
    %cst_50 = arith.constant 1.000000e+00 : f32
    %227 = vector.broadcast %cst_50 : f32 to vector<2x8xf32>
    %228 = arith.addf %227, %226 : vector<2x8xf32>
    %229 = arith.divf %227, %228 : vector<2x8xf32>
    %230 = vector.extract_strided_slice %217 {offsets = [0, 16], sizes = [2, 8], strides = [1, 1]} : vector<2x32xf32> to vector<2x8xf32>
    %231 = math.tanh %230 : vector<2x8xf32>
    %232 = vector.extract_strided_slice %217 {offsets = [0, 24], sizes = [2, 8], strides = [1, 1]} : vector<2x32xf32> to vector<2x8xf32>
    %233 = arith.negf %232 : vector<2x8xf32>
    %234 = math.exp %233 : vector<2x8xf32>
    %cst_51 = arith.constant 1.000000e+00 : f32
    %235 = vector.broadcast %cst_51 : f32 to vector<2x8xf32>
    %236 = arith.addf %235, %234 : vector<2x8xf32>
    %237 = arith.divf %235, %236 : vector<2x8xf32>
    %238 = arith.mulf %229, %211 : vector<2x8xf32>
    %239 = arith.mulf %223, %231 : vector<2x8xf32>
    %240 = arith.addf %238, %239 : vector<2x8xf32>
    %241 = math.tanh %240 : vector<2x8xf32>
    %242 = arith.mulf %237, %241 : vector<2x8xf32>
    %c14 = arith.constant 14 : index
    %c0_52 = arith.constant 0 : index
    %243 = vector.load %arg19[%c14, %c0_52] : memref<16x8xf32, #tpu.memory_space<vmem>>, vector<2x8xf32>
    tpu.vector_store %arg19[%c14, %c0_52], %242 {strides = array<i32>} : memref<16x8xf32, #tpu.memory_space<vmem>>, vector<2x8xf32>,
    %c0_53 = arith.constant 0 : index
    %c0_54 = arith.constant 0 : index
    %244 = vector.load %arg19[%c0_53, %c0_54] : memref<16x8xf32, #tpu.memory_space<vmem>>, vector<16x8xf32>
    %c0_55 = arith.constant 0 : index
    %c0_56 = arith.constant 0 : index
    %c0_57 = arith.constant 0 : index
    %245 = vector.load %arg6[%c0_55, %c0_56, %c0_57] : memref<1x8x32xf32, #tpu.memory_space<vmem>>, vector<1x8x32xf32>
    %246 = vector.shape_cast %245 : vector<1x8x32xf32> to vector<8x32xf32>
    %cst_58 = arith.constant dense<0.000000e+00> : vector<16x32xf32>
    %247 = tpu.matmul %244, %246, %cst_58 {dimension_numbers = #tpu.dot_dimension_numbers<[1], [0], [0], [1], [0, 0, 1, 1], [], []>} : vector<16x8xf32>, vector<8x32xf32>, vector<16x32xf32> -> vector<16x32xf32>
    %c0_59 = arith.constant 0 : index
    %c0_60 = arith.constant 0 : index
    %c0_61 = arith.constant 0 : index
    %248 = vector.load %arg7[%c0_59, %c0_60, %c0_61] : memref<1x1x32xf32, #tpu.memory_space<vmem>>, vector<1x1x32xf32>
    %249 = vector.shape_cast %248 : vector<1x1x32xf32> to vector<1x32xf32>
    %250 = vector.broadcast %249 : vector<1x32xf32> to vector<16x32xf32>
    %251 = arith.addf %247, %250 : vector<16x32xf32>
    %c0_62 = arith.constant 0 : index
    %c0_63 = arith.constant 0 : index
    %252 = vector.load %arg20[%c0_62, %c0_63] : memref<16x32xf32, #tpu.memory_space<vmem>>, vector<16x32xf32>
    tpu.vector_store %arg20[%c0_62, %c0_63], %251 {strides = array<i32>} : memref<16x32xf32, #tpu.memory_space<vmem>>, vector<16x32xf32>,
    %c0_64 = arith.constant 0 : index
    %c0_65 = arith.constant 0 : index
    %253 = vector.load %arg20[%c0_64, %c0_65] : memref<16x32xf32, #tpu.memory_space<vmem>>, vector<16x32xf32>
    %c0_66 = arith.constant 0 : index
    %c0_67 = arith.constant 0 : index
    %c0_68 = arith.constant 0 : index
    %254 = vector.load %arg8[%c0_66, %c0_67, %c0_68] : memref<1x32x32xf32, #tpu.memory_space<vmem>>, vector<1x32x32xf32>
    %255 = vector.shape_cast %254 : vector<1x32x32xf32> to vector<32x32xf32>
    %cst_69 = arith.constant dense<0.000000e+00> : vector<16x32xf32>
    %256 = tpu.matmul %253, %255, %cst_69 {dimension_numbers = #tpu.dot_dimension_numbers<[1], [0], [0], [1], [0, 0, 1, 1], [], []>} : vector<16x32xf32>, vector<32x32xf32>, vector<16x32xf32> -> vector<16x32xf32>
    %c0_70 = arith.constant 0 : index
    %c0_71 = arith.constant 0 : index
    %c0_72 = arith.constant 0 : index
    %257 = vector.load %arg10[%c0_70, %c0_71, %c0_72] : memref<1x1x32xf32, #tpu.memory_space<vmem>>, vector<1x1x32xf32>
    %258 = vector.shape_cast %257 : vector<1x1x32xf32> to vector<1x32xf32>
    %259 = vector.broadcast %258 : vector<1x32xf32> to vector<16x32xf32>
    %260 = arith.addf %256, %259 : vector<16x32xf32>
    %c0_73 = arith.constant 0 : index
    %c0_74 = arith.constant 0 : index
    %c0_75 = arith.constant 0 : index
    %261 = vector.load %arg9[%c0_73, %c0_74, %c0_75] : memref<1x8x32xf32, #tpu.memory_space<vmem>>, vector<1x8x32xf32>
    %262 = vector.shape_cast %261 : vector<1x8x32xf32> to vector<8x32xf32>
    %cst_76 = arith.constant 0.000000e+00 : f32
    %263 = vector.broadcast %cst_76 : f32 to vector<2x8xf32>
    %cst_77 = arith.constant 0.000000e+00 : f32
    %264 = vector.broadcast %cst_77 : f32 to vector<2x8xf32>
    %265 = vector.extract_strided_slice %260 {offsets = [0, 0], sizes = [2, 32], strides = [1, 1]} : vector<16x32xf32> to vector<2x32xf32>
    %cst_78 = arith.constant dense<0.000000e+00> : vector<2x32xf32>
    %266 = tpu.matmul %263, %262, %cst_78 {dimension_numbers = #tpu.dot_dimension_numbers<[1], [0], [0], [1], [0, 0, 1, 1], [], []>} : vector<2x8xf32>, vector<8x32xf32>, vector<2x32xf32> -> vector<2x32xf32>
    %267 = arith.addf %265, %266 : vector<2x32xf32>
    %268 = vector.extract_strided_slice %267 {offsets = [0, 0], sizes = [2, 8], strides = [1, 1]} : vector<2x32xf32> to vector<2x8xf32>
    %269 = arith.negf %268 : vector<2x8xf32>
    %270 = math.exp %269 : vector<2x8xf32>
    %cst_79 = arith.constant 1.000000e+00 : f32
    %271 = vector.broadcast %cst_79 : f32 to vector<2x8xf32>
    %272 = arith.addf %271, %270 : vector<2x8xf32>
    %273 = arith.divf %271, %272 : vector<2x8xf32>
    %274 = vector.extract_strided_slice %267 {offsets = [0, 8], sizes = [2, 8], strides = [1, 1]} : vector<2x32xf32> to vector<2x8xf32>
    %275 = arith.negf %274 : vector<2x8xf32>
    %276 = math.exp %275 : vector<2x8xf32>
    %cst_80 = arith.constant 1.000000e+00 : f32
    %277 = vector.broadcast %cst_80 : f32 to vector<2x8xf32>
    %278 = arith.addf %277, %276 : vector<2x8xf32>
    %279 = arith.divf %277, %278 : vector<2x8xf32>
    %280 = vector.extract_strided_slice %267 {offsets = [0, 16], sizes = [2, 8], strides = [1, 1]} : vector<2x32xf32> to vector<2x8xf32>
    %281 = math.tanh %280 : vector<2x8xf32>
    %282 = vector.extract_strided_slice %267 {offsets = [0, 24], sizes = [2, 8], strides = [1, 1]} : vector<2x32xf32> to vector<2x8xf32>
    %283 = arith.negf %282 : vector<2x8xf32>
    %284 = math.exp %283 : vector<2x8xf32>
    %cst_81 = arith.constant 1.000000e+00 : f32
    %285 = vector.broadcast %cst_81 : f32 to vector<2x8xf32>
    %286 = arith.addf %285, %284 : vector<2x8xf32>
    %287 = arith.divf %285, %286 : vector<2x8xf32>
    %288 = arith.mulf %279, %264 : vector<2x8xf32>
    %289 = arith.mulf %273, %281 : vector<2x8xf32>
    %290 = arith.addf %288, %289 : vector<2x8xf32>
    %291 = math.tanh %290 : vector<2x8xf32>
    %292 = arith.mulf %287, %291 : vector<2x8xf32>
    %c0_82 = arith.constant 0 : index
    %c0_83 = arith.constant 0 : index
    %c0_84 = arith.constant 0 : index
    %293 = vector.load %arg17[%c0_82, %c0_83, %c0_84] : memref<1x16x8xf32, #tpu.memory_space<vmem>>, vector<1x2x8xf32>
    %294 = vector.shape_cast %293 : vector<1x2x8xf32> to vector<2x8xf32>
    %295 = vector.shape_cast %292 : vector<2x8xf32> to vector<1x2x8xf32>
    tpu.vector_store %arg17[%c0_82, %c0_83, %c0_84], %295 {strides = array<i32>} : memref<1x16x8xf32, #tpu.memory_space<vmem>>, vector<1x2x8xf32>,
    %296 = vector.extract_strided_slice %260 {offsets = [2, 0], sizes = [2, 32], strides = [1, 1]} : vector<16x32xf32> to vector<2x32xf32>
    %cst_85 = arith.constant dense<0.000000e+00> : vector<2x32xf32>
    %297 = tpu.matmul %292, %262, %cst_85 {dimension_numbers = #tpu.dot_dimension_numbers<[1], [0], [0], [1], [0, 0, 1, 1], [], []>} : vector<2x8xf32>, vector<8x32xf32>, vector<2x32xf32> -> vector<2x32xf32>
    %298 = arith.addf %296, %297 : vector<2x32xf32>
    %299 = vector.extract_strided_slice %298 {offsets = [0, 0], sizes = [2, 8], strides = [1, 1]} : vector<2x32xf32> to vector<2x8xf32>
    %300 = arith.negf %299 : vector<2x8xf32>
    %301 = math.exp %300 : vector<2x8xf32>
    %cst_86 = arith.constant 1.000000e+00 : f32
    %302 = vector.broadcast %cst_86 : f32 to vector<2x8xf32>
    %303 = arith.addf %302, %301 : vector<2x8xf32>
    %304 = arith.divf %302, %303 : vector<2x8xf32>
    %305 = vector.extract_strided_slice %298 {offsets = [0, 8], sizes = [2, 8], strides = [1, 1]} : vector<2x32xf32> to vector<2x8xf32>
    %306 = arith.negf %305 : vector<2x8xf32>
    %307 = math.exp %306 : vector<2x8xf32>
    %cst_87 = arith.constant 1.000000e+00 : f32
    %308 = vector.broadcast %cst_87 : f32 to vector<2x8xf32>
    %309 = arith.addf %308, %307 : vector<2x8xf32>
    %310 = arith.divf %308, %309 : vector<2x8xf32>
    %311 = vector.extract_strided_slice %298 {offsets = [0, 16], sizes = [2, 8], strides = [1, 1]} : vector<2x32xf32> to vector<2x8xf32>
    %312 = math.tanh %311 : vector<2x8xf32>
    %313 = vector.extract_strided_slice %298 {offsets = [0, 24], sizes = [2, 8], strides = [1, 1]} : vector<2x32xf32> to vector<2x8xf32>
    %314 = arith.negf %313 : vector<2x8xf32>
    %315 = math.exp %314 : vector<2x8xf32>
    %cst_88 = arith.constant 1.000000e+00 : f32
    %316 = vector.broadcast %cst_88 : f32 to vector<2x8xf32>
    %317 = arith.addf %316, %315 : vector<2x8xf32>
    %318 = arith.divf %316, %317 : vector<2x8xf32>
    %319 = arith.mulf %310, %290 : vector<2x8xf32>
    %320 = arith.mulf %304, %312 : vector<2x8xf32>
    %321 = arith.addf %319, %320 : vector<2x8xf32>
    %322 = math.tanh %321 : vector<2x8xf32>
    %323 = arith.mulf %318, %322 : vector<2x8xf32>
    %c0_89 = arith.constant 0 : index
    %c2_90 = arith.constant 2 : index
    %c0_91 = arith.constant 0 : index
    %324 = vector.load %arg17[%c0_89, %c2_90, %c0_91] : memref<1x16x8xf32, #tpu.memory_space<vmem>>, vector<1x2x8xf32>
    %325 = vector.shape_cast %324 : vector<1x2x8xf32> to vector<2x8xf32>
    %326 = vector.shape_cast %323 : vector<2x8xf32> to vector<1x2x8xf32>
    tpu.vector_store %arg17[%c0_89, %c2_90, %c0_91], %326 {strides = array<i32>} : memref<1x16x8xf32, #tpu.memory_space<vmem>>, vector<1x2x8xf32>,
    %327 = vector.extract_strided_slice %260 {offsets = [4, 0], sizes = [2, 32], strides = [1, 1]} : vector<16x32xf32> to vector<2x32xf32>
    %cst_92 = arith.constant dense<0.000000e+00> : vector<2x32xf32>
    %328 = tpu.matmul %323, %262, %cst_92 {dimension_numbers = #tpu.dot_dimension_numbers<[1], [0], [0], [1], [0, 0, 1, 1], [], []>} : vector<2x8xf32>, vector<8x32xf32>, vector<2x32xf32> -> vector<2x32xf32>
    %329 = arith.addf %327, %328 : vector<2x32xf32>
    %330 = vector.extract_strided_slice %329 {offsets = [0, 0], sizes = [2, 8], strides = [1, 1]} : vector<2x32xf32> to vector<2x8xf32>
    %331 = arith.negf %330 : vector<2x8xf32>
    %332 = math.exp %331 : vector<2x8xf32>
    %cst_93 = arith.constant 1.000000e+00 : f32
    %333 = vector.broadcast %cst_93 : f32 to vector<2x8xf32>
    %334 = arith.addf %333, %332 : vector<2x8xf32>
    %335 = arith.divf %333, %334 : vector<2x8xf32>
    %336 = vector.extract_strided_slice %329 {offsets = [0, 8], sizes = [2, 8], strides = [1, 1]} : vector<2x32xf32> to vector<2x8xf32>
    %337 = arith.negf %336 : vector<2x8xf32>
    %338 = math.exp %337 : vector<2x8xf32>
    %cst_94 = arith.constant 1.000000e+00 : f32
    %339 = vector.broadcast %cst_94 : f32 to vector<2x8xf32>
    %340 = arith.addf %339, %338 : vector<2x8xf32>
    %341 = arith.divf %339, %340 : vector<2x8xf32>
    %342 = vector.extract_strided_slice %329 {offsets = [0, 16], sizes = [2, 8], strides = [1, 1]} : vector<2x32xf32> to vector<2x8xf32>
    %343 = math.tanh %342 : vector<2x8xf32>
    %344 = vector.extract_strided_slice %329 {offsets = [0, 24], sizes = [2, 8], strides = [1, 1]} : vector<2x32xf32> to vector<2x8xf32>
    %345 = arith.negf %344 : vector<2x8xf32>
    %346 = math.exp %345 : vector<2x8xf32>
    %cst_95 = arith.constant 1.000000e+00 : f32
    %347 = vector.broadcast %cst_95 : f32 to vector<2x8xf32>
    %348 = arith.addf %347, %346 : vector<2x8xf32>
    %349 = arith.divf %347, %348 : vector<2x8xf32>
    %350 = arith.mulf %341, %321 : vector<2x8xf32>
    %351 = arith.mulf %335, %343 : vector<2x8xf32>
    %352 = arith.addf %350, %351 : vector<2x8xf32>
    %353 = math.tanh %352 : vector<2x8xf32>
    %354 = arith.mulf %349, %353 : vector<2x8xf32>
    %c0_96 = arith.constant 0 : index
    %c4_97 = arith.constant 4 : index
    %c0_98 = arith.constant 0 : index
    %355 = vector.load %arg17[%c0_96, %c4_97, %c0_98] : memref<1x16x8xf32, #tpu.memory_space<vmem>>, vector<1x2x8xf32>
    %356 = vector.shape_cast %355 : vector<1x2x8xf32> to vector<2x8xf32>
    %357 = vector.shape_cast %354 : vector<2x8xf32> to vector<1x2x8xf32>
    tpu.vector_store %arg17[%c0_96, %c4_97, %c0_98], %357 {strides = array<i32>} : memref<1x16x8xf32, #tpu.memory_space<vmem>>, vector<1x2x8xf32>,
    %358 = vector.extract_strided_slice %260 {offsets = [6, 0], sizes = [2, 32], strides = [1, 1]} : vector<16x32xf32> to vector<2x32xf32>
    %cst_99 = arith.constant dense<0.000000e+00> : vector<2x32xf32>
    %359 = tpu.matmul %354, %262, %cst_99 {dimension_numbers = #tpu.dot_dimension_numbers<[1], [0], [0], [1], [0, 0, 1, 1], [], []>} : vector<2x8xf32>, vector<8x32xf32>, vector<2x32xf32> -> vector<2x32xf32>
    %360 = arith.addf %358, %359 : vector<2x32xf32>
    %361 = vector.extract_strided_slice %360 {offsets = [0, 0], sizes = [2, 8], strides = [1, 1]} : vector<2x32xf32> to vector<2x8xf32>
    %362 = arith.negf %361 : vector<2x8xf32>
    %363 = math.exp %362 : vector<2x8xf32>
    %cst_100 = arith.constant 1.000000e+00 : f32
    %364 = vector.broadcast %cst_100 : f32 to vector<2x8xf32>
    %365 = arith.addf %364, %363 : vector<2x8xf32>
    %366 = arith.divf %364, %365 : vector<2x8xf32>
    %367 = vector.extract_strided_slice %360 {offsets = [0, 8], sizes = [2, 8], strides = [1, 1]} : vector<2x32xf32> to vector<2x8xf32>
    %368 = arith.negf %367 : vector<2x8xf32>
    %369 = math.exp %368 : vector<2x8xf32>
    %cst_101 = arith.constant 1.000000e+00 : f32
    %370 = vector.broadcast %cst_101 : f32 to vector<2x8xf32>
    %371 = arith.addf %370, %369 : vector<2x8xf32>
    %372 = arith.divf %370, %371 : vector<2x8xf32>
    %373 = vector.extract_strided_slice %360 {offsets = [0, 16], sizes = [2, 8], strides = [1, 1]} : vector<2x32xf32> to vector<2x8xf32>
    %374 = math.tanh %373 : vector<2x8xf32>
    %375 = vector.extract_strided_slice %360 {offsets = [0, 24], sizes = [2, 8], strides = [1, 1]} : vector<2x32xf32> to vector<2x8xf32>
    %376 = arith.negf %375 : vector<2x8xf32>
    %377 = math.exp %376 : vector<2x8xf32>
    %cst_102 = arith.constant 1.000000e+00 : f32
    %378 = vector.broadcast %cst_102 : f32 to vector<2x8xf32>
    %379 = arith.addf %378, %377 : vector<2x8xf32>
    %380 = arith.divf %378, %379 : vector<2x8xf32>
    %381 = arith.mulf %372, %352 : vector<2x8xf32>
    %382 = arith.mulf %366, %374 : vector<2x8xf32>
    %383 = arith.addf %381, %382 : vector<2x8xf32>
    %384 = math.tanh %383 : vector<2x8xf32>
    %385 = arith.mulf %380, %384 : vector<2x8xf32>
    %c0_103 = arith.constant 0 : index
    %c6_104 = arith.constant 6 : index
    %c0_105 = arith.constant 0 : index
    %386 = vector.load %arg17[%c0_103, %c6_104, %c0_105] : memref<1x16x8xf32, #tpu.memory_space<vmem>>, vector<1x2x8xf32>
    %387 = vector.shape_cast %386 : vector<1x2x8xf32> to vector<2x8xf32>
    %388 = vector.shape_cast %385 : vector<2x8xf32> to vector<1x2x8xf32>
    tpu.vector_store %arg17[%c0_103, %c6_104, %c0_105], %388 {strides = array<i32>} : memref<1x16x8xf32, #tpu.memory_space<vmem>>, vector<1x2x8xf32>,
    %389 = vector.extract_strided_slice %260 {offsets = [8, 0], sizes = [2, 32], strides = [1, 1]} : vector<16x32xf32> to vector<2x32xf32>
    %cst_106 = arith.constant dense<0.000000e+00> : vector<2x32xf32>
    %390 = tpu.matmul %385, %262, %cst_106 {dimension_numbers = #tpu.dot_dimension_numbers<[1], [0], [0], [1], [0, 0, 1, 1], [], []>} : vector<2x8xf32>, vector<8x32xf32>, vector<2x32xf32> -> vector<2x32xf32>
    %391 = arith.addf %389, %390 : vector<2x32xf32>
    %392 = vector.extract_strided_slice %391 {offsets = [0, 0], sizes = [2, 8], strides = [1, 1]} : vector<2x32xf32> to vector<2x8xf32>
    %393 = arith.negf %392 : vector<2x8xf32>
    %394 = math.exp %393 : vector<2x8xf32>
    %cst_107 = arith.constant 1.000000e+00 : f32
    %395 = vector.broadcast %cst_107 : f32 to vector<2x8xf32>
    %396 = arith.addf %395, %394 : vector<2x8xf32>
    %397 = arith.divf %395, %396 : vector<2x8xf32>
    %398 = vector.extract_strided_slice %391 {offsets = [0, 8], sizes = [2, 8], strides = [1, 1]} : vector<2x32xf32> to vector<2x8xf32>
    %399 = arith.negf %398 : vector<2x8xf32>
    %400 = math.exp %399 : vector<2x8xf32>
    %cst_108 = arith.constant 1.000000e+00 : f32
    %401 = vector.broadcast %cst_108 : f32 to vector<2x8xf32>
    %402 = arith.addf %401, %400 : vector<2x8xf32>
    %403 = arith.divf %401, %402 : vector<2x8xf32>
    %404 = vector.extract_strided_slice %391 {offsets = [0, 16], sizes = [2, 8], strides = [1, 1]} : vector<2x32xf32> to vector<2x8xf32>
    %405 = math.tanh %404 : vector<2x8xf32>
    %406 = vector.extract_strided_slice %391 {offsets = [0, 24], sizes = [2, 8], strides = [1, 1]} : vector<2x32xf32> to vector<2x8xf32>
    %407 = arith.negf %406 : vector<2x8xf32>
    %408 = math.exp %407 : vector<2x8xf32>
    %cst_109 = arith.constant 1.000000e+00 : f32
    %409 = vector.broadcast %cst_109 : f32 to vector<2x8xf32>
    %410 = arith.addf %409, %408 : vector<2x8xf32>
    %411 = arith.divf %409, %410 : vector<2x8xf32>
    %412 = arith.mulf %403, %383 : vector<2x8xf32>
    %413 = arith.mulf %397, %405 : vector<2x8xf32>
    %414 = arith.addf %412, %413 : vector<2x8xf32>
    %415 = math.tanh %414 : vector<2x8xf32>
    %416 = arith.mulf %411, %415 : vector<2x8xf32>
    %c0_110 = arith.constant 0 : index
    %c8_111 = arith.constant 8 : index
    %c0_112 = arith.constant 0 : index
    %417 = vector.load %arg17[%c0_110, %c8_111, %c0_112] : memref<1x16x8xf32, #tpu.memory_space<vmem>>, vector<1x2x8xf32>
    %418 = vector.shape_cast %417 : vector<1x2x8xf32> to vector<2x8xf32>
    %419 = vector.shape_cast %416 : vector<2x8xf32> to vector<1x2x8xf32>
    tpu.vector_store %arg17[%c0_110, %c8_111, %c0_112], %419 {strides = array<i32>} : memref<1x16x8xf32, #tpu.memory_space<vmem>>, vector<1x2x8xf32>,
    %420 = vector.extract_strided_slice %260 {offsets = [10, 0], sizes = [2, 32], strides = [1, 1]} : vector<16x32xf32> to vector<2x32xf32>
    %cst_113 = arith.constant dense<0.000000e+00> : vector<2x32xf32>
    %421 = tpu.matmul %416, %262, %cst_113 {dimension_numbers = #tpu.dot_dimension_numbers<[1], [0], [0], [1], [0, 0, 1, 1], [], []>} : vector<2x8xf32>, vector<8x32xf32>, vector<2x32xf32> -> vector<2x32xf32>
    %422 = arith.addf %420, %421 : vector<2x32xf32>
    %423 = vector.extract_strided_slice %422 {offsets = [0, 0], sizes = [2, 8], strides = [1, 1]} : vector<2x32xf32> to vector<2x8xf32>
    %424 = arith.negf %423 : vector<2x8xf32>
    %425 = math.exp %424 : vector<2x8xf32>
    %cst_114 = arith.constant 1.000000e+00 : f32
    %426 = vector.broadcast %cst_114 : f32 to vector<2x8xf32>
    %427 = arith.addf %426, %425 : vector<2x8xf32>
    %428 = arith.divf %426, %427 : vector<2x8xf32>
    %429 = vector.extract_strided_slice %422 {offsets = [0, 8], sizes = [2, 8], strides = [1, 1]} : vector<2x32xf32> to vector<2x8xf32>
    %430 = arith.negf %429 : vector<2x8xf32>
    %431 = math.exp %430 : vector<2x8xf32>
    %cst_115 = arith.constant 1.000000e+00 : f32
    %432 = vector.broadcast %cst_115 : f32 to vector<2x8xf32>
    %433 = arith.addf %432, %431 : vector<2x8xf32>
    %434 = arith.divf %432, %433 : vector<2x8xf32>
    %435 = vector.extract_strided_slice %422 {offsets = [0, 16], sizes = [2, 8], strides = [1, 1]} : vector<2x32xf32> to vector<2x8xf32>
    %436 = math.tanh %435 : vector<2x8xf32>
    %437 = vector.extract_strided_slice %422 {offsets = [0, 24], sizes = [2, 8], strides = [1, 1]} : vector<2x32xf32> to vector<2x8xf32>
    %438 = arith.negf %437 : vector<2x8xf32>
    %439 = math.exp %438 : vector<2x8xf32>
    %cst_116 = arith.constant 1.000000e+00 : f32
    %440 = vector.broadcast %cst_116 : f32 to vector<2x8xf32>
    %441 = arith.addf %440, %439 : vector<2x8xf32>
    %442 = arith.divf %440, %441 : vector<2x8xf32>
    %443 = arith.mulf %434, %414 : vector<2x8xf32>
    %444 = arith.mulf %428, %436 : vector<2x8xf32>
    %445 = arith.addf %443, %444 : vector<2x8xf32>
    %446 = math.tanh %445 : vector<2x8xf32>
    %447 = arith.mulf %442, %446 : vector<2x8xf32>
    %c0_117 = arith.constant 0 : index
    %c10_118 = arith.constant 10 : index
    %c0_119 = arith.constant 0 : index
    %448 = vector.load %arg17[%c0_117, %c10_118, %c0_119] : memref<1x16x8xf32, #tpu.memory_space<vmem>>, vector<1x2x8xf32>
    %449 = vector.shape_cast %448 : vector<1x2x8xf32> to vector<2x8xf32>
    %450 = vector.shape_cast %447 : vector<2x8xf32> to vector<1x2x8xf32>
    tpu.vector_store %arg17[%c0_117, %c10_118, %c0_119], %450 {strides = array<i32>} : memref<1x16x8xf32, #tpu.memory_space<vmem>>, vector<1x2x8xf32>,
    %451 = vector.extract_strided_slice %260 {offsets = [12, 0], sizes = [2, 32], strides = [1, 1]} : vector<16x32xf32> to vector<2x32xf32>
    %cst_120 = arith.constant dense<0.000000e+00> : vector<2x32xf32>
    %452 = tpu.matmul %447, %262, %cst_120 {dimension_numbers = #tpu.dot_dimension_numbers<[1], [0], [0], [1], [0, 0, 1, 1], [], []>} : vector<2x8xf32>, vector<8x32xf32>, vector<2x32xf32> -> vector<2x32xf32>
    %453 = arith.addf %451, %452 : vector<2x32xf32>
    %454 = vector.extract_strided_slice %453 {offsets = [0, 0], sizes = [2, 8], strides = [1, 1]} : vector<2x32xf32> to vector<2x8xf32>
    %455 = arith.negf %454 : vector<2x8xf32>
    %456 = math.exp %455 : vector<2x8xf32>
    %cst_121 = arith.constant 1.000000e+00 : f32
    %457 = vector.broadcast %cst_121 : f32 to vector<2x8xf32>
    %458 = arith.addf %457, %456 : vector<2x8xf32>
    %459 = arith.divf %457, %458 : vector<2x8xf32>
    %460 = vector.extract_strided_slice %453 {offsets = [0, 8], sizes = [2, 8], strides = [1, 1]} : vector<2x32xf32> to vector<2x8xf32>
    %461 = arith.negf %460 : vector<2x8xf32>
    %462 = math.exp %461 : vector<2x8xf32>
    %cst_122 = arith.constant 1.000000e+00 : f32
    %463 = vector.broadcast %cst_122 : f32 to vector<2x8xf32>
    %464 = arith.addf %463, %462 : vector<2x8xf32>
    %465 = arith.divf %463, %464 : vector<2x8xf32>
    %466 = vector.extract_strided_slice %453 {offsets = [0, 16], sizes = [2, 8], strides = [1, 1]} : vector<2x32xf32> to vector<2x8xf32>
    %467 = math.tanh %466 : vector<2x8xf32>
    %468 = vector.extract_strided_slice %453 {offsets = [0, 24], sizes = [2, 8], strides = [1, 1]} : vector<2x32xf32> to vector<2x8xf32>
    %469 = arith.negf %468 : vector<2x8xf32>
    %470 = math.exp %469 : vector<2x8xf32>
    %cst_123 = arith.constant 1.000000e+00 : f32
    %471 = vector.broadcast %cst_123 : f32 to vector<2x8xf32>
    %472 = arith.addf %471, %470 : vector<2x8xf32>
    %473 = arith.divf %471, %472 : vector<2x8xf32>
    %474 = arith.mulf %465, %445 : vector<2x8xf32>
    %475 = arith.mulf %459, %467 : vector<2x8xf32>
    %476 = arith.addf %474, %475 : vector<2x8xf32>
    %477 = math.tanh %476 : vector<2x8xf32>
    %478 = arith.mulf %473, %477 : vector<2x8xf32>
    %c0_124 = arith.constant 0 : index
    %c12_125 = arith.constant 12 : index
    %c0_126 = arith.constant 0 : index
    %479 = vector.load %arg17[%c0_124, %c12_125, %c0_126] : memref<1x16x8xf32, #tpu.memory_space<vmem>>, vector<1x2x8xf32>
    %480 = vector.shape_cast %479 : vector<1x2x8xf32> to vector<2x8xf32>
    %481 = vector.shape_cast %478 : vector<2x8xf32> to vector<1x2x8xf32>
    tpu.vector_store %arg17[%c0_124, %c12_125, %c0_126], %481 {strides = array<i32>} : memref<1x16x8xf32, #tpu.memory_space<vmem>>, vector<1x2x8xf32>,
    %482 = vector.extract_strided_slice %260 {offsets = [14, 0], sizes = [2, 32], strides = [1, 1]} : vector<16x32xf32> to vector<2x32xf32>
    %cst_127 = arith.constant dense<0.000000e+00> : vector<2x32xf32>
    %483 = tpu.matmul %478, %262, %cst_127 {dimension_numbers = #tpu.dot_dimension_numbers<[1], [0], [0], [1], [0, 0, 1, 1], [], []>} : vector<2x8xf32>, vector<8x32xf32>, vector<2x32xf32> -> vector<2x32xf32>
    %484 = arith.addf %482, %483 : vector<2x32xf32>
    %485 = vector.extract_strided_slice %484 {offsets = [0, 0], sizes = [2, 8], strides = [1, 1]} : vector<2x32xf32> to vector<2x8xf32>
    %486 = arith.negf %485 : vector<2x8xf32>
    %487 = math.exp %486 : vector<2x8xf32>
    %cst_128 = arith.constant 1.000000e+00 : f32
    %488 = vector.broadcast %cst_128 : f32 to vector<2x8xf32>
    %489 = arith.addf %488, %487 : vector<2x8xf32>
    %490 = arith.divf %488, %489 : vector<2x8xf32>
    %491 = vector.extract_strided_slice %484 {offsets = [0, 8], sizes = [2, 8], strides = [1, 1]} : vector<2x32xf32> to vector<2x8xf32>
    %492 = arith.negf %491 : vector<2x8xf32>
    %493 = math.exp %492 : vector<2x8xf32>
    %cst_129 = arith.constant 1.000000e+00 : f32
    %494 = vector.broadcast %cst_129 : f32 to vector<2x8xf32>
    %495 = arith.addf %494, %493 : vector<2x8xf32>
    %496 = arith.divf %494, %495 : vector<2x8xf32>
    %497 = vector.extract_strided_slice %484 {offsets = [0, 16], sizes = [2, 8], strides = [1, 1]} : vector<2x32xf32> to vector<2x8xf32>
    %498 = math.tanh %497 : vector<2x8xf32>
    %499 = vector.extract_strided_slice %484 {offsets = [0, 24], sizes = [2, 8], strides = [1, 1]} : vector<2x32xf32> to vector<2x8xf32>
    %500 = arith.negf %499 : vector<2x8xf32>
    %501 = math.exp %500 : vector<2x8xf32>
    %cst_130 = arith.constant 1.000000e+00 : f32
    %502 = vector.broadcast %cst_130 : f32 to vector<2x8xf32>
    %503 = arith.addf %502, %501 : vector<2x8xf32>
    %504 = arith.divf %502, %503 : vector<2x8xf32>
    %505 = arith.mulf %496, %476 : vector<2x8xf32>
    %506 = arith.mulf %490, %498 : vector<2x8xf32>
    %507 = arith.addf %505, %506 : vector<2x8xf32>
    %508 = math.tanh %507 : vector<2x8xf32>
    %509 = arith.mulf %504, %508 : vector<2x8xf32>
    %c0_131 = arith.constant 0 : index
    %c14_132 = arith.constant 14 : index
    %c0_133 = arith.constant 0 : index
    %510 = vector.load %arg17[%c0_131, %c14_132, %c0_133] : memref<1x16x8xf32, #tpu.memory_space<vmem>>, vector<1x2x8xf32>
    %511 = vector.shape_cast %510 : vector<1x2x8xf32> to vector<2x8xf32>
    %512 = vector.shape_cast %509 : vector<2x8xf32> to vector<1x2x8xf32>
    tpu.vector_store %arg17[%c0_131, %c14_132, %c0_133], %512 {strides = array<i32>} : memref<1x16x8xf32, #tpu.memory_space<vmem>>, vector<1x2x8xf32>,
    %c0_134 = arith.constant 0 : index
    %c0_135 = arith.constant 0 : index
    %513 = vector.load %arg2[%c0_134, %c0_135] : memref<16x4xf32, #tpu.memory_space<vmem>>, vector<16x4xf32>
    %c0_136 = arith.constant 0 : index
    %c0_137 = arith.constant 0 : index
    %c0_138 = arith.constant 0 : index
    %514 = vector.load %arg11[%c0_136, %c0_137, %c0_138] : memref<1x4x32xf32, #tpu.memory_space<vmem>>, vector<1x4x32xf32>
    %515 = vector.shape_cast %514 : vector<1x4x32xf32> to vector<4x32xf32>
    %cst_139 = arith.constant dense<0.000000e+00> : vector<16x32xf32>
    %516 = tpu.matmul %513, %515, %cst_139 {dimension_numbers = #tpu.dot_dimension_numbers<[1], [0], [0], [1], [0, 0, 1, 1], [], []>} : vector<16x4xf32>, vector<4x32xf32>, vector<16x32xf32> -> vector<16x32xf32>
    %c0_140 = arith.constant 0 : index
    %c0_141 = arith.constant 0 : index
    %c0_142 = arith.constant 0 : index
    %517 = vector.load %arg12[%c0_140, %c0_141, %c0_142] : memref<1x1x32xf32, #tpu.memory_space<vmem>>, vector<1x1x32xf32>
    %518 = vector.shape_cast %517 : vector<1x1x32xf32> to vector<1x32xf32>
    %519 = vector.broadcast %518 : vector<1x32xf32> to vector<16x32xf32>
    %520 = arith.addf %516, %519 : vector<16x32xf32>
    %c0_143 = arith.constant 0 : index
    %c0_144 = arith.constant 0 : index
    %c0_145 = arith.constant 0 : index
    %521 = vector.load %arg13[%c0_143, %c0_144, %c0_145] : memref<1x32x32xf32, #tpu.memory_space<vmem>>, vector<1x32x32xf32>
    %522 = vector.shape_cast %521 : vector<1x32x32xf32> to vector<32x32xf32>
    %cst_146 = arith.constant dense<0.000000e+00> : vector<16x32xf32>
    %523 = tpu.matmul %520, %522, %cst_146 {dimension_numbers = #tpu.dot_dimension_numbers<[1], [0], [0], [1], [0, 0, 1, 1], [], []>} : vector<16x32xf32>, vector<32x32xf32>, vector<16x32xf32> -> vector<16x32xf32>
    %c0_147 = arith.constant 0 : index
    %c0_148 = arith.constant 0 : index
    %c0_149 = arith.constant 0 : index
    %524 = vector.load %arg14[%c0_147, %c0_148, %c0_149] : memref<1x1x32xf32, #tpu.memory_space<vmem>>, vector<1x1x32xf32>
    %525 = vector.shape_cast %524 : vector<1x1x32xf32> to vector<1x32xf32>
    %526 = vector.broadcast %525 : vector<1x32xf32> to vector<16x32xf32>
    %527 = arith.addf %523, %526 : vector<16x32xf32>
    %cst_150 = arith.constant 0.000000e+00 : f32
    %528 = vector.broadcast %cst_150 : f32 to vector<16x32xf32>
    %529 = arith.cmpf oge, %527, %528 : vector<16x32xf32>
    %cst_151 = arith.constant 0.00999999977 : f32
    %530 = vector.broadcast %cst_151 : f32 to vector<16x32xf32>
    %531 = arith.mulf %530, %527 : vector<16x32xf32>
    %532 = arith.select %529, %527, %531 : vector<16x32xi1>, vector<16x32xf32>
    %c0_152 = arith.constant 0 : index
    %c0_153 = arith.constant 0 : index
    %c0_154 = arith.constant 0 : index
    %533 = vector.load %arg15[%c0_152, %c0_153, %c0_154] : memref<1x32x8xf32, #tpu.memory_space<vmem>>, vector<1x32x8xf32>
    %534 = vector.shape_cast %533 : vector<1x32x8xf32> to vector<32x8xf32>
    %cst_155 = arith.constant dense<0.000000e+00> : vector<16x8xf32>
    %535 = tpu.matmul %532, %534, %cst_155 {dimension_numbers = #tpu.dot_dimension_numbers<[1], [0], [0], [1], [0, 0, 1, 1], [], []>} : vector<16x32xf32>, vector<32x8xf32>, vector<16x8xf32> -> vector<16x8xf32>
    %c0_156 = arith.constant 0 : index
    %c0_157 = arith.constant 0 : index
    %c0_158 = arith.constant 0 : index
    %536 = vector.load %arg16[%c0_156, %c0_157, %c0_158] : memref<1x1x8xf32, #tpu.memory_space<vmem>>, vector<1x1x8xf32>
    %537 = vector.shape_cast %536 : vector<1x1x8xf32> to vector<1x8xf32>
    %538 = vector.broadcast %537 : vector<1x8xf32> to vector<16x8xf32>
    %539 = arith.addf %535, %538 : vector<16x8xf32>
    %c0_159 = arith.constant 0 : index
    %c0_160 = arith.constant 0 : index
    %c0_161 = arith.constant 0 : index
    %540 = vector.load %arg18[%c0_159, %c0_160, %c0_161] : memref<1x16x8xf32, #tpu.memory_space<vmem>>, vector<1x16x8xf32>
    %541 = vector.shape_cast %540 : vector<1x16x8xf32> to vector<16x8xf32>
    %542 = vector.shape_cast %539 : vector<16x8xf32> to vector<1x16x8xf32>
    tpu.vector_store %arg18[%c0_159, %c0_160, %c0_161], %542 {strides = array<i32>} : memref<1x16x8xf32, #tpu.memory_space<vmem>>, vector<1x16x8xf32>,
    return
  }
  func.func @transform_0(%arg0: i32) -> (i32, i32) {
    %c0_i32 = arith.constant 0 : i32
    %c0_i32_0 = arith.constant 0 : i32
    %c0_i32_1 = arith.constant 0 : i32
    return %c0_i32, %c0_i32_0 : i32, i32
  }
  func.func @transform_1(%arg0: i32) -> (i32, i32) {
    %c0_i32 = arith.constant 0 : i32
    %c0_i32_0 = arith.constant 0 : i32
    %c0_i32_1 = arith.constant 0 : i32
    return %c0_i32, %c0_i32_0 : i32, i32
  }
  func.func @transform_2(%arg0: i32) -> (i32, i32, i32) {
    %c0_i32 = arith.constant 0 : i32
    %c0_i32_0 = arith.constant 0 : i32
    %c0_i32_1 = arith.constant 0 : i32
    return %arg0, %c0_i32, %c0_i32_0 : i32, i32, i32
  }
  func.func @transform_3(%arg0: i32) -> (i32, i32, i32) {
    %c0_i32 = arith.constant 0 : i32
    %c0_i32_0 = arith.constant 0 : i32
    %c0_i32_1 = arith.constant 0 : i32
    return %arg0, %c0_i32, %c0_i32_0 : i32, i32, i32
  }
  func.func @transform_4(%arg0: i32) -> (i32, i32, i32) {
    %c0_i32 = arith.constant 0 : i32
    %c0_i32_0 = arith.constant 0 : i32
    %c0_i32_1 = arith.constant 0 : i32
    return %arg0, %c0_i32, %c0_i32_0 : i32, i32, i32
  }
  func.func @transform_5(%arg0: i32) -> (i32, i32, i32) {
    %c0_i32 = arith.constant 0 : i32
    %c0_i32_0 = arith.constant 0 : i32
    %c0_i32_1 = arith.constant 0 : i32
    return %arg0, %c0_i32, %c0_i32_0 : i32, i32, i32
  }
  func.func @transform_6(%arg0: i32) -> (i32, i32, i32) {
    %c0_i32 = arith.constant 0 : i32
    %c0_i32_0 = arith.constant 0 : i32
    %c0_i32_1 = arith.constant 0 : i32
    return %arg0, %c0_i32, %c0_i32_0 : i32, i32, i32
  }
  func.func @transform_7(%arg0: i32) -> (i32, i32, i32) {
    %c0_i32 = arith.constant 0 : i32
    %c0_i32_0 = arith.constant 0 : i32
    %c0_i32_1 = arith.constant 0 : i32
    return %arg0, %c0_i32, %c0_i32_0 : i32, i32, i32
  }
  func.func @transform_8(%arg0: i32) -> (i32, i32, i32) {
    %c0_i32 = arith.constant 0 : i32
    %c0_i32_0 = arith.constant 0 : i32
    %c0_i32_1 = arith.constant 0 : i32
    return %arg0, %c0_i32, %c0_i32_0 : i32, i32, i32
  }
  func.func @transform_9(%arg0: i32) -> (i32, i32, i32) {
    %c0_i32 = arith.constant 0 : i32
    %c0_i32_0 = arith.constant 0 : i32
    %c0_i32_1 = arith.constant 0 : i32
    return %arg0, %c0_i32, %c0_i32_0 : i32, i32, i32
  }
  func.func @transform_10(%arg0: i32) -> (i32, i32, i32) {
    %c0_i32 = arith.constant 0 : i32
    %c0_i32_0 = arith.constant 0 : i32
    %c0_i32_1 = arith.constant 0 : i32
    return %arg0, %c0_i32, %c0_i32_0 : i32, i32, i32
  }
  func.func @transform_11(%arg0: i32) -> (i32, i32, i32) {
    %c0_i32 = arith.constant 0 : i32
    %c0_i32_0 = arith.constant 0 : i32
    %c0_i32_1 = arith.constant 0 : i32
    return %arg0, %c0_i32, %c0_i32_0 : i32, i32, i32
  }
  func.func @transform_12(%arg0: i32) -> (i32, i32, i32) {
    %c0_i32 = arith.constant 0 : i32
    %c0_i32_0 = arith.constant 0 : i32
    %c0_i32_1 = arith.constant 0 : i32
    return %arg0, %c0_i32, %c0_i32_0 : i32, i32, i32
  }
  func.func @transform_13(%arg0: i32) -> (i32, i32, i32) {
    %c0_i32 = arith.constant 0 : i32
    %c0_i32_0 = arith.constant 0 : i32
    %c0_i32_1 = arith.constant 0 : i32
    return %arg0, %c0_i32, %c0_i32_0 : i32, i32, i32
  }
  func.func @transform_14(%arg0: i32) -> (i32, i32, i32) {
    %c0_i32 = arith.constant 0 : i32
    %c0_i32_0 = arith.constant 0 : i32
    %c0_i32_1 = arith.constant 0 : i32
    return %arg0, %c0_i32, %c0_i32_0 : i32, i32, i32
  }
  func.func @transform_15(%arg0: i32) -> (i32, i32, i32) {
    %c0_i32 = arith.constant 0 : i32
    %c0_i32_0 = arith.constant 0 : i32
    %c0_i32_1 = arith.constant 0 : i32
    return %arg0, %c0_i32, %c0_i32_0 : i32, i32, i32
  }
  func.func @transform_16(%arg0: i32) -> (i32, i32, i32) {
    %c0_i32 = arith.constant 0 : i32
    %c0_i32_0 = arith.constant 0 : i32
    %c0_i32_1 = arith.constant 0 : i32
    return %arg0, %c0_i32, %c0_i32_0 : i32, i32, i32
  }
  func.func @transform_17(%arg0: i32) -> (i32, i32, i32) {
    %c0_i32 = arith.constant 0 : i32
    %c0_i32_0 = arith.constant 0 : i32
    %c0_i32_1 = arith.constant 0 : i32
    return %arg0, %c0_i32, %c0_i32_0 : i32, i32, i32
  }
}

</mosaic_0001>

<bundles_post_ra>
// kernel: cdtvae_forward.7
= control target key start
LH: loop header
LB: loop body
LE: loop exit
PB: predicated region body
PF: predicated region fallthrough
CT: control target
= control target key end

     0   :  { %15 = vsyncpa [#allocation3], 0  ;;  %vm44_vm0 = vcmask 261120   ;;  %s627_s0 = inlined_call_operand.vmem [shape: f32[2,16,32], index: 0, kind: input, shape index: {}]   ;;  %s628_s1 = inlined_call_operand.vmem [shape: f32[2,32,4], index: 1, kind: input, shape index: {}]   ;;  %s629_s2 = inlined_call_operand.vmem [shape: f32[2,1,4], index: 2, kind: input, shape index: {}]   ;;  %s630_s3 = inlined_call_operand.vmem [shape: f32[16,4], index: 3, kind: input, shape index: {}]   ;;  %s631_s4 = inlined_call_operand.vmem [shape: f32[16,4], index: 4, kind: input, shape index: {}]   ;;  %s632_s5 = inlined_call_operand.vmem [shape: f32[2,16,8], index: 5, kind: input, shape index: {}]   ;;  %s633_s6 = inlined_call_operand.vmem [shape: f32[2,16,8], index: 6, kind: input, shape index: {}]   ;;  %s634_s7 = inlined_call_operand.vmem [shape: f32[16,4], index: 7, kind: output, shape index: {0}]   ;;  %s635_s8 = inlined_call_operand.hbm [shape: f32[1,1], index: 8, kind: output, shape index: {1}]   ;;  %s636_s9 = inlined_call_operand.hbm [shape: f32[1,1], index: 9, kind: output, shape index: {2}]  }
   0x1   :  { %v357_v0 = vld [vmem:[%s628_s1 + $0x20] sm:$0xff]  ;;  %v358_v1 = vld [vmem:[%s628_s1 + $0x28] sm:$0xff]  ;;  %v359_v2 = vld [vmem:[%s628_s1 + $0x30] sm:$0xff] }
   0x2   :  { %v411_v3 = vpack.c.bf16 %v358_v1, %v357_v0  ;;  %v360_v4 = vld [vmem:[%s628_s1 + $0x38] sm:$0xff]  ;;  %v355_v5 = vld [vmem:[%s627_s0 + $0x10] sm:$0xff]  ;;  %v33_v7 = vld [vmem:[%s628_s1] sm:$0xff] }
   0x3   :  { %v415_v6 = vpack.c.bf16 %v360_v4, %v359_v2  ;;  %400 = vmatprep.mubr.msk.f32.mxu1 %vm44_vm0, %v355_v5  ;;  %v34_v8 = vld [vmem:[%s628_s1 + $0x8] sm:$0xff]  ;;  %v35_v9 = vld [vmem:[%s628_s1 + $0x10] sm:$0xff]  ;;  %v36_v11 = vld [vmem:[%s628_s1 + $0x18] sm:$0xff] }
   0x4   :  { %412 = vmatprep.subr.bf16.mxu1 %v411_v3  ;;  %v403_v10 = vpack.c.bf16 %v34_v8, %v33_v7  ;;  %v31_v12 = vld [vmem:[%s627_s0] sm:$0xff]  ;;  %v407_v13 = vpack.c.bf16 %v36_v11, %v35_v9 }
   0x5   :  { %414 = vmatpush3.bf16.msra.mxu1 %v411_v3  ;;  %389 = vmatprep.mubr.msk.f32.mxu0 %vm44_vm0, %v31_v12 }
   0x6   :  { %16 = vsyncpa [#allocation5], 0  ;;  %416 = vmatprep.subr.bf16.mxu1 %v415_v6  ;;  %404 = vmatprep.subr.bf16.mxu0 %v403_v10  ;;  %v356_v14 = vld [vmem:[%s627_s0 + $0x18] sm:$0xff]  ;;  %v32_v15 = vld [vmem:[%s627_s0 + $0x8] sm:$0xff]  ;;  %vm305_vm1 = vcmask 64512   ;;  %vm235_vm2 = vcmask 31744  }
   0x7   :  { %406 = vmatpush3.bf16.msra.mxu0 %v403_v10  ;;  %v365_v16 = vld [vmem:[%s632_s5 + $0x10] sm:$0xff]  ;;  %v366_v17 = vld [vmem:[%s632_s5 + $0x18] sm:$0xff]  ;;  %v280_v20 = vld [vmem:[%s632_s5] sm:$0xff]  ;;  %s439_s18 = scalar_lea.hbm %s635_s8, 16 }
   0x8   :  { %408 = vmatprep.subr.bf16.mxu0 %v407_v13  ;;  %v291_v18 = vmul.f32 1.442695, %v365_v16  ;;  %v293_v19 = vmul.f32 1.442695, %v366_v17  ;;  %v281_v21 = vld [vmem:[%s632_s5 + $0x8] sm:$0xff]  ;;  %v285_v22 = vld [vmem:[%s633_s6] sm:$0xff]  ;;  %p440_p0 = scmp.ne.s32.totalorder %s635_s8, %s439_s18  ;;  %p443_p1 = scmp.lt.u32.totalorder %s439_s18, %s635_s8 }
   0x9   :  { %418 = vmatpush3.bf16.msra.mxu1 %v415_v6  ;;  %v286_v23 = vld [vmem:[%s633_s6 + $0x8] sm:$0xff]  ;;  %v287_v24 = vsub.f32 %v280_v20, %v285_v22  ;;  %v289_v32 = vmul.f32 -0.5, %v365_v16  ;;  %v290_v33 = vmul.f32 -0.5, %v366_v17  ;;  %v362_v43 = vld [vmem:[%s629_s2 + $0x1] ss:$0 sm:$0xff] }
   0xa   :  { %427 = vpow2.f32 %v291_v18  ;;  %v288_v25 = vsub.f32 %v281_v21, %v286_v23  ;;  %v352_v57 = vld [vmem:[%s629_s2] ss:$0 sm:$0xff]  ;;  %v230_v58 = vld [vmem:[%s631_s4 + $0x8] sm:$0xff]  ;;  %p445_p2 = pnand %p443_p1, %p440_p0 }
   0xb   :  { %410 = vmatpush3.bf16.msra.mxu0 %v407_v13  ;;  %429 = vpow2.f32 %v293_v19  ;;  %v295_v27 = vmul.f32 %v287_v24, %v287_v24  ;;  %v229_v60 = vld [vmem:[%s631_s4] sm:$0xff]  ;;  %v239_v4 = vld [vmem:[%s630_s3 + $0x8] sm:$0xff] }
   0xc   :  { %401 = vmatmul.mubr.msk.f32.vlgmr.msra.gmra.mrb[0].mxu1 %vm44_vm0, %v356_v14  ;;  %v296_v28 = vmul.f32 %v288_v25, %v288_v25  ;;  %v238_v5 = vld [vmem:[%s630_s3] sm:$0xff] }
   0xe   :  { %390 = vmatmul.mubr.msk.f32.vlgmr.msra.gmra.mrb[0].mxu0 %vm44_vm0, %v32_v15 }
  0x14   :  { %v428_v26 = vpop.eup %427 }
  0x15   :  { %v430_v29 = vpop.eup %429  ;;  %v297_v30 = vadd.f32 %v428_v26, %v295_v27 }
  0x16   :  { %v298_v31 = vadd.f32 %v430_v29, %v296_v28 }
  0x17   :  { %v299_v34 = vmul.f32 0.5, %v297_v30 }
  0x18   :  { %v300_v35 = vmul.f32 0.5, %v298_v31 }
  0x19   :  { %v301_v36 = vadd.f32 %v299_v34, %v289_v32 }
  0x1a   :  { %v302_v37 = vadd.f32 %v300_v35, %v290_v33 }
  0x1b   :  { %v367_v38 = vadd.f32 -0.5, %v301_v36 }
  0x1c   :  { %v368_v39 = vadd.f32 -0.5, %v302_v37 }
  0x1d   :  { %v306_v40 = vsel %vm305_vm1, %v367_v38, 0.0 }
  0x1e   :  { %v307_v41 = vsel %vm305_vm1, %v368_v39, 0.0 }
  0x1f   :  { %v308_v42 = vadd.f32 %v307_v41, %v306_v40 }
  0x21   :  { %309 = vadd.xlane.f32.xlu1 %v308_v42 }
  0xae   :  { %v310_v17 = vpop.xlane.xlu1 %309 }
  0xaf   :  { %v311_v18 = vrot.slane %v310_v17, 4 }
  0xb1   :  { %v312_v20 = vadd.f32 %v311_v18, %v310_v17 }
  0xb3   :  { %v313_v23 = vrot.slane %v312_v20, 2 }
  0xb5   :  { %v314_v29 = vadd.f32 %v313_v23, %v312_v20 }
  0xb7   :  { %v315_v34 = vrot.slane %v314_v29, 1 }
  0xb9   :  { %v316_v37 = vadd.f32 %v315_v34, %v314_v29 }
  0xdf   :  { %v402_v44 = vpop.f32.mrb[0].mxu1 }
  0xe0   :  { %v220_v45 = vadd.f32 %v402_v44, %v362_v43  ;;  %v214_v46 = vpop.f32.mrb[1].mxu1 }
  0xe1   :  { %v215_v47 = vadd.f32 %v362_v43, %v214_v46  ;;  %v391_v48 = vpop.f32.mrb[0].mxu0 }
  0xe2   :  { %v224_v49 = vmul.f32 0.5, %v220_v45  ;;  %v117_v50 = vpop.f32.mrb[1].mxu0  ;;  %v262_v51 = vsel %vm235_vm2, %v220_v45, 0.0  ;;  %v123_v59 = vadd.f32 %v391_v48, %v352_v57 }
  0xe3   :  { %v223_v52 = vmul.f32 0.5, %v215_v47  ;;  %v261_v53 = vsel %vm235_vm2, %v215_v47, 0.0  ;;  %v118_v62 = vadd.f32 %v352_v57, %v117_v50 }
  0xe4   :  { %v227_v54 = vmul.f32 1.442695, %v224_v49  ;;  %v263_v55 = vadd.f32 %v262_v51, %v261_v53  ;;  %v241_v6 = vsub.f32 %v123_v59, %v239_v4 }
  0xe5   :  { %v225_v56 = vmul.f32 1.442695, %v223_v52  ;;  %v240_v7 = vsub.f32 %v118_v62, %v238_v5 }
  0xe6   :  { %431 = vpow2.f32 %v227_v54 }
  0xe7   :  { %433 = vpow2.f32 %v225_v56 }
  0xf0   :  { %v432_v61 = vpop.eup %431 }
  0xf1   :  { %v434_v63 = vpop.eup %433  ;;  %v232_v0 = vmul.f32 %v432_v61, %v230_v58  ;;  %435 = vrcp.f32 %v432_v61 }
  0xf2   :  { %v231_v1 = vmul.f32 %v434_v63, %v229_v60  ;;  %437 = vrcp.f32 %v434_v63 }
  0xf3   :  { %v234_v2 = vadd.f32 %v232_v0, %v123_v59 }
  0xf4   :  { %v233_v3 = vadd.f32 %v231_v1, %v118_v62 }
  0xf5   :  { %237 = vst.msk [vmem:[%s634_s7 + $0x8] sm:$0xff] %vm235_vm2, %v234_v2 }
  0xf6   :  { %236 = vst.msk [vmem:[%s634_s7] sm:$0xff] %vm235_vm2, %v233_v3 }
  0xfb   :  { %v436_v8 = vpop.eup %435 }
  0xfc   :  { %v438_v9 = vpop.eup %437  ;;  %v245_v10 = vmul.f32 %v436_v8, %v241_v6 }
  0xfd   :  { %v243_v11 = vmul.f32 %v438_v9, %v240_v7 }
  0xfe   :  { %v247_v12 = vmul.f32 %v245_v10, %v245_v10 }
  0xff   :  { %v246_v13 = vmul.f32 %v243_v11, %v243_v11 }
 0x100   :  { %v249_v14 = vsel %vm235_vm2, %v247_v12, 0.0 }
 0x101   :  { %v248_v15 = vsel %vm235_vm2, %v246_v13, 0.0 }
 0x102   :  { %v250_v16 = vadd.f32 %v249_v14, %v248_v15 }
 0x104   :  { %251 = vadd.xlane.f32.xlu0 %v250_v16 }
 0x108   :  { %264 = vadd.xlane.f32.xlu0 %v263_v55 }
 0x191   :  { %v252_v19 = vpop.xlane.xlu0 %251 }
 0x192   :  { %v253_v21 = vrot.slane %v252_v19, 4 }
 0x194   :  { %v254_v22 = vadd.f32 %v253_v21, %v252_v19 }
 0x195   :  { %v265_v24 = vpop.xlane.xlu0 %264 }
 0x196   :  { %v255_v25 = vrot.slane %v254_v22, 2  ;;  %v266_v26 = vrot.slane %v265_v24, 4 }
 0x198   :  { %v267_v27 = vadd.f32 %v266_v26, %v265_v24  ;;  %v256_v28 = vadd.f32 %v255_v25, %v254_v22 }
 0x19a   :  { %v268_v30 = vrot.slane %v267_v27, 2  ;;  %v257_v31 = vrot.slane %v256_v28, 1 }
 0x19c   :  { %v269_v32 = vadd.f32 %v268_v30, %v267_v27  ;;  %v258_v33 = vadd.f32 %v257_v31, %v256_v28 }
 0x19e   :  { %419 = vpush %v258_v33  ;;  %v270_v35 = vrot.slane %v269_v32, 1 }
 0x1a0   :  { %v271_v36 = vadd.f32 %v270_v35, %v269_v32 }
 0x1a2   :  { %421 = vpush %v271_v36 }
 0x1a3   :  { %423 = vpush %v316_v37 }
 0x1cf   :  { %s420_s3 = spop %419 }
 0x1d0   :  { %s260_s7 = smul.f32 0.5, %s420_s3 }
 0x1d3   :  { %s422_s12 = spop %421 }
 0x1d4   :  { %s273_s13 = smul.f32 0.5, %s422_s12  ;;  %s424_s14 = spop %423 }
 0x1d5   :  { %s320_s15 = smul.f32 0.5, %s424_s14 }
 0x1d6   :  { %s274_s16 = sadd.f32 %s273_s13, %s260_s7 }
 0x1d7   :  { %322 = sst [smem:[#allocation2]] %s320_s15 }
 0x1d8   :  { %448 = shalt.err (!%p445_p2)
}
 0x1d9   :  { %s463_s6 = smov [#allocation2]   ;;  %s277_s24 = smul.f32 0.5, %s274_s16 }
 0x1da   :  { %332 = dma.smem_to_hbm %s463_s6, 16, %s635_s8, [#allocation3]  }
 0x1db   :  { %279 = sst [smem:[#allocation4]] %s277_s24  ;;  %s449_s27 = scalar_lea.hbm %s636_s9, 16 }
 0x1dc   :  { %p450_p3 = scmp.ne.s32.totalorder %s636_s9, %s449_s27  ;;  %p453_p4 = scmp.lt.u32.totalorder %s449_s27, %s636_s9 }
 0x1de   :  { %p455_p5 = pnand %p453_p4, %p450_p3 }
 0x1e0   :  { %458 = shalt.err (!%p455_p5)
}
 0x1e1   :  { %s464_s4 = smov [#allocation4]  }
 0x1e2   :  { %340 = dma.smem_to_hbm %s464_s4, 16, %s636_s9, [#allocation5]  }
 0x1e3   :  { %459 = dma.done.wait [#allocation3], 16  }
 0x1e4   :  { %460 = vsyncadd [#allocation3], 4294967280 }
 0x1e5   :  { %461 = dma.done.wait [#allocation5], 16  }
 0x1e6   :  { %462 = vsyncadd [#allocation5], 4294967280 }
 0x1e7   :  { %349 = sfence }
 0x1e8   :  { %350 = vsyncpa [#allocation3], 1 }
 0x1e9   :  { %351 = vsyncpa [#allocation5], 1 }

// kernel: cdtvae_forward.6
= control target key start
LH: loop header
LB: loop body
LE: loop exit
PB: predicated region body
PF: predicated region fallthrough
CT: control target
= control target key end

     0   :  { %s1802_s21 = smov 0   ;;  %s2003_s0 = inlined_call_operand.vmem [shape: f32[2,16,8], index: 0, kind: input, shape index: {}]   ;;  %s2004_s1 = inlined_call_operand.vmem [shape: f32[16,8], index: 1, kind: input, shape index: {}]   ;;  %s2005_s2 = inlined_call_operand.vmem [shape: f32[16,4], index: 2, kind: input, shape index: {}]   ;;  %s2006_s3 = inlined_call_operand.vmem [shape: f32[2,12,128], index: 3, kind: input, shape index: {}]   ;;  %s2007_s4 = inlined_call_operand.vmem [shape: f32[2,32,128], index: 4, kind: input, shape index: {}]   ;;  %s2008_s5 = inlined_call_operand.vmem [shape: f32[2,1,128], index: 5, kind: input, shape index: {}]   ;;  %s2009_s6 = inlined_call_operand.vmem [shape: f32[2,16,32], index: 6, kind: output, shape index: {}]  }
   0x1 LB: > { %s1440_s22 = sadd.s32 4294967295, %s1760_s21   ;;  %p1444_p0 = scmp.ge.s32.totalorder %s1760_s21, 1  ;;  %s1760_s21 = sphi %s1802_s21, %s16_s21  }
   0x2   : > { %p230_p1 = scmp.lt.s32.totalorder %s1760_s21, 3 }
   0x4   : > { %p231_p2 = pnand %p1444_p0, %p230_p1 }
   0x5   : > { %p268_p3 = scmp.lt.s32.totalorder (!%p231_p2), %s1440_s22, 1  ;;  %v303_v0 = vld [vmem:[%s2005_s2] sm:$0xff] (!%p231_p2)  ;;  %vm307_vm0 = vcmask (!%p231_p2), 31744   ;;  %v1451_v1 = vld [vmem:[%s2003_s0 + $0x10] sm:$0xff] (!%p231_p2)  ;;  %v1452_v3 = vld [vmem:[%s2003_s0 + $0x18] sm:$0xff] (!%p231_p2)  ;;  %vm314_vm1 = vcmask (!%p231_p2), 1043456  }
   0x6   : > { %234 = sbr.rel (%p231_p2) target bundleno = 5670 (0x1626), region = 44  ;;  %1527 = vmatprep.mubr.msk.f32.mxu1 (!%p231_p2), %vm307_vm0, %v303_v0  ;;  %v293_v2 = vmul.f32 (!%p231_p2), 0.5, %v1451_v1  ;;  %v294_v4 = vmul.f32 (!%p231_p2), 0.5, %v1452_v3  ;;  %v304_v6 = vld [vmem:[%s2005_s2 + $0x8] sm:$0xff] (!%p231_p2)  ;;  %v1762_v15 = vmov (!%p231_p2), 0.0|0.0   ;;  %vm1763_vm2 = vmmov (!%p231_p2), 0  }
   0x7   : > { %v1764_v17 = vmov (!%p231_p2), 0.0   ;;  %v291_v18 = vld [vmem:[%s2004_s1] sm:$0xff] (!%p231_p2)  ;;  %v292_v19 = vld [vmem:[%s2004_s1 + $0x8] sm:$0xff] (!%p231_p2)  ;;  %vm393_vm3 = vcmask (!%p231_p2), 64512   ;;  %s1765_s28 = smov (!%p231_p2), 64   ;;  %vm591_vm4 = vcmask (!%p231_p2), 254976  }
   0x8   : > { %v295_v5 = vmul.f32 (!%p231_p2), 1.442695, %v293_v2  ;;  %v297_v7 = vmul.f32 (!%p231_p2), 1.442695, %v294_v4  ;;  %v286_v21 = vld [vmem:[%s2003_s0] sm:$0xff] (!%p231_p2)  ;;  %v287_v24 = vld [vmem:[%s2003_s0 + $0x8] sm:$0xff] (!%p231_p2) }
   0x9   : > { %vm488_vm5 = vcmask (!%p231_p2), 261120   ;;  %vm700_vm6 = vcmask (!%p231_p2), 257026   ;;  %vm924_vm7 = vcmask (!%p231_p2), 261126   ;;  %vm812_vm8 = vcmask (!%p231_p2), 259076  }
   0xa   : > { %1686 = vpow2.f32 (!%p231_p2), %v295_v5 }
   0xb   : > { %1688 = vpow2.f32 (!%p231_p2), %v297_v7 }
   0xd   : > { %s2011_s22 = smov (!%p268_p3, %s1440_s22), 1 }
   0xe   : > { %s1476_s29 = sshll.u32 %s2011_s22, 4  ;;  %s1477_s30 = sshll.u32 %s2011_s22, 5 }
   0xf   : > { %s272_s9 = scalar_lea.vmem %s2006_s3, %s1476_s29  ;;  %s277_s12 = scalar_lea.vmem %s2007_s4, %s1477_s30 }
  0x10   : > { %v306_v8 = vld [vmem:[%s272_s9 + $0x8] sm:$0xf]  ;;  %v484_v9 = vld [vmem:[%s277_s12] sm:$0xff]  ;;  %v486_v11 = vld [vmem:[%s277_s12 + $0x10] sm:$0xff]  ;;  %s280_s27 = scalar_lea.vmem %s2008_s5, %s2011_s22  ;;  %s1766_s30 = smov 32  }
  0x11   : > { %v485_v10 = vld [vmem:[%s277_s12 + $0x8] sm:$0xff]  ;;  %1525 = vmatprep.subr.msk.mxu1 %vm314_vm1, %v306_v8  ;;  %v487_v12 = vld [vmem:[%s277_s12 + $0x18] sm:$0xff]  ;;  %v305_v14 = vld [vmem:[%s272_s9] sm:$0xff]  ;;  %s1893_s9 = scalar_lea.vmem %s2009_s6, %s1476_s29 }
  0x12   : > { %v1836_v13 = vpack.c.bf16 %v485_v10, %v484_v9  ;;  %1526 = vmatpush3.msk.msra.mxu1 %vm314_vm1, %v306_v8  ;;  %1530 = vmatprep.subr.mxu0 %v305_v14  ;;  %v1841_v16 = vpack.c.bf16 %v487_v12, %v486_v11  ;;  %v1458_v33 = vld [vmem:[%s280_s27] ss:$0 sm:$0xff] }
  0x13   : > { %1623 = vmatprep.subr.bf16.mxu1 %v1762_v15  ;;  %1528 = vmatmul.mubr.msk.f32.vlgmr.msra.gmra.mrb[0].mxu1 %vm307_vm0, %v304_v6 }
  0x14   : > { %1625 = vmatpush3.bf16.msra.mxu1 %v1836_v13  ;;  %1531 = vmatpush3.msra.mxu0 %v305_v14  ;;  %v1687_v20 = vpop.eup %1686 }
  0x15   : > { %1626 = vmatprep.subr.bf16.mxu1 %v1762_v15  ;;  %1543 = vmatprep.mubr.msk.f32.mxu1 %vm1763_vm2, %v1764_v17  ;;  %v1689_v22 = vpop.eup %1688  ;;  %v299_v23 = vmul.f32 %v1687_v20, %v291_v18 }
  0x16   : > { %1629 = vmatprep.subr.bf16.mxu0 %v1762_v15  ;;  %v300_v25 = vmul.f32 %v1689_v22, %v292_v19 }
  0x17   : > { %v301_v26 = vadd.f32 %v299_v23, %v286_v21 }
  0x18   : > { %1628 = vmatpush3.bf16.msra.mxu1 %v1841_v16  ;;  %v302_v27 = vadd.f32 %v300_v25, %v287_v24 }
  0x19   : > { %1635 = vmatprep.subr.bf16.mxu1 %v1762_v15  ;;  %1532 = vmatprep.mubr.msk.f32.mxu0 %vm393_vm3, %v301_v26 }
  0x1a   : > { %1533 = vmatmul.mubr.msk.f32.vlgmr.msra.gmra.mrb[0].mxu0 %vm393_vm3, %v302_v27 }
  0x1b   : > { %1544 = vmatmul.mubr.f32.vlgmr.msra.gmra.mrb[2].mxu1 %v1764_v17  ;;  %1631 = vmatpush3.bf16.msra.mxu0 %v1836_v13 }
  0x1c   : > { %1637 = vmatpush3.bf16.msra.mxu1 %v1836_v13  ;;  %1565 = vmatprep.mubr.msk.f32.mxu1 %vm1763_vm2, %v1764_v17 }
  0x1d   : > { %1638 = vmatprep.subr.bf16.mxu1 %v1762_v15  ;;  %1554 = vmatprep.mubr.msk.f32.mxu0 %vm1763_vm2, %v1764_v17 }
  0x1e   : > { %1632 = vmatprep.subr.bf16.mxu0 %v1762_v15 }
  0x1f   : > { %1634 = vmatpush3.bf16.msra.mxu0 %v1841_v16 }
  0x20   : > { %1640 = vmatpush3.bf16.msra.mxu1 %v1841_v16  ;;  %1641 = vmatprep.subr.bf16.mxu0 %v1762_v15 }
  0x21   : > { %1647 = vmatprep.subr.bf16.mxu1 %v1762_v15 }
  0xe6   : > { %v1529_v28 = vpop.f32.mrb[0].mxu1 }
  0xe7   : > { %v384_v29 = vpop.f32.mrb[1].mxu1 }
  0xed   : > { %v1534_v32 = vpop.f32.mrb[0].mxu0 }
  0xee   : > { %v558_v30 = vpop.f32.mrb[2].mxu1  ;;  %v472_v34 = vadd.f32 %v1534_v32, %v1529_v28  ;;  %v466_v35 = vpop.f32.mrb[1].mxu0 }
  0xef   : > { %v1545_v31 = vpop.f32.mrb[3].mxu1  ;;  %v467_v36 = vadd.f32 %v466_v35, %v384_v29 }
  0xf0   : > { %v1879_v37 = vadd.f32 %v1458_v33, %v472_v34 }
  0xf1   : > { %v1881_v38 = vadd.f32 %v1458_v33, %v467_v36 }
  0xf3   : > { %v562_v39 = vadd.f32 %v558_v30, %v1881_v38 }
  0xf5   : > { %1690 = vtanh.f32 %v562_v39  ;;  %v1459_v41 = vmul.f32 -1.442695, %v562_v39 }
  0xf7   : > { %1692 = vpow2.f32 %v1459_v41 }
  0xff   : > { %v1691_v40 = vpop.eup %1690 }
 0x100   : > { %572 = vrot.lane.b32.xlu0 %v1691_v40, %s1765_s28 }
 0x101   : > { %v1693_v42 = vpop.eup %1692 }
 0x102   : > { %v566_v43 = vadd.f32 1.0, %v1693_v42 }
 0x104   : > { %1694 = vrcp.f32 %v566_v43 }
 0x10e   : > { %v1695_v44 = vpop.eup %1694 }
 0x10f   : > { %v570_v47 = vmul.f32 0.0, %v1695_v44 }
 0x172   : > { %v573_v45 = vpop.permute.xlu0 %572 }
 0x173   : > { %v575_v46 = vmul.f32 %v1695_v44, %v573_v45 }
 0x175   : > { %577 = vrot.lane.b32.xlu0 %v575_v46, %s1766_s30 }
 0x1e7   : > { %v578_v48 = vpop.permute.xlu0 %577 }
 0x1e8   : > { %v580_v49 = vadd.f32 %v578_v48, %v570_v47 }
 0x1ea   : > { %1696 = vtanh.f32 %v580_v49  ;;  %v677_v1 = vrot.slane %v580_v49, 6 }
 0x1f4   : > { %v1697_v50 = vpop.eup %1696 }
 0x1f5   : > { %583 = vrot.lane.b32.xlu1 %v1697_v50, %s1765_s28 }
 0x267   : > { %v584_v51 = vpop.permute.xlu1 %583 }
 0x268   : > { %v586_v52 = vmul.f32 %v1695_v44, %v584_v51 }
 0x26a   : > { %588 = vrot.lane.b32.xlu1 %v586_v52, %s1766_s30 }
 0x2dc   : > { %v589_v53 = vpop.permute.xlu1 %588 }
 0x2dd   : > { %592 = vst.msk [vmem:[%s1893_s9] sm:$0x3] %vm591_vm4, %v589_v53  ;;  %1555 = vmatmul.mubr.msk.f32.vlgmr.msra.gmra.mrb[2].mxu0 %vm488_vm5, %v589_v53 }
 0x2de   : > { %1643 = vmatpush3.bf16.msra.mxu0 %v1836_v13  ;;  %1576 = vmatprep.mubr.msk.f32.mxu0 %vm1763_vm2, %v1764_v17 }
 0x2df   : > { %1644 = vmatprep.subr.bf16.mxu0 %v1762_v15 }
 0x2e2   : > { %1646 = vmatpush3.bf16.msra.mxu0 %v1841_v16 }
 0x2e3   : > { %1653 = vmatprep.subr.bf16.mxu0 %v1762_v15 }
 0x3b0   : > { %v661_v54 = vpop.f32.mrb[2].mxu0 }
 0x3b1   : > { %v666_v55 = vrot.slane %v661_v54, 6  ;;  %v1556_v56 = vpop.f32.mrb[3].mxu0 }
 0x3b3   : > { %v668_v57 = vadd.f32 %v666_v55, %v1881_v38 }
 0x3b5   : > { %1698 = vtanh.f32 %v668_v57  ;;  %v1461_v59 = vmul.f32 -1.442695, %v668_v57 }
 0x3b7   : > { %1700 = vpow2.f32 %v1461_v59 }
 0x3bf   : > { %v1699_v58 = vpop.eup %1698 }
 0x3c0   : > { %681 = vrot.lane.b32.xlu0 %v1699_v58, %s1765_s28 }
 0x3c1   : > { %v1701_v60 = vpop.eup %1700 }
 0x3c2   : > { %v672_v61 = vadd.f32 1.0, %v1701_v60 }
 0x3c4   : > { %1702 = vrcp.f32 %v672_v61 }
 0x3ce   : > { %v1703_v62 = vpop.eup %1702 }
 0x3cf   : > { %v679_v2 = vmul.f32 %v1703_v62, %v677_v1 }
 0x432   : > { %v682_v63 = vpop.permute.xlu0 %681 }
 0x433   : > { %v684_v0 = vmul.f32 %v1703_v62, %v682_v63 }
 0x435   : > { %686 = vrot.lane.b32.xlu1 %v684_v0, %s1766_s30 }
 0x4a7   : > { %v687_v3 = vpop.permute.xlu1 %686 }
 0x4a8   : > { %v689_v4 = vadd.f32 %v687_v3, %v679_v2 }
 0x4aa   : > { %1704 = vtanh.f32 %v689_v4  ;;  %v789_v25 = vrot.slane %v689_v4, 6 }
 0x4b4   : > { %v1705_v5 = vpop.eup %1704 }
 0x4b5   : > { %692 = vrot.lane.b32.xlu0 %v1705_v5, %s1765_s28 }
 0x527   : > { %v693_v6 = vpop.permute.xlu0 %692 }
 0x528   : > { %v1908_v7 = vmul.f32 %v1703_v62, %v693_v6 }
 0x52a   : > { %v702_v8 = vrot.slane %v1908_v7, 2 }
 0x52c   : > { %703 = vrot.lane.b32.xlu1 %v702_v8, %s1766_s30 }
 0x59e   : > { %v704_v9 = vpop.permute.xlu1 %703 }
 0x59f   : > { %1566 = vmatmul.mubr.msk.f32.vlgmr.msra.gmra.mrb[4].mxu1 %vm488_vm5, %v704_v9 }
 0x5a0   : > { %1649 = vmatpush3.bf16.msra.mxu1 %v1836_v13  ;;  %1587 = vmatprep.mubr.msk.f32.mxu1 %vm1763_vm2, %v1764_v17 }
 0x5a1   : > { %1650 = vmatprep.subr.bf16.mxu1 %v1762_v15 }
 0x5a4   : > { %1652 = vmatpush3.bf16.msra.mxu1 %v1841_v16 }
 0x5a5   : > { %1659 = vmatprep.subr.bf16.mxu1 %v1762_v15 }
 0x672   : > { %v773_v10 = vpop.f32.mrb[4].mxu1 }
 0x673   : > { %v778_v11 = vrot.slane %v773_v10, 4  ;;  %v1567_v12 = vpop.f32.mrb[5].mxu1 }
 0x675   : > { %v780_v14 = vadd.f32 %v778_v11, %v1881_v38 }
 0x677   : > { %1706 = vtanh.f32 %v780_v14  ;;  %v1463_v19 = vmul.f32 -1.442695, %v780_v14 }
 0x679   : > { %1708 = vpow2.f32 %v1463_v19 }
 0x681   : > { %v1707_v18 = vpop.eup %1706 }
 0x682   : > { %793 = vrot.lane.b32.xlu0 %v1707_v18, %s1765_s28 }
 0x683   : > { %v1709_v20 = vpop.eup %1708 }
 0x684   : > { %v784_v21 = vadd.f32 1.0, %v1709_v20 }
 0x686   : > { %1710 = vrcp.f32 %v784_v21 }
 0x690   : > { %v1711_v22 = vpop.eup %1710 }
 0x691   : > { %v791_v26 = vmul.f32 %v1711_v22, %v789_v25 }
 0x6f4   : > { %v794_v23 = vpop.permute.xlu0 %793 }
 0x6f5   : > { %v796_v24 = vmul.f32 %v1711_v22, %v794_v23 }
 0x6f7   : > { %798 = vrot.lane.b32.xlu1 %v796_v24, %s1766_s30 }
 0x769   : > { %v799_v27 = vpop.permute.xlu1 %798 }
 0x76a   : > { %v801_v28 = vadd.f32 %v799_v27, %v791_v26 }
 0x76c   : > { %1712 = vtanh.f32 %v801_v28  ;;  %v901_v47 = vrot.slane %v801_v28, 6 }
 0x776   : > { %v1713_v29 = vpop.eup %1712 }
 0x777   : > { %804 = vrot.lane.b32.xlu0 %v1713_v29, %s1765_s28 }
 0x7e9   : > { %v805_v30 = vpop.permute.xlu0 %804 }
 0x7ea   : > { %v1923_v31 = vmul.f32 %v1711_v22, %v805_v30 }
 0x7ec   : > { %v814_v32 = vrot.slane %v1923_v31, 4 }
 0x7ee   : > { %815 = vrot.lane.b32.xlu1 %v814_v32, %s1766_s30 }
 0x860   : > { %v816_v33 = vpop.permute.xlu1 %815 }
 0x861   : > { %1577 = vmatmul.mubr.msk.f32.vlgmr.msra.gmra.mrb[4].mxu0 %vm488_vm5, %v816_v33 }
 0x862   : > { %1655 = vmatpush3.bf16.msra.mxu0 %v1836_v13  ;;  %1598 = vmatprep.mubr.msk.f32.mxu0 %vm1763_vm2, %v1764_v17 }
 0x863   : > { %1656 = vmatprep.subr.bf16.mxu0 %v1762_v15 }
 0x866   : > { %1658 = vmatpush3.bf16.msra.mxu0 %v1841_v16 }
 0x867   : > { %1665 = vmatprep.subr.bf16.mxu0 %v1762_v15 }
 0x934   : > { %v885_v34 = vpop.f32.mrb[4].mxu0 }
 0x935   : > { %v890_v35 = vrot.slane %v885_v34, 2  ;;  %v1578_v36 = vpop.f32.mrb[5].mxu0 }
 0x937   : > { %v892_v39 = vadd.f32 %v890_v35, %v1881_v38 }
 0x939   : > { %1714 = vtanh.f32 %v892_v39  ;;  %v1465_v41 = vmul.f32 -1.442695, %v892_v39 }
 0x93b   : > { %1716 = vpow2.f32 %v1465_v41 }
 0x943   : > { %v1715_v40 = vpop.eup %1714 }
 0x944   : > { %905 = vrot.lane.b32.xlu0 %v1715_v40, %s1765_s28 }
 0x945   : > { %v1717_v42 = vpop.eup %1716 }
 0x946   : > { %v896_v43 = vadd.f32 1.0, %v1717_v42 }
 0x948   : > { %1718 = vrcp.f32 %v896_v43 }
 0x952   : > { %v1719_v44 = vpop.eup %1718 }
 0x953   : > { %v903_v48 = vmul.f32 %v1719_v44, %v901_v47 }
 0x9b6   : > { %v906_v45 = vpop.permute.xlu0 %905 }
 0x9b7   : > { %v908_v46 = vmul.f32 %v1719_v44, %v906_v45 }
 0x9b9   : > { %910 = vrot.lane.b32.xlu1 %v908_v46, %s1766_s30 }
 0xa2b   : > { %v911_v49 = vpop.permute.xlu1 %910 }
 0xa2c   : > { %v913_v50 = vadd.f32 %v911_v49, %v903_v48 }
 0xa2e   : > { %1720 = vtanh.f32 %v913_v50  ;;  %v1010_v1 = vrot.slane %v913_v50, 6 }
 0xa38   : > { %v1721_v38 = vpop.eup %1720 }
 0xa39   : > { %916 = vrot.lane.b32.xlu0 %v1721_v38, %s1765_s28 }
 0xaab   : > { %v917_v51 = vpop.permute.xlu0 %916 }
 0xaac   : > { %v1938_v52 = vmul.f32 %v1719_v44, %v917_v51 }
 0xaae   : > { %v926_v53 = vrot.slane %v1938_v52, 6 }
 0xab0   : > { %927 = vrot.lane.b32.xlu1 %v926_v53, %s1766_s30 }
 0xb22   : > { %v928_v54 = vpop.permute.xlu1 %927 }
 0xb23   : > { %1588 = vmatmul.mubr.msk.f32.vlgmr.msra.gmra.mrb[6].mxu1 %vm488_vm5, %v928_v54 }
 0xb24   : > { %1661 = vmatpush3.bf16.msra.mxu1 %v1836_v13  ;;  %1609 = vmatprep.mubr.msk.f32.mxu1 %vm1763_vm2, %v1764_v17 }
 0xb25   : > { %1662 = vmatprep.subr.bf16.mxu1 %v1762_v15 }
 0xb28   : > { %1664 = vmatpush3.bf16.msra.mxu1 %v1841_v16 }
 0xbf6   : > { %v997_v55 = vpop.f32.mrb[6].mxu1 }
 0xbf7   : > { %v1001_v56 = vadd.f32 %v997_v55, %v1879_v37  ;;  %v1589_v57 = vpop.f32.mrb[7].mxu1 }
 0xbf9   : > { %1722 = vtanh.f32 %v1001_v56  ;;  %v1467_v59 = vmul.f32 -1.442695, %v1001_v56 }
 0xbfb   : > { %1724 = vpow2.f32 %v1467_v59 }
 0xc03   : > { %v1723_v58 = vpop.eup %1722 }
 0xc04   : > { %1014 = vrot.lane.b32.xlu0 %v1723_v58, %s1765_s28 }
 0xc05   : > { %v1725_v60 = vpop.eup %1724 }
 0xc06   : > { %v1005_v61 = vadd.f32 1.0, %v1725_v60 }
 0xc08   : > { %1726 = vrcp.f32 %v1005_v61 }
 0xc12   : > { %v1727_v62 = vpop.eup %1726 }
 0xc13   : > { %v1012_v2 = vmul.f32 %v1727_v62, %v1010_v1 }
 0xc76   : > { %v1015_v63 = vpop.permute.xlu0 %1014 }
 0xc77   : > { %v1017_v0 = vmul.f32 %v1727_v62, %v1015_v63 }
 0xc79   : > { %1019 = vrot.lane.b32.xlu1 %v1017_v0, %s1766_s30 }
 0xceb   : > { %v1020_v3 = vpop.permute.xlu1 %1019 }
 0xcec   : > { %v1022_v4 = vadd.f32 %v1020_v3, %v1012_v2 }
 0xcee   : > { %1728 = vtanh.f32 %v1022_v4 }
 0xcf8   : > { %v1729_v5 = vpop.eup %1728 }
 0xcf9   : > { %1025 = vrot.lane.b32.xlu0 %v1729_v5, %s1765_s28 }
 0xd6b   : > { %v1026_v6 = vpop.permute.xlu0 %1025 }
 0xd6c   : > { %v1028_v8 = vmul.f32 %v1727_v62, %v1026_v6 }
 0xd6e   : > { %1030 = vrot.lane.b32.xlu1 %v1028_v8, %s1766_s30 }
 0xde0   : > { %v1031_v9 = vpop.permute.xlu1 %1030 }
 0xde1   : > { %1033 = vst.msk [vmem:[%s1893_s9 + $0x8] sm:$0x3] %vm591_vm4, %v1031_v9  ;;  %1599 = vmatmul.mubr.msk.f32.vlgmr.msra.gmra.mrb[6].mxu0 %vm488_vm5, %v1031_v9 }
 0xde2   : > { %1667 = vmatpush3.bf16.msra.mxu0 %v1836_v13  ;;  %1620 = vmatprep.mubr.msk.f32.mxu0 %vm1763_vm2, %v1764_v17 }
 0xde3   : > { %1668 = vmatprep.subr.bf16.mxu0 %v1762_v15  ;;  %v1118_v15 = vrot.slane %v1022_v4, 6 }
 0xde6   : > { %1670 = vmatpush3.bf16.msra.mxu0 %v1841_v16 }
 0xeb4   : > { %v1102_v10 = vpop.f32.mrb[6].mxu0 }
 0xeb5   : > { %v1107_v11 = vrot.slane %v1102_v10, 6  ;;  %v1600_v12 = vpop.f32.mrb[7].mxu0 }
 0xeb7   : > { %v1109_v14 = vadd.f32 %v1107_v11, %v1879_v37 }
 0xeb9   : > { %1730 = vtanh.f32 %v1109_v14  ;;  %v1469_v19 = vmul.f32 -1.442695, %v1109_v14 }
 0xebb   : > { %1732 = vpow2.f32 %v1469_v19 }
 0xec3   : > { %v1731_v18 = vpop.eup %1730 }
 0xec4   : > { %1122 = vrot.lane.b32.xlu0 %v1731_v18, %s1765_s28 }
 0xec5   : > { %v1733_v20 = vpop.eup %1732 }
 0xec6   : > { %v1113_v13 = vadd.f32 1.0, %v1733_v20 }
 0xec8   : > { %1734 = vrcp.f32 %v1113_v13 }
 0xed2   : > { %v1735_v21 = vpop.eup %1734 }
 0xed3   : > { %v1120_v16 = vmul.f32 %v1735_v21, %v1118_v15 }
 0xf36   : > { %v1123_v17 = vpop.permute.xlu0 %1122 }
 0xf37   : > { %v1125_v22 = vmul.f32 %v1735_v21, %v1123_v17 }
 0xf39   : > { %1127 = vrot.lane.b32.xlu1 %v1125_v22, %s1766_s30 }
 0xfab   : > { %v1128_v23 = vpop.permute.xlu1 %1127 }
 0xfac   : > { %v1130_v24 = vadd.f32 %v1128_v23, %v1120_v16 }
 0xfae   : > { %1736 = vtanh.f32 %v1130_v24  ;;  %v1229_v44 = vrot.slane %v1130_v24, 6 }
 0xfb8   : > { %v1737_v25 = vpop.eup %1736 }
 0xfb9   : > { %1133 = vrot.lane.b32.xlu0 %v1737_v25, %s1765_s28 }
0x102b   : > { %v1134_v26 = vpop.permute.xlu0 %1133 }
0x102c   : > { %v1965_v27 = vmul.f32 %v1735_v21, %v1134_v26 }
0x102e   : > { %v1142_v28 = vrot.slane %v1965_v27, 2 }
0x1030   : > { %1143 = vrot.lane.b32.xlu1 %v1142_v28, %s1766_s30 }
0x10a2   : > { %v1144_v29 = vpop.permute.xlu1 %1143 }
0x10a3   : > { %1610 = vmatmul.mubr.msk.f32.vlgmr.msra.gmra.mrb[8].mxu1 %vm488_vm5, %v1144_v29 }
0x1176   : > { %v1213_v30 = vpop.f32.mrb[8].mxu1 }
0x1177   : > { %v1218_v32 = vrot.slane %v1213_v30, 4  ;;  %v1611_v33 = vpop.f32.mrb[9].mxu1 }
0x1179   : > { %v1220_v34 = vadd.f32 %v1218_v32, %v1879_v37 }
0x117b   : > { %1738 = vtanh.f32 %v1220_v34  ;;  %v1471_v36 = vmul.f32 -1.442695, %v1220_v34 }
0x117d   : > { %1740 = vpow2.f32 %v1471_v36 }
0x1185   : > { %v1739_v35 = vpop.eup %1738 }
0x1186   : > { %1233 = vrot.lane.b32.xlu0 %v1739_v35, %s1765_s28 }
0x1187   : > { %v1741_v39 = vpop.eup %1740 }
0x1188   : > { %v1224_v40 = vadd.f32 1.0, %v1741_v39 }
0x118a   : > { %1742 = vrcp.f32 %v1224_v40 }
0x1194   : > { %v1743_v41 = vpop.eup %1742 }
0x1195   : > { %v1231_v45 = vmul.f32 %v1743_v41, %v1229_v44 }
0x11f8   : > { %v1234_v42 = vpop.permute.xlu0 %1233 }
0x11f9   : > { %v1236_v43 = vmul.f32 %v1743_v41, %v1234_v42 }
0x11fb   : > { %1238 = vrot.lane.b32.xlu1 %v1236_v43, %s1766_s30 }
0x126d   : > { %v1239_v46 = vpop.permute.xlu1 %1238 }
0x126e   : > { %v1241_v47 = vadd.f32 %v1239_v46, %v1231_v45 }
0x1270   : > { %1744 = vtanh.f32 %v1241_v47 }
0x127a   : > { %v1745_v48 = vpop.eup %1744 }
0x127b   : > { %1244 = vrot.lane.b32.xlu0 %v1745_v48, %s1765_s28 }
0x12ed   : > { %v1245_v49 = vpop.permute.xlu0 %1244 }
0x12ee   : > { %v1247_v50 = vmul.f32 %v1743_v41, %v1245_v49 }
0x12f0   : > { %v1253_v38 = vrot.slane %v1247_v50, 4 }
0x12f2   : > { %1254 = vrot.lane.b32.xlu1 %v1253_v38, %s1766_s30 }
0x1364   : > { %v1255_v51 = vpop.permute.xlu1 %1254 }
0x1365   : > { %1621 = vmatmul.mubr.msk.f32.vlgmr.msra.gmra.mrb[8].mxu0 %vm488_vm5, %v1255_v51 }
0x1438   : > { %v1324_v53 = vpop.f32.mrb[8].mxu0 }
0x1439   : > { %v1329_v54 = vrot.slane %v1324_v53, 2  ;;  %v1622_v55 = vpop.f32.mrb[9].mxu0 }
0x143b   : > { %v1331_v56 = vadd.f32 %v1329_v54, %v1879_v37  ;;  %v1340_v37 = vrot.slane %v1241_v47, 6 }
0x143d   : > { %1746 = vtanh.f32 %v1331_v56  ;;  %v1473_v58 = vmul.f32 -1.442695, %v1331_v56 }
0x143f   : > { %1748 = vpow2.f32 %v1473_v58 }
0x1447   : > { %v1747_v57 = vpop.eup %1746 }
0x1448   : > { %1344 = vrot.lane.b32.xlu0 %v1747_v57, %s1765_s28 }
0x1449   : > { %v1749_v59 = vpop.eup %1748 }
0x144a   : > { %v1335_v60 = vadd.f32 1.0, %v1749_v59 }
0x144c   : > { %1750 = vrcp.f32 %v1335_v60 }
0x1456   : > { %v1751_v61 = vpop.eup %1750 }
0x1457   : > { %v1342_v0 = vmul.f32 %v1751_v61, %v1340_v37 }
0x14ba   : > { %v1345_v62 = vpop.permute.xlu0 %1344 }
0x14bb   : > { %v1347_v63 = vmul.f32 %v1751_v61, %v1345_v62 }
0x14bd   : > { %1349 = vrot.lane.b32.xlu1 %v1347_v63, %s1766_s30 }
0x14c1   : > { %697 = vrot.lane.b32.xlu1 %v1908_v7, %s1766_s30 }
0x14c5   : > { %921 = vrot.lane.b32.xlu1 %v1938_v52, %s1766_s30 }
0x14c9   : > { %1249 = vrot.lane.b32.xlu1 %v1247_v50, %s1766_s30 }
0x152f   : > { %v1350_v1 = vpop.permute.xlu1 %1349 }
0x1530   : > { %v1352_v2 = vadd.f32 %v1350_v1, %v1342_v0 }
0x1532   : > { %1752 = vtanh.f32 %v1352_v2 }
0x1533   : > { %v698_v3 = vpop.permute.xlu1 %697 }
0x1534   : > { %701 = vst.msk [vmem:[%s1893_s9] sm:$0xc] %vm700_vm6, %v698_v3 }
0x1537   : > { %v922_v4 = vpop.permute.xlu1 %921 }
0x1538   : > { %925 = vst.msk [vmem:[%s1893_s9] sm:$0xc0] %vm924_vm7, %v922_v4 }
0x153b   : > { %v1250_v7 = vpop.permute.xlu1 %1249 }
0x153c   : > { %v1753_v52 = vpop.eup %1752  ;;  %1252 = vst.msk [vmem:[%s1893_s9 + $0x8] sm:$0x30] %vm812_vm8, %v1250_v7 }
0x153d   : > { %1355 = vrot.lane.b32.xlu0 %v1753_v52, %s1765_s28 }
0x1541   : > { %809 = vrot.lane.b32.xlu0 %v1923_v31, %s1766_s30 }
0x1545   : > { %1138 = vrot.lane.b32.xlu0 %v1965_v27, %s1766_s30 }
0x15af   : > { %v1356_v5 = vpop.permute.xlu0 %1355 }
0x15b0   : > { %v1358_v6 = vmul.f32 %v1751_v61, %v1356_v5 }
0x15b2   : > { %1360 = vrot.lane.b32.xlu0 %v1358_v6, %s1766_s30 }
0x15b3   : > { %v810_v8 = vpop.permute.xlu0 %809 }
0x15b4   : > { %813 = vst.msk [vmem:[%s1893_s9] sm:$0x30] %vm812_vm8, %v810_v8 }
0x15b7   : > { %v1139_v9 = vpop.permute.xlu0 %1138 }
0x15b8   : > { %1141 = vst.msk [vmem:[%s1893_s9 + $0x8] sm:$0xc] %vm700_vm6, %v1139_v9 }
0x1624   : > { %v1361_v10 = vpop.permute.xlu0 %1360 }
0x1625   : > { %1363 = vst.msk [vmem:[%s1893_s9 + $0x8] sm:$0xc0] %vm924_vm7, %v1361_v10 }
0x1626 PF: > { %s16_s21 = sadd.s32 1, %s1760_s21  }
0x1627   : > { %p13_p4 = scmp.ge.s32.totalorder %s16_s21, 4  }
0x1629   :  { %15 = sbr.rel (!%p13_p4) target bundleno = 1 (0x1), region = 81 }

// kernel: cdtvae_forward.5
= control target key start
LH: loop header
LB: loop body
LE: loop exit
PB: predicated region body
PF: predicated region fallthrough
CT: control target
= control target key end

     0   :  { %s3843_s24 = smov 0   ;;  %s4203_s0 = inlined_call_operand.vmem [shape: f32[16,8], index: 0, kind: input, shape index: {}]   ;;  %s4204_s1 = inlined_call_operand.vmem [shape: f32[16,4], index: 1, kind: input, shape index: {}]   ;;  %s4205_s2 = inlined_call_operand.vmem [shape: f32[2,8,32], index: 2, kind: input, shape index: {}]   ;;  %s4206_s3 = inlined_call_operand.vmem [shape: f32[2,8,32], index: 3, kind: input, shape index: {}]   ;;  %s4207_s4 = inlined_call_operand.vmem [shape: f32[2,1,32], index: 4, kind: input, shape index: {}]   ;;  %s4208_s5 = inlined_call_operand.vmem [shape: f32[2,8,32], index: 5, kind: input, shape index: {}]   ;;  %s4209_s6 = inlined_call_operand.vmem [shape: f32[2,1,32], index: 6, kind: input, shape index: {}]   ;;  %s4210_s7 = inlined_call_operand.vmem [shape: f32[2,32,32], index: 7, kind: input, shape index: {}]   ;;  %s4211_s8 = inlined_call_operand.vmem [shape: f32[2,8,32], index: 8, kind: input, shape index: {}]   ;;  %s4212_s9 = inlined_call_operand.vmem [shape: f32[2,1,32], index: 9, kind: input, shape index: {}]   ;;  %s4213_s10 = inlined_call_operand.vmem [shape: f32[2,4,32], index: 10, kind: input, shape index: {}]   ;;  %s4214_s11 = inlined_call_operand.vmem [shape: f32[2,1,32], index: 11, kind: input, shape index: {}]   ;;  %s4215_s12 = inlined_call_operand.vmem [shape: f32[2,32,32], index: 12, kind: input, shape index: {}]   ;;  %s4216_s13 = inlined_call_operand.vmem [shape: f32[2,1,32], index: 13, kind: input, shape index: {}]   ;;  %s4217_s14 = inlined_call_operand.vmem [shape: f32[2,32,8], index: 14, kind: input, shape index: {}]   ;;  %s4218_s15 = inlined_call_operand.vmem [shape: f32[2,1,8], index: 15, kind: input, shape index: {}]   ;;  %s4219_s16 = inlined_call_operand.vmem [shape: f32[2,16,8], index: 16, kind: output, shape index: {0}]   ;;  %s4220_s17 = inlined_call_operand.vmem [shape: f32[2,16,8], index: 17, kind: output, shape index: {1}]  }
   0x1   :  { %4228 = sst [smem:[#allocation4_spill]] %s4203_s0 }
   0x2   :  { %4229 = sst [smem:[#allocation5_spill]] %s4204_s1 }
   0x3 LB: > { %s3310_s25 = sadd.s32 4294967295, %s3745_s24   ;;  %p3314_p0 = scmp.ge.s32.totalorder %s3745_s24, 1  ;;  %s3745_s24 = sphi %s3843_s24, %s28_s24  }
   0x4   : > { %p603_p1 = scmp.lt.s32.totalorder %s3745_s24, 3 }
   0x6   : > { %p604_p2 = pnand %p3314_p0, %p603_p1 }
   0x7   : > { %p708_p3 = scmp.lt.s32.totalorder (!%p604_p2), %s3310_s25, 1  ;;  %s4230_s28 = sld [smem:[#allocation4_spill]] (!%p604_p2)  ;;  %vm781_vm0 = vcmask (!%p604_p2), 64512   ;;  %v3747_v1 = vmov (!%p604_p2), 0.0   ;;  %vm3748_vm1 = vmmov (!%p604_p2), 0   ;;  %vm966_vm2 = vcmask (!%p604_p2), 58368  }
   0x8   : > { %607 = sbr.rel (%p604_p2) target bundleno = 11536 (0x2d10), region = 84  ;;  %3450 = vmatprep.subr.mxu1 (!%p604_p2), %v3747_v1  ;;  %3452 = vmatprep.mubr.msk.f32.mxu1 (!%p604_p2), %vm3748_vm1, %v3747_v1  ;;  %s4225_s0 = smov (!%p604_p2), 112   ;;  %vm1075_vm3 = vcmask (!%p604_p2), 60418   ;;  %vm1299_vm4 = vcmask (!%p604_p2), 64518   ;;  %vm1187_vm5 = vcmask (!%p604_p2), 62468   ;;  %vm1830_vm6 = vcmask (!%p604_p2), 261120  }
   0x9   : > { %s4224_s30 = smov (!%p604_p2), 8   ;;  %s4226_s19 = smov (!%p604_p2), 104   ;;  %vm2813_vm7 = vcmask (!%p604_p2), 1043456   ;;  %vm2806_vm8 = vcmask (!%p604_p2), 31744  }
   0xa   : > { %s4233_s22 = smov (!%p604_p2), 112  }
   0xd   : > { %v771_v0 = vld [vmem:[%s4230_s28] sm:$0xff] (!%p604_p2)  ;;  %v772_v4 = vld [vmem:[%s4230_s28 + $0x8] sm:$0xff] (!%p604_p2) }
   0xe   : > { %3447 = vmatprep.mubr.msk.f32.mxu0 (!%p604_p2), %vm781_vm0, %v771_v0 }
   0xf   : > { %s4237_s25 = smov (!%p708_p3, %s3310_s25), 1 }
  0x10   : > { %s3861_s29 = sshll.u32 %s4237_s25, 3  ;;  %s718_s27 = scalar_lea.vmem %s4207_s4, %s4237_s25 }
  0x11   : > { %s711_s18 = scalar_lea.vmem %s4205_s2, %s3861_s29  ;;  %s715_s20 = scalar_lea.vmem %s4206_s3, %s3861_s29  ;;  %v3330_v5 = vld [vmem:[%s718_s27] ss:$0 sm:$0xff] }
  0x12   : > { %v773_v2 = vld [vmem:[%s711_s18] sm:$0xff]  ;;  %s3751_s18 = smov 16   ;;  %s722_s21 = scalar_lea.vmem %s4208_s5, %s3861_s29 }
  0x13   : > { %v3871_v3 = vld [vmem:[%s715_s20] sm:$0xff]  ;;  %3445 = vmatprep.subr.mxu0 %v773_v2  ;;  %s734_s26 = scalar_lea.vmem %s4211_s8, %s3861_s29  ;;  %s4014_s29 = sshll.u32 %s4237_s25, 5 }
  0x14   : > { %3451 = vmatpush3.msra.mxu1 %v3871_v3  ;;  %3446 = vmatpush3.msra.mxu0 %v773_v2  ;;  %s730_s20 = scalar_lea.vmem %s4210_s7, %s4014_s29  ;;  %s725_s23 = scalar_lea.vmem %s4209_s6, %s4237_s25 }
  0x15   : > { %3453 = vmatmul.mubr.f32.vlgmr.msra.gmra.mrb[0].mxu1 %v3747_v1  ;;  %3448 = vmatmul.mubr.msk.f32.vlgmr.msra.gmra.mrb[0].mxu0 %vm781_vm0, %v772_v4  ;;  %s737_s1 = scalar_lea.vmem %s4212_s9, %s4237_s25  ;;  %s4232_s27 = smov 104  }
  0x16   : > { %3455 = vmatprep.subr.mxu0 %v3747_v1  ;;  %3457 = vmatprep.mubr.msk.f32.mxu0 %vm3748_vm1, %v3747_v1 }
  0x17   : > { %3456 = vmatpush3.msra.mxu0 %v3871_v3  ;;  %3460 = vmatprep.subr.mxu1 %v3747_v1 }
  0x18   : > { %3462 = vmatprep.mubr.msk.f32.mxu1 %vm3748_vm1, %v3747_v1  ;;  %3461 = vmatpush3.msra.mxu1 %v3871_v3 }
  0x19   : > { %3465 = vmatprep.subr.mxu0 %v3747_v1  ;;  %3470 = vmatprep.subr.mxu1 %v3747_v1 }
  0xe8   : > { %v933_v6 = vpop.f32.mrb[0].mxu1  ;;  %v3449_v7 = vpop.f32.mrb[0].mxu0 }
  0xe9   : > { %v3454_v8 = vpop.f32.mrb[1].mxu1  ;;  %v3893_v9 = vadd.f32 %v3449_v7, %v3330_v5  ;;  %v854_v10 = vpop.f32.mrb[1].mxu0 }
  0xea   : > { %v3895_v11 = vadd.f32 %v3330_v5, %v854_v10 }
  0xec   : > { %v937_v12 = vadd.f32 %v933_v6, %v3895_v11 }
  0xee   : > { %3611 = vtanh.f32 %v937_v12  ;;  %v3333_v14 = vmul.f32 -1.442695, %v937_v12 }
  0xf0   : > { %3613 = vpow2.f32 %v3333_v14 }
  0xf8   : > { %v3612_v13 = vpop.eup %3611 }
  0xf9   : > { %947 = vrot.lane.b32.xlu0 %v3612_v13, %s4225_s0 }
  0xfa   : > { %v3614_v15 = vpop.eup %3613 }
  0xfb   : > { %v941_v16 = vadd.f32 1.0, %v3614_v15 }
  0xfd   : > { %3615 = vrcp.f32 %v941_v16 }
 0x107   : > { %v3616_v17 = vpop.eup %3615 }
 0x108   : > { %v945_v20 = vmul.f32 0.0, %v3616_v17 }
 0x16b   : > { %v948_v18 = vpop.permute.xlu0 %947 }
 0x16c   : > { %v950_v19 = vmul.f32 %v3616_v17, %v948_v18 }
 0x16e   : > { %952 = vrot.lane.b32.xlu0 %v950_v19, %s4224_s30 }
 0x1e0   : > { %v953_v21 = vpop.permute.xlu0 %952 }
 0x1e1   : > { %v955_v22 = vadd.f32 %v953_v21, %v945_v20 }
 0x1e3   : > { %3617 = vtanh.f32 %v955_v22  ;;  %v1052_v38 = vrot.slane %v955_v22, 6 }
 0x1ed   : > { %v3618_v23 = vpop.eup %3617 }
 0x1ee   : > { %958 = vrot.lane.b32.xlu1 %v3618_v23, %s3751_s18 }
 0x260   : > { %v959_v24 = vpop.permute.xlu1 %958 }
 0x261   : > { %v961_v25 = vmul.f32 %v3616_v17, %v959_v24 }
 0x263   : > { %963 = vrot.lane.b32.xlu1 %v961_v25, %s4226_s19 }
 0x2d5   : > { %v964_v26 = vpop.permute.xlu1 %963 }
 0x2d6   : > { %967 = vst.msk [vmem:[#allocation2] sm:$0x3] %vm966_vm2, %v964_v26  ;;  %3458 = vmatmul.mubr.msk.f32.vlgmr.msra.gmra.mrb[2].mxu0 %vm781_vm0, %v964_v26 }
 0x2d7   : > { %3466 = vmatpush3.msra.mxu0 %v3871_v3  ;;  %3467 = vmatprep.mubr.msk.f32.mxu0 %vm3748_vm1, %v3747_v1 }
 0x2d8   : > { %3475 = vmatprep.subr.mxu0 %v3747_v1 }
 0x3a9   : > { %v1036_v27 = vpop.f32.mrb[2].mxu0 }
 0x3aa   : > { %v1041_v28 = vrot.slane %v1036_v27, 6  ;;  %v3459_v29 = vpop.f32.mrb[3].mxu0 }
 0x3ac   : > { %v1043_v30 = vadd.f32 %v1041_v28, %v3895_v11 }
 0x3ae   : > { %3619 = vtanh.f32 %v1043_v30  ;;  %v3335_v32 = vmul.f32 -1.442695, %v1043_v30 }
 0x3b0   : > { %3621 = vpow2.f32 %v3335_v32 }
 0x3b8   : > { %v3620_v31 = vpop.eup %3619 }
 0x3b9   : > { %1056 = vrot.lane.b32.xlu0 %v3620_v31, %s4225_s0 }
 0x3ba   : > { %v3622_v33 = vpop.eup %3621 }
 0x3bb   : > { %v1047_v34 = vadd.f32 1.0, %v3622_v33 }
 0x3bd   : > { %3623 = vrcp.f32 %v1047_v34 }
 0x3c7   : > { %v3624_v35 = vpop.eup %3623 }
 0x3c8   : > { %v1054_v39 = vmul.f32 %v3624_v35, %v1052_v38 }
 0x42b   : > { %v1057_v36 = vpop.permute.xlu0 %1056 }
 0x42c   : > { %v1059_v37 = vmul.f32 %v3624_v35, %v1057_v36 }
 0x42e   : > { %1061 = vrot.lane.b32.xlu1 %v1059_v37, %s4224_s30 }
 0x4a0   : > { %v1062_v40 = vpop.permute.xlu1 %1061 }
 0x4a1   : > { %v1064_v41 = vadd.f32 %v1062_v40, %v1054_v39 }
 0x4a3   : > { %3625 = vtanh.f32 %v1064_v41  ;;  %v1164_v58 = vrot.slane %v1064_v41, 6 }
 0x4ad   : > { %v3626_v42 = vpop.eup %3625 }
 0x4ae   : > { %1067 = vrot.lane.b32.xlu0 %v3626_v42, %s3751_s18 }
 0x520   : > { %v1068_v43 = vpop.permute.xlu0 %1067 }
 0x521   : > { %v3912_v44 = vmul.f32 %v3624_v35, %v1068_v43 }
 0x523   : > { %v1077_v45 = vrot.slane %v3912_v44, 2 }
 0x525   : > { %1078 = vrot.lane.b32.xlu1 %v1077_v45, %s4226_s19 }
 0x597   : > { %v1079_v46 = vpop.permute.xlu1 %1078 }
 0x598   : > { %3463 = vmatmul.mubr.msk.f32.vlgmr.msra.gmra.mrb[2].mxu1 %vm781_vm0, %v1079_v46 }
 0x599   : > { %3471 = vmatpush3.msra.mxu1 %v3871_v3  ;;  %3472 = vmatprep.mubr.msk.f32.mxu1 %vm3748_vm1, %v3747_v1 }
 0x59a   : > { %3480 = vmatprep.subr.mxu1 %v3747_v1 }
 0x66b   : > { %v1148_v47 = vpop.f32.mrb[2].mxu1 }
 0x66c   : > { %v1153_v48 = vrot.slane %v1148_v47, 4  ;;  %v3464_v49 = vpop.f32.mrb[3].mxu1 }
 0x66e   : > { %v1155_v50 = vadd.f32 %v1153_v48, %v3895_v11 }
 0x670   : > { %3627 = vtanh.f32 %v1155_v50  ;;  %v3337_v52 = vmul.f32 -1.442695, %v1155_v50 }
 0x672   : > { %3629 = vpow2.f32 %v3337_v52 }
 0x67a   : > { %v3628_v51 = vpop.eup %3627 }
 0x67b   : > { %1168 = vrot.lane.b32.xlu0 %v3628_v51, %s4225_s0 }
 0x67c   : > { %v3630_v53 = vpop.eup %3629 }
 0x67d   : > { %v1159_v54 = vadd.f32 1.0, %v3630_v53 }
 0x67f   : > { %3631 = vrcp.f32 %v1159_v54 }
 0x689   : > { %v3632_v55 = vpop.eup %3631 }
 0x68a   : > { %v1166_v59 = vmul.f32 %v3632_v55, %v1164_v58 }
 0x6ed   : > { %v1169_v56 = vpop.permute.xlu0 %1168 }
 0x6ee   : > { %v1171_v57 = vmul.f32 %v3632_v55, %v1169_v56 }
 0x6f0   : > { %1173 = vrot.lane.b32.xlu1 %v1171_v57, %s4224_s30 }
 0x762   : > { %v1174_v60 = vpop.permute.xlu1 %1173 }
 0x763   : > { %v1176_v61 = vadd.f32 %v1174_v60, %v1166_v59 }
 0x765   : > { %3633 = vtanh.f32 %v1176_v61  ;;  %v1276_v18 = vrot.slane %v1176_v61, 6 }
 0x76f   : > { %v3634_v62 = vpop.eup %3633 }
 0x770   : > { %1179 = vrot.lane.b32.xlu0 %v3634_v62, %s3751_s18 }
 0x7e2   : > { %v1180_v63 = vpop.permute.xlu0 %1179 }
 0x7e3   : > { %v3925_v0 = vmul.f32 %v3632_v55, %v1180_v63 }
 0x7e5   : > { %v1189_v2 = vrot.slane %v3925_v0, 4 }
 0x7e7   : > { %1190 = vrot.lane.b32.xlu1 %v1189_v2, %s4226_s19 }
 0x859   : > { %v1191_v4 = vpop.permute.xlu1 %1190 }
 0x85a   : > { %3468 = vmatmul.mubr.msk.f32.vlgmr.msra.gmra.mrb[4].mxu0 %vm781_vm0, %v1191_v4 }
 0x85b   : > { %3476 = vmatpush3.msra.mxu0 %v3871_v3  ;;  %3477 = vmatprep.mubr.msk.f32.mxu0 %vm3748_vm1, %v3747_v1 }
 0x85c   : > { %3485 = vmatprep.subr.mxu0 %v3747_v1 }
 0x92d   : > { %v1260_v5 = vpop.f32.mrb[4].mxu0 }
 0x92e   : > { %v1265_v6 = vrot.slane %v1260_v5, 2  ;;  %v3469_v7 = vpop.f32.mrb[5].mxu0 }
 0x930   : > { %v1267_v8 = vadd.f32 %v1265_v6, %v3895_v11 }
 0x932   : > { %3635 = vtanh.f32 %v1267_v8  ;;  %v3339_v12 = vmul.f32 -1.442695, %v1267_v8 }
 0x934   : > { %3637 = vpow2.f32 %v3339_v12 }
 0x93c   : > { %v3636_v10 = vpop.eup %3635 }
 0x93d   : > { %1280 = vrot.lane.b32.xlu0 %v3636_v10, %s4225_s0 }
 0x93e   : > { %v3638_v13 = vpop.eup %3637 }
 0x93f   : > { %v1271_v14 = vadd.f32 1.0, %v3638_v13 }
 0x941   : > { %3639 = vrcp.f32 %v1271_v14 }
 0x94b   : > { %v3640_v15 = vpop.eup %3639 }
 0x94c   : > { %v1278_v19 = vmul.f32 %v3640_v15, %v1276_v18 }
 0x9af   : > { %v1281_v16 = vpop.permute.xlu0 %1280 }
 0x9b0   : > { %v1283_v17 = vmul.f32 %v3640_v15, %v1281_v16 }
 0x9b2   : > { %1285 = vrot.lane.b32.xlu1 %v1283_v17, %s4224_s30 }
 0xa24   : > { %v1286_v20 = vpop.permute.xlu1 %1285 }
 0xa25   : > { %v1288_v21 = vadd.f32 %v1286_v20, %v1278_v19 }
 0xa27   : > { %3641 = vtanh.f32 %v1288_v21  ;;  %v1385_v36 = vrot.slane %v1288_v21, 6 }
 0xa31   : > { %v3642_v11 = vpop.eup %3641 }
 0xa32   : > { %1291 = vrot.lane.b32.xlu0 %v3642_v11, %s3751_s18 }
 0xaa4   : > { %v1292_v22 = vpop.permute.xlu0 %1291 }
 0xaa5   : > { %v3938_v23 = vmul.f32 %v3640_v15, %v1292_v22 }
 0xaa7   : > { %v1301_v24 = vrot.slane %v3938_v23, 6 }
 0xaa9   : > { %1302 = vrot.lane.b32.xlu1 %v1301_v24, %s4226_s19 }
 0xb1b   : > { %v1303_v25 = vpop.permute.xlu1 %1302 }
 0xb1c   : > { %3473 = vmatmul.mubr.msk.f32.vlgmr.msra.gmra.mrb[4].mxu1 %vm781_vm0, %v1303_v25 }
 0xb1d   : > { %3481 = vmatpush3.msra.mxu1 %v3871_v3  ;;  %3482 = vmatprep.mubr.msk.f32.mxu1 %vm3748_vm1, %v3747_v1 }
 0xbef   : > { %v1372_v26 = vpop.f32.mrb[4].mxu1 }
 0xbf0   : > { %v1376_v27 = vadd.f32 %v1372_v26, %v3893_v9  ;;  %v3474_v28 = vpop.f32.mrb[5].mxu1 }
 0xbf2   : > { %3643 = vtanh.f32 %v1376_v27  ;;  %v3341_v30 = vmul.f32 -1.442695, %v1376_v27 }
 0xbf4   : > { %3645 = vpow2.f32 %v3341_v30 }
 0xbfc   : > { %v3644_v29 = vpop.eup %3643 }
 0xbfd   : > { %1389 = vrot.lane.b32.xlu0 %v3644_v29, %s4225_s0 }
 0xbfe   : > { %v3646_v31 = vpop.eup %3645 }
 0xbff   : > { %v1380_v32 = vadd.f32 1.0, %v3646_v31 }
 0xc01   : > { %3647 = vrcp.f32 %v1380_v32 }
 0xc0b   : > { %v3648_v33 = vpop.eup %3647 }
 0xc0c   : > { %v1387_v37 = vmul.f32 %v3648_v33, %v1385_v36 }
 0xc6f   : > { %v1390_v34 = vpop.permute.xlu0 %1389 }
 0xc70   : > { %v1392_v35 = vmul.f32 %v3648_v33, %v1390_v34 }
 0xc72   : > { %1394 = vrot.lane.b32.xlu1 %v1392_v35, %s4224_s30 }
 0xce4   : > { %v1395_v38 = vpop.permute.xlu1 %1394 }
 0xce5   : > { %v1397_v39 = vadd.f32 %v1395_v38, %v1387_v37 }
 0xce7   : > { %3649 = vtanh.f32 %v1397_v39  ;;  %v1493_v55 = vrot.slane %v1397_v39, 6 }
 0xcf1   : > { %v3650_v40 = vpop.eup %3649 }
 0xcf2   : > { %1400 = vrot.lane.b32.xlu0 %v3650_v40, %s3751_s18 }
 0xd64   : > { %v1401_v41 = vpop.permute.xlu0 %1400 }
 0xd65   : > { %v1403_v42 = vmul.f32 %v3648_v33, %v1401_v41 }
 0xd67   : > { %1405 = vrot.lane.b32.xlu1 %v1403_v42, %s4226_s19 }
 0xdd9   : > { %v1406_v43 = vpop.permute.xlu1 %1405 }
 0xdda   : > { %1408 = vst.msk [vmem:[#allocation2 + $0x8] sm:$0x3] %vm966_vm2, %v1406_v43  ;;  %3478 = vmatmul.mubr.msk.f32.vlgmr.msra.gmra.mrb[6].mxu0 %vm781_vm0, %v1406_v43 }
 0xddb   : > { %3486 = vmatpush3.msra.mxu0 %v3871_v3  ;;  %3487 = vmatprep.mubr.msk.f32.mxu0 %vm3748_vm1, %v3747_v1 }
 0xead   : > { %v1477_v45 = vpop.f32.mrb[6].mxu0 }
 0xeae   : > { %v1482_v46 = vrot.slane %v1477_v45, 6  ;;  %v3479_v47 = vpop.f32.mrb[7].mxu0 }
 0xeb0   : > { %v1484_v48 = vadd.f32 %v1482_v46, %v3893_v9 }
 0xeb2   : > { %3651 = vtanh.f32 %v1484_v48  ;;  %v3343_v50 = vmul.f32 -1.442695, %v1484_v48  ;;  %v4001_v48 = vld [vmem:[%s734_s26] sm:$0xff]  ;;  %s3321_s26 = sshll.u32 %s4237_s25, 2 }
 0xeb4   : > { %3653 = vpow2.f32 %v3343_v50  ;;  %v1835_v50 = vld [vmem:[%s730_s20] sm:$0xff] }
 0xebc   : > { %v3652_v49 = vpop.eup %3651 }
 0xebd   : > { %1497 = vrot.lane.b32.xlu0 %v3652_v49, %s4225_s0 }
 0xebe   : > { %v3654_v51 = vpop.eup %3653 }
 0xebf   : > { %v1488_v52 = vadd.f32 1.0, %v3654_v51  ;;  %v1836_v51 = vld [vmem:[%s730_s20 + $0x8] sm:$0xff] }
 0xec1   : > { %3655 = vrcp.f32 %v1488_v52  ;;  %v3573_v52 = vpack.c.bf16 %v1836_v51, %v1835_v50 }
 0xec3   : > { %3574 = vmatprep.subr.bf16.mxu0 %v3573_v52 }
 0xecb   : > { %v3656_v53 = vpop.eup %3655 }
 0xecc   : > { %v1495_v56 = vmul.f32 %v3656_v53, %v1493_v55  ;;  %v3348_v55 = vld [vmem:[%s725_s23] ss:$0 sm:$0xff] }
 0xf2f   : > { %v1498_v54 = vpop.permute.xlu0 %1497 }
 0xf30   : > { %v1500_v3 = vmul.f32 %v3656_v53, %v1498_v54  ;;  %v1838_v54 = vld [vmem:[%s730_s20 + $0x18] sm:$0xff] }
 0xf32   : > { %1502 = vrot.lane.b32.xlu1 %v1500_v3, %s4224_s30 }
 0xfa4   : > { %v1503_v57 = vpop.permute.xlu1 %1502 }
 0xfa5   : > { %v1505_v58 = vadd.f32 %v1503_v57, %v1495_v56 }
 0xfa7   : > { %3657 = vtanh.f32 %v1505_v58  ;;  %v1604_v16 = vrot.slane %v1505_v58, 6 }
 0xfb1   : > { %v3658_v59 = vpop.eup %3657 }
 0xfb2   : > { %1508 = vrot.lane.b32.xlu0 %v3658_v59, %s3751_s18 }
0x1024   : > { %v1509_v60 = vpop.permute.xlu0 %1508 }
0x1025   : > { %v3960_v61 = vmul.f32 %v3656_v53, %v1509_v60  ;;  %v1837_v53 = vld [vmem:[%s730_s20 + $0x10] sm:$0xff]  ;;  %s4223_s20 = sshll.u32 %s4237_s25, 4 }
0x1026   : > { %v3577_v3 = vpack.c.bf16 %v1838_v54, %v1837_v53  ;;  %s4052_s23 = scalar_lea.vmem %s4219_s16, %s4223_s20 }
0x1027   : > { %v1517_v62 = vrot.slane %v3960_v61, 2 }
0x1029   : > { %1518 = vrot.lane.b32.xlu1 %v1517_v62, %s4226_s19 }
0x109b   : > { %v1519_v63 = vpop.permute.xlu1 %1518 }
0x109c   : > { %3483 = vmatmul.mubr.msk.f32.vlgmr.msra.gmra.mrb[6].mxu1 %vm781_vm0, %v1519_v63 }
0x116f   : > { %v1588_v2 = vpop.f32.mrb[6].mxu1 }
0x1170   : > { %v1593_v4 = vrot.slane %v1588_v2, 4  ;;  %v3484_v5 = vpop.f32.mrb[7].mxu1  ;;  %v3351_v2 = vld [vmem:[%s737_s1] ss:$0 sm:$0xff]  ;;  %s4234_s1 = smov 8  }
0x1172   : > { %v1595_v6 = vadd.f32 %v1593_v4, %v3893_v9 }
0x1174   : > { %3659 = vtanh.f32 %v1595_v6  ;;  %v3345_v8 = vmul.f32 -1.442695, %v1595_v6 }
0x1176   : > { %3661 = vpow2.f32 %v3345_v8 }
0x117e   : > { %v3660_v7 = vpop.eup %3659 }
0x117f   : > { %1608 = vrot.lane.b32.xlu0 %v3660_v7, %s4225_s0 }
0x1180   : > { %v3662_v10 = vpop.eup %3661 }
0x1181   : > { %v1599_v12 = vadd.f32 1.0, %v3662_v10 }
0x1183   : > { %3663 = vrcp.f32 %v1599_v12 }
0x118d   : > { %v3664_v13 = vpop.eup %3663 }
0x118e   : > { %v1606_v17 = vmul.f32 %v3664_v13, %v1604_v16 }
0x11f1   : > { %v1609_v14 = vpop.permute.xlu0 %1608 }
0x11f2   : > { %v1611_v15 = vmul.f32 %v3664_v13, %v1609_v14 }
0x11f4   : > { %1613 = vrot.lane.b32.xlu1 %v1611_v15, %s4224_s30 }
0x1266   : > { %v1614_v18 = vpop.permute.xlu1 %1613 }
0x1267   : > { %v1616_v19 = vadd.f32 %v1614_v18, %v1606_v17 }
0x1269   : > { %3665 = vtanh.f32 %v1616_v19 }
0x1273   : > { %v3666_v20 = vpop.eup %3665 }
0x1274   : > { %1619 = vrot.lane.b32.xlu0 %v3666_v20, %s3751_s18 }
0x12e6   : > { %v1620_v21 = vpop.permute.xlu0 %1619 }
0x12e7   : > { %v1622_v11 = vmul.f32 %v3664_v13, %v1620_v21 }
0x12e9   : > { %v1628_v22 = vrot.slane %v1622_v11, 4 }
0x12eb   : > { %1629 = vrot.lane.b32.xlu1 %v1628_v22, %s4226_s19 }
0x135d   : > { %v1630_v24 = vpop.permute.xlu1 %1629 }
0x135e   : > { %3488 = vmatmul.mubr.msk.f32.vlgmr.msra.gmra.mrb[8].mxu0 %vm781_vm0, %v1630_v24 }
0x135f   : > { %3576 = vmatpush3.bf16.msra.mxu0 %v3573_v52 }
0x1360   : > { %3578 = vmatprep.subr.bf16.mxu0 %v3577_v3 }
0x1363   : > { %3580 = vmatpush3.bf16.msra.mxu0 %v3577_v3 }
0x1364   : > { %3516 = vmatprep.subr.mxu0 %v3747_v1 }
0x1431   : > { %v1699_v25 = vpop.f32.mrb[8].mxu0 }
0x1432   : > { %v1704_v26 = vrot.slane %v1699_v25, 2  ;;  %v3489_v27 = vpop.f32.mrb[9].mxu0 }
0x1434   : > { %v1706_v28 = vadd.f32 %v1704_v26, %v3893_v9  ;;  %v1715_v9 = vrot.slane %v1616_v19, 6 }
0x1436   : > { %3667 = vtanh.f32 %v1706_v28  ;;  %v3347_v30 = vmul.f32 -1.442695, %v1706_v28 }
0x1438   : > { %3669 = vpow2.f32 %v3347_v30 }
0x1440   : > { %v3668_v29 = vpop.eup %3667 }
0x1441   : > { %1719 = vrot.lane.b32.xlu0 %v3668_v29, %s4225_s0 }
0x1442   : > { %v3670_v31 = vpop.eup %3669 }
0x1443   : > { %v1710_v32 = vadd.f32 1.0, %v3670_v31 }
0x1445   : > { %3671 = vrcp.f32 %v1710_v32 }
0x144f   : > { %v3672_v33 = vpop.eup %3671 }
0x1450   : > { %v1717_v36 = vmul.f32 %v3672_v33, %v1715_v9 }
0x14b3   : > { %v1720_v34 = vpop.permute.xlu0 %1719 }
0x14b4   : > { %v1722_v35 = vmul.f32 %v3672_v33, %v1720_v34 }
0x14b6   : > { %1724 = vrot.lane.b32.xlu1 %v1722_v35, %s4224_s30 }
0x14ba   : > { %1072 = vrot.lane.b32.xlu1 %v3912_v44, %s4226_s19 }
0x14be   : > { %1296 = vrot.lane.b32.xlu1 %v3938_v23, %s4226_s19  ;;  %v1741_v23 = vld [vmem:[%s722_s21] sm:$0xff]  ;;  %s4231_s21 = sld [smem:[#allocation5_spill]] }
0x14bf   : > { %3490 = vmatprep.subr.mxu1 %v1741_v23 }
0x14c0   : > { %3491 = vmatpush3.msra.mxu1 %v1741_v23 }
0x14c1   : > { %3506 = vmatprep.subr.mxu1 %v3747_v1 }
0x14c2   : > { %1624 = vrot.lane.b32.xlu1 %v1622_v11, %s4226_s19 }
0x1528   : > { %v1725_v37 = vpop.permute.xlu1 %1724 }
0x1529   : > { %v1727_v38 = vadd.f32 %v1725_v37, %v1717_v36 }
0x152b   : > { %3673 = vtanh.f32 %v1727_v38 }
0x152c   : > { %v1073_v39 = vpop.permute.xlu1 %1072 }
0x152d   : > { %1076 = vst.msk [vmem:[#allocation2] sm:$0xc] %vm1075_vm3, %v1073_v39 }
0x1530   : > { %v1297_v40 = vpop.permute.xlu1 %1296 }
0x1531   : > { %1300 = vst.msk [vmem:[#allocation2] sm:$0xc0] %vm1299_vm4, %v1297_v40 }
0x1534   : > { %v1625_v44 = vpop.permute.xlu1 %1624 }
0x1535   : > { %v3674_v41 = vpop.eup %3673  ;;  %1627 = vst.msk [vmem:[#allocation2 + $0x8] sm:$0x30] %vm1187_vm5, %v1625_v44 }
0x1536   : > { %1730 = vrot.lane.b32.xlu0 %v3674_v41, %s3751_s18 }
0x153a   : > { %1184 = vrot.lane.b32.xlu0 %v3925_v0, %s4226_s19 }
0x153e   : > { %1513 = vrot.lane.b32.xlu0 %v3960_v61, %s4226_s19 }
0x15a8   : > { %v1731_v42 = vpop.permute.xlu0 %1730 }
0x15a9   : > { %v1733_v43 = vmul.f32 %v3672_v33, %v1731_v42 }
0x15ab   : > { %1735 = vrot.lane.b32.xlu0 %v1733_v43, %s4226_s19 }
0x15ac   : > { %v1185_v45 = vpop.permute.xlu0 %1184 }
0x15ad   : > { %1188 = vst.msk [vmem:[#allocation2] sm:$0x30] %vm1187_vm5, %v1185_v45 }
0x15b0   : > { %v1514_v0 = vpop.permute.xlu0 %1513 }
0x15b1   : > { %1516 = vst.msk [vmem:[#allocation2 + $0x8] sm:$0xc] %vm1075_vm3, %v1514_v0 }
0x15b4   : > { %v1739_v46 = vld [vmem:[#allocation2] sm:$0xff] }
0x15b5   : > { %3492 = vmatprep.mubr.msk.f32.mxu1 %vm781_vm0, %v1739_v46 }
0x161d   : > { %v1736_v47 = vpop.permute.xlu0 %1735 }
0x161e   : > { %1738 = vst.msk [vmem:[#allocation2 + $0x8] sm:$0xc0] %vm1299_vm4, %v1736_v47 }
0x1625   : > { %v1740_v49 = vld [vmem:[#allocation2 + $0x8] sm:$0xff] }
0x1626   : > { %3493 = vmatmul.mubr.msk.f32.vlgmr.msra.gmra.mrb[8].mxu1 %vm781_vm0, %v1740_v49 }
0x1627   : > { %3507 = vmatpush3.msra.mxu1 %v4001_v48  ;;  %3508 = vmatprep.mubr.msk.f32.mxu1 %vm3748_vm1, %v3747_v1 }
0x1628   : > { %3511 = vmatprep.subr.mxu1 %v3747_v1 }
0x162a   : > { %3509 = vmatmul.mubr.f32.vlgmr.msra.gmra.mrb[10].mxu1 %v3747_v1 }
0x162b   : > { %3512 = vmatpush3.msra.mxu1 %v4001_v48  ;;  %3513 = vmatprep.mubr.msk.f32.mxu1 %vm3748_vm1, %v3747_v1 }
0x162c   : > { %3521 = vmatprep.subr.mxu1 %v3747_v1 }
0x16f9   : > { %v3494_v56 = vpop.f32.mrb[8].mxu1 }
0x16fa   : > { %v1827_v57 = vadd.f32 %v3494_v56, %v3348_v55  ;;  %v1821_v58 = vpop.f32.mrb[9].mxu1 }
0x16fb   : > { %v1822_v59 = vadd.f32 %v3348_v55, %v1821_v58 }
0x16fc   : > { %1832 = vst.msk [vmem:[#allocation3 + $0x8] sm:$0xff] %vm1830_vm6, %v1827_v57 }
0x16fd   : > { %1831 = vst.msk [vmem:[#allocation3] sm:$0xff] %vm1830_vm6, %v1822_v59  ;;  %v1994_v62 = vpop.f32.mrb[10].mxu1 }
0x16fe   : > { %v3510_v63 = vpop.f32.mrb[11].mxu1 }
0x1703   : > { %v1834_v61 = vld [vmem:[#allocation3 + $0x8] sm:$0xff] }
0x1704   : > { %v1833_v60 = vld [vmem:[#allocation3] sm:$0xff] }
0x1705   : > { %3503 = vmatprep.mubr.msk.f32.mxu0 %vm1830_vm6, %v1833_v60 }
0x1706   : > { %3504 = vmatmul.mubr.msk.f32.vlgmr.msra.gmra.mrb[10].mxu0 %vm1830_vm6, %v1834_v61 }
0x1707   : > { %3517 = vmatpush3.msra.mxu0 %v4001_v48  ;;  %3518 = vmatprep.mubr.msk.f32.mxu0 %vm3748_vm1, %v3747_v1 }
0x1708   : > { %3526 = vmatprep.subr.mxu0 %v3747_v1 }
0x17d9   : > { %v3505_v4 = vpop.f32.mrb[10].mxu0 }
0x17da   : > { %v4037_v5 = vadd.f32 %v3505_v4, %v3351_v2  ;;  %v1918_v6 = vpop.f32.mrb[11].mxu0 }
0x17db   : > { %v4039_v7 = vadd.f32 %v3351_v2, %v1918_v6 }
0x17dd   : > { %v1998_v8 = vadd.f32 %v1994_v62, %v4039_v7 }
0x17df   : > { %3675 = vtanh.f32 %v1998_v8  ;;  %v3354_v12 = vmul.f32 -1.442695, %v1998_v8 }
0x17e1   : > { %3677 = vpow2.f32 %v3354_v12 }
0x17e9   : > { %v3676_v10 = vpop.eup %3675 }
0x17ea   : > { %2008 = vrot.lane.b32.xlu1 %v3676_v10, %s4225_s0 }
0x17eb   : > { %v3678_v13 = vpop.eup %3677 }
0x17ec   : > { %v2002_v14 = vadd.f32 1.0, %v3678_v13 }
0x17ee   : > { %3679 = vrcp.f32 %v2002_v14 }
0x17f8   : > { %v3680_v15 = vpop.eup %3679 }
0x17f9   : > { %v2006_v18 = vmul.f32 0.0, %v3680_v15 }
0x185c   : > { %v2009_v16 = vpop.permute.xlu1 %2008 }
0x185d   : > { %v2011_v17 = vmul.f32 %v3680_v15, %v2009_v16 }
0x185f   : > { %2013 = vrot.lane.b32.xlu0 %v2011_v17, %s4224_s30 }
0x18d1   : > { %v2014_v19 = vpop.permute.xlu0 %2013 }
0x18d2   : > { %v2016_v20 = vadd.f32 %v2014_v19, %v2006_v18 }
0x18d4   : > { %3681 = vtanh.f32 %v2016_v20  ;;  %v2112_v9 = vrot.slane %v2016_v20, 6 }
0x18de   : > { %v3682_v21 = vpop.eup %3681 }
0x18df   : > { %2019 = vrot.lane.b32.xlu1 %v3682_v21, %s3751_s18 }
0x1951   : > { %v2020_v11 = vpop.permute.xlu1 %2019 }
0x1952   : > { %v2022_v22 = vmul.f32 %v3680_v15, %v2020_v11 }
0x1954   : > { %2024 = vrot.lane.b32.xlu0 %v2022_v22, %s4226_s19 }
0x19c6   : > { %v2025_v24 = vpop.permute.xlu0 %2024 }
0x19c7   : > { %2027 = vst.msk [vmem:[%s4052_s23] sm:$0x3] %vm966_vm2, %v2025_v24  ;;  %3514 = vmatmul.mubr.msk.f32.vlgmr.msra.gmra.mrb[12].mxu1 %vm781_vm0, %v2025_v24 }
0x19c8   : > { %3522 = vmatpush3.msra.mxu1 %v4001_v48  ;;  %3523 = vmatprep.mubr.msk.f32.mxu1 %vm3748_vm1, %v3747_v1 }
0x19c9   : > { %3531 = vmatprep.subr.mxu1 %v3747_v1 }
0x1a9a   : > { %v2096_v25 = vpop.f32.mrb[12].mxu1 }
0x1a9b   : > { %v2101_v26 = vrot.slane %v2096_v25, 6  ;;  %v3515_v27 = vpop.f32.mrb[13].mxu1 }
0x1a9d   : > { %v2103_v28 = vadd.f32 %v2101_v26, %v4039_v7 }
0x1a9f   : > { %3683 = vtanh.f32 %v2103_v28  ;;  %v3356_v30 = vmul.f32 -1.442695, %v2103_v28 }
0x1aa1   : > { %3685 = vpow2.f32 %v3356_v30 }
0x1aa9   : > { %v3684_v29 = vpop.eup %3683 }
0x1aaa   : > { %2116 = vrot.lane.b32.xlu1 %v3684_v29, %s4225_s0 }
0x1aab   : > { %v3686_v31 = vpop.eup %3685 }
0x1aac   : > { %v2107_v32 = vadd.f32 1.0, %v3686_v31 }
0x1aae   : > { %3687 = vrcp.f32 %v2107_v32 }
0x1ab8   : > { %v3688_v33 = vpop.eup %3687 }
0x1ab9   : > { %v2114_v36 = vmul.f32 %v3688_v33, %v2112_v9 }
0x1b1c   : > { %v2117_v34 = vpop.permute.xlu1 %2116 }
0x1b1d   : > { %v2119_v35 = vmul.f32 %v3688_v33, %v2117_v34 }
0x1b1f   : > { %2121 = vrot.lane.b32.xlu0 %v2119_v35, %s4224_s30 }
0x1b91   : > { %v2122_v37 = vpop.permute.xlu0 %2121 }
0x1b92   : > { %v2124_v38 = vadd.f32 %v2122_v37, %v2114_v36 }
0x1b94   : > { %3689 = vtanh.f32 %v2124_v38  ;;  %v2223_v54 = vrot.slane %v2124_v38, 6 }
0x1b9e   : > { %v3690_v39 = vpop.eup %3689 }
0x1b9f   : > { %2127 = vrot.lane.b32.xlu1 %v3690_v39, %s3751_s18 }
0x1c11   : > { %v2128_v40 = vpop.permute.xlu1 %2127 }
0x1c12   : > { %v4065_v44 = vmul.f32 %v3688_v33, %v2128_v40 }
0x1c14   : > { %v2136_v41 = vrot.slane %v4065_v44, 2 }
0x1c16   : > { %2137 = vrot.lane.b32.xlu0 %v2136_v41, %s4226_s19 }
0x1c88   : > { %v2138_v23 = vpop.permute.xlu0 %2137 }
0x1c89   : > { %3519 = vmatmul.mubr.msk.f32.vlgmr.msra.gmra.mrb[12].mxu0 %vm781_vm0, %v2138_v23 }
0x1c8a   : > { %3527 = vmatpush3.msra.mxu0 %v4001_v48  ;;  %3528 = vmatprep.mubr.msk.f32.mxu0 %vm3748_vm1, %v3747_v1 }
0x1c8b   : > { %3536 = vmatprep.subr.mxu0 %v3747_v1 }
0x1d5c   : > { %v2207_v42 = vpop.f32.mrb[12].mxu0 }
0x1d5d   : > { %v2212_v43 = vrot.slane %v2207_v42, 4  ;;  %v3520_v45 = vpop.f32.mrb[13].mxu0 }
0x1d5f   : > { %v2214_v0 = vadd.f32 %v2212_v43, %v4039_v7 }
0x1d61   : > { %3691 = vtanh.f32 %v2214_v0  ;;  %v3358_v47 = vmul.f32 -1.442695, %v2214_v0 }
0x1d63   : > { %3693 = vpow2.f32 %v3358_v47 }
0x1d6b   : > { %v3692_v46 = vpop.eup %3691 }
0x1d6c   : > { %2227 = vrot.lane.b32.xlu1 %v3692_v46, %s4225_s0 }
0x1d6d   : > { %v3694_v49 = vpop.eup %3693 }
0x1d6e   : > { %v2218_v50 = vadd.f32 1.0, %v3694_v49 }
0x1d70   : > { %3695 = vrcp.f32 %v2218_v50 }
0x1d7a   : > { %v3696_v51 = vpop.eup %3695 }
0x1d7b   : > { %v2225_v3 = vmul.f32 %v3696_v51, %v2223_v54 }
0x1dde   : > { %v2228_v52 = vpop.permute.xlu1 %2227 }
0x1ddf   : > { %v2230_v53 = vmul.f32 %v3696_v51, %v2228_v52 }
0x1de1   : > { %2232 = vrot.lane.b32.xlu0 %v2230_v53, %s4224_s30 }
0x1e53   : > { %v2233_v55 = vpop.permute.xlu0 %2232 }
0x1e54   : > { %v2235_v56 = vadd.f32 %v2233_v55, %v2225_v3 }
0x1e56   : > { %3697 = vtanh.f32 %v2235_v56  ;;  %v2334_v16 = vrot.slane %v2235_v56, 6 }
0x1e60   : > { %v3698_v57 = vpop.eup %3697 }
0x1e61   : > { %2238 = vrot.lane.b32.xlu1 %v3698_v57, %s3751_s18 }
0x1ed3   : > { %v2239_v58 = vpop.permute.xlu1 %2238 }
0x1ed4   : > { %v4078_v59 = vmul.f32 %v3696_v51, %v2239_v58 }
0x1ed6   : > { %v2247_v60 = vrot.slane %v4078_v59, 4 }
0x1ed8   : > { %2248 = vrot.lane.b32.xlu0 %v2247_v60, %s4226_s19 }
0x1f4a   : > { %v2249_v61 = vpop.permute.xlu0 %2248 }
0x1f4b   : > { %3524 = vmatmul.mubr.msk.f32.vlgmr.msra.gmra.mrb[14].mxu1 %vm781_vm0, %v2249_v61 }
0x1f4c   : > { %3532 = vmatpush3.msra.mxu1 %v4001_v48  ;;  %3533 = vmatprep.mubr.msk.f32.mxu1 %vm3748_vm1, %v3747_v1 }
0x1f4d   : > { %3541 = vmatprep.subr.mxu1 %v3747_v1 }
0x201e   : > { %v2318_v62 = vpop.f32.mrb[14].mxu1 }
0x201f   : > { %v2323_v63 = vrot.slane %v2318_v62, 2  ;;  %v3525_v2 = vpop.f32.mrb[15].mxu1 }
0x2021   : > { %v2325_v4 = vadd.f32 %v2323_v63, %v4039_v7 }
0x2023   : > { %3699 = vtanh.f32 %v2325_v4  ;;  %v3360_v8 = vmul.f32 -1.442695, %v2325_v4 }
0x2025   : > { %3701 = vpow2.f32 %v3360_v8 }
0x202d   : > { %v3700_v6 = vpop.eup %3699 }
0x202e   : > { %2338 = vrot.lane.b32.xlu1 %v3700_v6, %s4225_s0 }
0x202f   : > { %v3702_v10 = vpop.eup %3701 }
0x2030   : > { %v2329_v12 = vadd.f32 1.0, %v3702_v10 }
0x2032   : > { %3703 = vrcp.f32 %v2329_v12 }
0x203c   : > { %v3704_v13 = vpop.eup %3703 }
0x203d   : > { %v2336_v17 = vmul.f32 %v3704_v13, %v2334_v16 }
0x20a0   : > { %v2339_v14 = vpop.permute.xlu1 %2338 }
0x20a1   : > { %v2341_v15 = vmul.f32 %v3704_v13, %v2339_v14 }
0x20a3   : > { %2343 = vrot.lane.b32.xlu0 %v2341_v15, %s4224_s30 }
0x2115   : > { %v2344_v18 = vpop.permute.xlu0 %2343 }
0x2116   : > { %v2346_v19 = vadd.f32 %v2344_v18, %v2336_v17  ;;  %v2796_v18 = vld [vmem:[%s4231_s21] sm:$0xff] }
0x2118   : > { %3705 = vtanh.f32 %v2346_v19  ;;  %v2442_v34 = vrot.slane %v2346_v19, 6 }
0x2122   : > { %v3706_v7 = vpop.eup %3705 }
0x2123   : > { %2349 = vrot.lane.b32.xlu1 %v3706_v7, %s3751_s18  ;;  %v2797_v7 = vld [vmem:[%s4231_s21 + $0x8] sm:$0xff] }
0x2195   : > { %v2350_v20 = vpop.permute.xlu1 %2349 }
0x2196   : > { %v4091_v21 = vmul.f32 %v3704_v13, %v2350_v20 }
0x2198   : > { %v2358_v11 = vrot.slane %v4091_v21, 6 }
0x219a   : > { %2359 = vrot.lane.b32.xlu0 %v2358_v11, %s4226_s19 }
0x220c   : > { %v2360_v22 = vpop.permute.xlu0 %2359 }
0x220d   : > { %3529 = vmatmul.mubr.msk.f32.vlgmr.msra.gmra.mrb[14].mxu0 %vm781_vm0, %v2360_v22 }
0x220e   : > { %3537 = vmatpush3.msra.mxu0 %v4001_v48  ;;  %3538 = vmatprep.mubr.msk.f32.mxu0 %vm3748_vm1, %v3747_v1 }
0x22e0   : > { %v2429_v24 = vpop.f32.mrb[14].mxu0 }
0x22e1   : > { %v2433_v25 = vadd.f32 %v2429_v24, %v4037_v5  ;;  %v3530_v26 = vpop.f32.mrb[15].mxu0 }
0x22e3   : > { %3707 = vtanh.f32 %v2433_v25  ;;  %v3362_v28 = vmul.f32 -1.442695, %v2433_v25 }
0x22e5   : > { %3709 = vpow2.f32 %v3362_v28 }
0x22ed   : > { %v3708_v27 = vpop.eup %3707 }
0x22ee   : > { %2446 = vrot.lane.b32.xlu1 %v3708_v27, %s4225_s0 }
0x22ef   : > { %v3710_v29 = vpop.eup %3709 }
0x22f0   : > { %v2437_v30 = vadd.f32 1.0, %v3710_v29 }
0x22f2   : > { %3711 = vrcp.f32 %v2437_v30 }
0x22fc   : > { %v3712_v31 = vpop.eup %3711 }
0x22fd   : > { %v2444_v35 = vmul.f32 %v3712_v31, %v2442_v34 }
0x2360   : > { %v2447_v32 = vpop.permute.xlu1 %2446 }
0x2361   : > { %v2449_v33 = vmul.f32 %v3712_v31, %v2447_v32 }
0x2363   : > { %2451 = vrot.lane.b32.xlu0 %v2449_v33, %s4224_s30 }
0x23d5   : > { %v2452_v9 = vpop.permute.xlu0 %2451 }
0x23d6   : > { %v2454_v36 = vadd.f32 %v2452_v9, %v2444_v35 }
0x23d8   : > { %3713 = vtanh.f32 %v2454_v36 }
0x23e2   : > { %v3714_v37 = vpop.eup %3713 }
0x23e3   : > { %2457 = vrot.lane.b32.xlu1 %v3714_v37, %s3751_s18 }
0x2455   : > { %v2458_v38 = vpop.permute.xlu1 %2457 }
0x2456   : > { %v2460_v39 = vmul.f32 %v3712_v31, %v2458_v38 }
0x2458   : > { %2462 = vrot.lane.b32.xlu0 %v2460_v39, %s4226_s19 }
0x24ca   : > { %v2463_v40 = vpop.permute.xlu0 %2462 }
0x24cb   : > { %2465 = vst.msk [vmem:[%s4052_s23 + $0x8] sm:$0x3] %vm966_vm2, %v2463_v40  ;;  %3534 = vmatmul.mubr.msk.f32.vlgmr.msra.gmra.mrb[16].mxu1 %vm781_vm0, %v2463_v40 }
0x24cc   : > { %3542 = vmatpush3.msra.mxu1 %v4001_v48  ;;  %3543 = vmatprep.mubr.msk.f32.mxu1 %vm3748_vm1, %v3747_v1  ;;  %v2550_v1 = vrot.slane %v2454_v36, 6 }
0x259e   : > { %v2534_v41 = vpop.f32.mrb[16].mxu1 }
0x259f   : > { %v2539_v23 = vrot.slane %v2534_v41, 6  ;;  %v3535_v42 = vpop.f32.mrb[17].mxu1 }
0x25a1   : > { %v2541_v43 = vadd.f32 %v2539_v23, %v4037_v5 }
0x25a3   : > { %3715 = vtanh.f32 %v2541_v43  ;;  %v3364_v0 = vmul.f32 -1.442695, %v2541_v43 }
0x25a5   : > { %3717 = vpow2.f32 %v3364_v0 }
0x25ad   : > { %v3716_v45 = vpop.eup %3715 }
0x25ae   : > { %2554 = vrot.lane.b32.xlu1 %v3716_v45, %s4225_s0 }
0x25af   : > { %v3718_v46 = vpop.eup %3717 }
0x25b0   : > { %v2545_v47 = vadd.f32 1.0, %v3718_v46 }
0x25b2   : > { %3719 = vrcp.f32 %v2545_v47 }
0x25bc   : > { %v3720_v49 = vpop.eup %3719 }
0x25bd   : > { %v2552_v51 = vmul.f32 %v3720_v49, %v2550_v1 }
0x2620   : > { %v2555_v50 = vpop.permute.xlu1 %2554 }
0x2621   : > { %v2557_v48 = vmul.f32 %v3720_v49, %v2555_v50 }
0x2623   : > { %2559 = vrot.lane.b32.xlu0 %v2557_v48, %s4224_s30 }
0x2695   : > { %v2560_v52 = vpop.permute.xlu0 %2559 }
0x2696   : > { %v2562_v53 = vadd.f32 %v2560_v52, %v2552_v51 }
0x2698   : > { %3721 = vtanh.f32 %v2562_v53  ;;  %v2661_v13 = vrot.slane %v2562_v53, 6 }
0x26a2   : > { %v3722_v54 = vpop.eup %3721 }
0x26a3   : > { %2565 = vrot.lane.b32.xlu1 %v3722_v54, %s3751_s18 }
0x2715   : > { %v2566_v3 = vpop.permute.xlu1 %2565 }
0x2716   : > { %v4114_v55 = vmul.f32 %v3720_v49, %v2566_v3 }
0x2718   : > { %v2574_v56 = vrot.slane %v4114_v55, 2 }
0x271a   : > { %2575 = vrot.lane.b32.xlu0 %v2574_v56, %s4226_s19  ;;  %s744_s19 = scalar_lea.vmem %s4214_s11, %s4237_s25 }
0x271b   : > { %v3369_v28 = vld [vmem:[%s744_s19] ss:$0 sm:$0xff] }
0x278c   : > { %v2576_v57 = vpop.permute.xlu0 %2575 }
0x278d   : > { %3539 = vmatmul.mubr.msk.f32.vlgmr.msra.gmra.mrb[16].mxu0 %vm781_vm0, %v2576_v57 }
0x278e   : > { %3548 = vmatprep.mubr.msk.f32.mxu0 %vm2806_vm8, %v2796_v18 }
0x2860   : > { %v2645_v58 = vpop.f32.mrb[16].mxu0 }
0x2861   : > { %v2650_v60 = vrot.slane %v2645_v58, 4  ;;  %v3540_v61 = vpop.f32.mrb[17].mxu0 }
0x2863   : > { %v2652_v62 = vadd.f32 %v2650_v60, %v4037_v5 }
0x2865   : > { %3723 = vtanh.f32 %v2652_v62  ;;  %v3366_v2 = vmul.f32 -1.442695, %v2652_v62 }
0x2867   : > { %3725 = vpow2.f32 %v3366_v2 }
0x286f   : > { %v3724_v63 = vpop.eup %3723 }
0x2870   : > { %2665 = vrot.lane.b32.xlu1 %v3724_v63, %s4225_s0 }
0x2871   : > { %v3726_v4 = vpop.eup %3725 }
0x2872   : > { %v2656_v6 = vadd.f32 1.0, %v3726_v4 }
0x2874   : > { %3727 = vrcp.f32 %v2656_v6 }
0x287e   : > { %v3728_v8 = vpop.eup %3727 }
0x287f   : > { %v2663_v14 = vmul.f32 %v3728_v8, %v2661_v13 }
0x28e2   : > { %v2666_v10 = vpop.permute.xlu1 %2665 }
0x28e3   : > { %v2668_v12 = vmul.f32 %v3728_v8, %v2666_v10 }
0x28e5   : > { %2670 = vrot.lane.b32.xlu0 %v2668_v12, %s4224_s30  ;;  %s741_s30 = scalar_lea.vmem %s4213_s10, %s3321_s26  ;;  %s760_s26 = scalar_lea.vmem %s4218_s15, %s4237_s25 }
0x28e6   : > { %v2798_v19 = vld [vmem:[%s741_s30] sm:$0xf]  ;;  %s749_s30 = scalar_lea.vmem %s4215_s12, %s4014_s29 }
0x28e7   : > { %3546 = vmatprep.subr.msk.mxu0 %vm2813_vm7, %v2798_v19  ;;  %v2892_v26 = vld [vmem:[%s749_s30] sm:$0xff]  ;;  %v2893_v27 = vld [vmem:[%s749_s30 + $0x8] sm:$0xff]  ;;  %v2894_v32 = vld [vmem:[%s749_s30 + $0x10] sm:$0xff] }
0x28e8   : > { %3547 = vmatpush3.msk.msra.mxu0 %vm2813_vm7, %v2798_v19  ;;  %v3581_v30 = vpack.c.bf16 %v2893_v27, %v2892_v26  ;;  %v2895_v33 = vld [vmem:[%s749_s30 + $0x18] sm:$0xff]  ;;  %s757_s30 = scalar_lea.vmem %s4217_s14, %s4014_s29  ;;  %v3376_v4 = vld [vmem:[%s760_s26] ss:$0 sm:$0xff] }
0x28e9   : > { %3549 = vmatmul.mubr.msk.f32.vlgmr.msra.gmra.mrb[18].mxu0 %vm2806_vm8, %v2797_v7  ;;  %v3585_v34 = vpack.c.bf16 %v2895_v33, %v2894_v32  ;;  %v2990_v0 = vld [vmem:[%s757_s30] sm:$0xff]  ;;  %v2991_v46 = vld [vmem:[%s757_s30 + $0x8] sm:$0xff]  ;;  %v2992_v51 = vld [vmem:[%s757_s30 + $0x10] sm:$0xff] }
0x28ea   : > { %3582 = vmatprep.subr.bf16.mxu1 %v3581_v30  ;;  %v3589_v47 = vpack.c.bf16 %v2991_v46, %v2990_v0  ;;  %v2993_v52 = vld [vmem:[%s757_s30 + $0x18] sm:$0xff]  ;;  %s4235_s30 = sshll.u32 %s4237_s25, 4 }
0x28eb   : > { %v3593_v3 = vpack.c.bf16 %v2993_v52, %v2992_v51  ;;  %s770_s19 = scalar_lea.vmem %s4220_s17, %s4235_s30 }
0x28ec   : > { %3590 = vmatprep.subr.bf16.mxu0 %v3589_v47 }
0x28ed   : > { %3592 = vmatpush3.bf16.msra.mxu0 %v3589_v47 }
0x28ee   : > { %3594 = vmatprep.subr.bf16.mxu0 %v3593_v3 }
0x28f1   : > { %3596 = vmatpush3.bf16.msra.mxu0 %v3593_v3 }
0x2957   : > { %v2671_v15 = vpop.permute.xlu0 %2670 }
0x2958   : > { %v4122_v16 = vadd.f32 %v2671_v15, %v2663_v14 }
0x295a   : > { %3729 = vtanh.f32 %v4122_v16 }
0x2964   : > { %v3730_v17 = vpop.eup %3729 }
0x2965   : > { %2676 = vrot.lane.b32.xlu1 %v3730_v17, %s3751_s18 }
0x29bc   : > { %v3550_v25 = vpop.f32.mrb[18].mxu0 }
0x29bd   : > { %v2883_v29 = vpop.f32.mrb[19].mxu0  ;;  %v2889_v35 = vadd.f32 %v3550_v25, %v3369_v28 }
0x29be   : > { %v2884_v31 = vadd.f32 %v3369_v28, %v2883_v29 }
0x29d7   : > { %v2677_v20 = vpop.permute.xlu1 %2676 }
0x29d8   : > { %v4136_v11 = vmul.f32 %v3728_v8, %v2677_v20 }
0x29da   : > { %v2685_v22 = vrot.slane %v4136_v11, 4 }
0x29dc   : > { %2686 = vrot.lane.b32.xlu0 %v2685_v22, %s4232_s27 }
0x2a4e   : > { %v2687_v24 = vpop.permute.xlu0 %2686 }
0x2a4f   : > { %3544 = vmatmul.mubr.msk.f32.vlgmr.msra.gmra.mrb[18].mxu1 %vm781_vm0, %v2687_v24 }
0x2a50   : > { %3559 = vmatprep.mubr.msk.f32.mxu1 %vm1830_vm6, %v2884_v31  ;;  %3584 = vmatpush3.bf16.msra.mxu1 %v3581_v30 }
0x2a51   : > { %3586 = vmatprep.subr.bf16.mxu1 %v3585_v34 }
0x2a54   : > { %3588 = vmatpush3.bf16.msra.mxu1 %v3585_v34 }
0x2a57   : > { %3560 = vmatmul.mubr.msk.f32.vlgmr.msra.gmra.mrb[20].mxu1 %vm1830_vm6, %v2889_v35 }
0x2b22   : > { %v2756_v9 = vpop.f32.mrb[18].mxu1 }
0x2b23   : > { %v2761_v36 = vrot.slane %v2756_v9, 2  ;;  %v3545_v37 = vpop.f32.mrb[19].mxu1 }
0x2b25   : > { %v2763_v38 = vadd.f32 %v2761_v36, %v4037_v5 }
0x2b27   : > { %3731 = vtanh.f32 %v2763_v38  ;;  %v3368_v40 = vmul.f32 -1.442695, %v2763_v38 }
0x2b29   : > { %3733 = vpow2.f32 %v3368_v40 }
0x2b2a   : > { %v3561_v5 = vpop.f32.mrb[20].mxu1 }
0x2b2b   : > { %v2975_v50 = vpop.f32.mrb[21].mxu1 }
0x2b31   : > { %v3732_v39 = vpop.eup %3731 }
0x2b32   : > { %2776 = vrot.lane.b32.xlu1 %v3732_v39, %s4233_s22  ;;  %s752_s22 = scalar_lea.vmem %s4216_s13, %s4237_s25 }
0x2b33   : > { %v3734_v41 = vpop.eup %3733  ;;  %v3373_v49 = vld [vmem:[%s752_s22] ss:$0 sm:$0xff] }
0x2b34   : > { %v2767_v23 = vadd.f32 1.0, %v3734_v41  ;;  %v2981_v48 = vadd.f32 %v3561_v5, %v3373_v49  ;;  %v2976_v1 = vadd.f32 %v3373_v49, %v2975_v50 }
0x2b36   : > { %3735 = vrcp.f32 %v2767_v23  ;;  %v2987_v53 = vmul.f32 0.01, %v2981_v48  ;;  %v2986_v54 = vmul.f32 0.01, %v2976_v1  ;;  %vm2985_vm9 = vcmp.ge.f32.partialorder %v2981_v48, 0.0 }
0x2b37   : > { %vm2984_vm10 = vcmp.ge.f32.partialorder %v2976_v1, 0.0 }
0x2b38   : > { %v2989_v56 = vsel %vm2985_vm9, %v2981_v48, %v2987_v53  ;;  %v2988_v57 = vsel %vm2984_vm10, %v2976_v1, %v2986_v54 }
0x2b39   : > { %3570 = vmatprep.mubr.msk.f32.mxu0 %vm1830_vm6, %v2988_v57 }
0x2b3a   : > { %3571 = vmatmul.mubr.msk.f32.vlgmr.msra.gmra.mrb[20].mxu0 %vm1830_vm6, %v2989_v56 }
0x2b40   : > { %v3736_v42 = vpop.eup %3735 }
0x2ba4   : > { %v2777_v43 = vpop.permute.xlu1 %2776 }
0x2ba5   : > { %v2779_v45 = vmul.f32 %v3736_v42, %v2777_v43 }
0x2ba7   : > { %2781 = vrot.lane.b32.xlu0 %v2779_v45, %s4234_s1 }
0x2bab   : > { %2132 = vrot.lane.b32.xlu0 %v4065_v44, %s4232_s27  ;;  %v2772_v44 = vrot.slane %v4122_v16, 6 }
0x2bad   : > { %v2774_v58 = vmul.f32 %v3736_v42, %v2772_v44 }
0x2baf   : > { %2354 = vrot.lane.b32.xlu0 %v4091_v21, %s4232_s27 }
0x2bb3   : > { %2681 = vrot.lane.b32.xlu0 %v4136_v11, %s4232_s27 }
0x2c0d   : > { %v3572_v6 = vpop.f32.mrb[20].mxu0 }
0x2c0e   : > { %v3079_v8 = vadd.f32 %v3572_v6, %v3376_v4  ;;  %v3073_v10 = vpop.f32.mrb[21].mxu0 }
0x2c0f   : > { %v3074_v12 = vadd.f32 %v3376_v4, %v3073_v10 }
0x2c10   : > { %3083 = vst.msk [vmem:[%s770_s19 + $0x8] sm:$0xff] %vm781_vm0, %v3079_v8 }
0x2c11   : > { %3082 = vst.msk [vmem:[%s770_s19] sm:$0xff] %vm781_vm0, %v3074_v12 }
0x2c19   : > { %v2782_v60 = vpop.permute.xlu0 %2781 }
0x2c1a   : > { %v2784_v61 = vadd.f32 %v2782_v60, %v2774_v58 }
0x2c1c   : > { %3737 = vtanh.f32 %v2784_v61 }
0x2c1d   : > { %v2133_v21 = vpop.permute.xlu0 %2132 }
0x2c1e   : > { %2135 = vst.msk [vmem:[%s4052_s23] sm:$0xc] %vm1075_vm3, %v2133_v21 }
0x2c21   : > { %v2355_v62 = vpop.permute.xlu0 %2354 }
0x2c22   : > { %2357 = vst.msk [vmem:[%s4052_s23] sm:$0xc0] %vm1299_vm4, %v2355_v62 }
0x2c25   : > { %v2682_v63 = vpop.permute.xlu0 %2681 }
0x2c26   : > { %v3738_v2 = vpop.eup %3737  ;;  %2684 = vst.msk [vmem:[%s4052_s23 + $0x8] sm:$0x30] %vm1187_vm5, %v2682_v63 }
0x2c27   : > { %2787 = vrot.lane.b32.xlu1 %v3738_v2, %s3751_s18 }
0x2c2b   : > { %2243 = vrot.lane.b32.xlu1 %v4078_v59, %s4232_s27 }
0x2c2f   : > { %2570 = vrot.lane.b32.xlu1 %v4114_v55, %s4232_s27 }
0x2c99   : > { %v2788_v59 = vpop.permute.xlu1 %2787 }
0x2c9a   : > { %v2790_v55 = vmul.f32 %v3736_v42, %v2788_v59 }
0x2c9c   : > { %2792 = vrot.lane.b32.xlu1 %v2790_v55, %s4232_s27 }
0x2c9d   : > { %v2244_v13 = vpop.permute.xlu1 %2243 }
0x2c9e   : > { %2246 = vst.msk [vmem:[%s4052_s23] sm:$0x30] %vm1187_vm5, %v2244_v13 }
0x2ca1   : > { %v2571_v14 = vpop.permute.xlu1 %2570 }
0x2ca2   : > { %2573 = vst.msk [vmem:[%s4052_s23 + $0x8] sm:$0xc] %vm1075_vm3, %v2571_v14 }
0x2d0e   : > { %v2793_v15 = vpop.permute.xlu1 %2792 }
0x2d0f   : > { %2795 = vst.msk [vmem:[%s4052_s23 + $0x8] sm:$0xc0] %vm1299_vm4, %v2793_v15 }
0x2d10 PF: > { %s28_s24 = sadd.s32 1, %s3745_s24  }
0x2d11   : > { %p25_p4 = scmp.ge.s32.totalorder %s28_s24, 4  }
0x2d13   :  { %27 = sbr.rel (!%p25_p4) target bundleno = 3 (0x3), region = 165 }

</bundles_post_ra>
